<compile_context>
chip_gen: v6e
topology: v6e:2x2x1
jax: 0.10.0
libtpu: 0.0.40
codegen_flags: <defaults>
</compile_context>

<pallas_src>
import functools
import math

import jax
import jax.numpy as jnp
from jax import lax
from jax.experimental import pallas as pl
from jax.experimental.pallas import tpu as pltpu

LANE = 128  # trunk/recon channels are zero-padded to the TPU lane width


def _row_chunk(h, w, target_rows=1024):
    """Rows per conv chunk: keeps each chunk's (rows*W, 128) f32 accumulator
    bounded (~512 KiB) regardless of resolution; handles ragged tails."""
    return max(1, min(h, target_rows // max(w, 1)))


def _vmem_budget(nbytes):
    """Scoped-VMEM request = measured footprint + headroom for in-kernel
    temporaries, clamped to v7x's 64 MiB physical VMEM per TensorCore."""
    return int(max(24 << 20, min(nbytes * 3 // 2 + (8 << 20), 64 << 20)))


# ----------------------------------------------------------------------------
# Head conv: one packed K = 9*Cin matmul (Cin is tiny, e.g. 4).
# The im2col + zero pad is done wrapper-side in XLA (input is ~0.5 MB so the
# HBM round trip is negligible); the kernel sees a lane-dense matmul.
# ----------------------------------------------------------------------------
def _head_matmul_kernel(p_ref, w_ref, b_ref, o_ref):
    """p_ref: (1, H*W, 9*Cin) bf16; w_ref: (9*Cin, Cout) bf16;
    b_ref: (1, Cout) f32; o_ref: (1, H*W, Cout) f32."""
    o_ref[0] = (jnp.dot(p_ref[0], w_ref[...],
                        preferred_element_type=jnp.float32) + b_ref[0])


def head_conv(x, wk, bk):
    """x: (N, H, W, Cin) f32; wk: (9*Cin, Coutp) bf16; bk: (1, Coutp) f32."""
    N, H, W, Cin = x.shape
    Coutp = wk.shape[-1]
    xp = jnp.pad(x, ((0, 0), (1, 1), (1, 1), (0, 0)))
    taps = [xp[:, dy:dy + H, dx:dx + W, :] for dy in range(3) for dx in range(3)]
    patches = (jnp.concatenate(taps, axis=-1)
               .reshape(N, H * W, 9 * Cin).astype(jnp.bfloat16))
    out = pl.pallas_call(
        _head_matmul_kernel,
        out_shape=jax.ShapeDtypeStruct((N, H * W, Coutp), jnp.float32),
        grid=(N,),
        in_specs=[
            pl.BlockSpec((1, H * W, 9 * Cin), lambda n: (n, 0, 0)),
            pl.BlockSpec((9 * Cin, Coutp), lambda n: (0, 0)),
            pl.BlockSpec((1, Coutp), lambda n: (0, 0)),
        ],
        out_specs=pl.BlockSpec((1, H * W, Coutp), lambda n: (n, 0, 0)),
        compiler_params=pltpu.CompilerParams(dimension_semantics=("parallel",)),
    )(patches, wk, bk)
    return out.reshape(N, H, W, Coutp)


# ----------------------------------------------------------------------------
# Fused RCAB trunk: one pallas_call, grid = (batch, layer).
# ----------------------------------------------------------------------------
def _rcab_stack_kernel(x_ref, w1_ref, b1_ref, w2_ref, b2_ref,
                       caw1_ref, cab1_ref, caw2_ref, cab2_ref,
                       o_ref, acc_ref, res_ref, xp0_ref, xp1_ref, *, rc):
    l = pl.program_id(1)
    n_layers = pl.num_programs(1)
    H, W, C = acc_ref.shape[1], acc_ref.shape[2], acc_ref.shape[3]

    @pl.when(l == 0)
    def _init():
        # Zero only the 1-px halo border of both bf16 staging buffers (the
        # interior is fully rewritten every layer); bring the activation
        # resident into VMEM for the whole layer stack.
        zrow = jnp.zeros((W + 2, C), jnp.bfloat16)
        zcol = jnp.zeros((H + 2, C), jnp.bfloat16)
        for xp in (xp0_ref, xp1_ref):
            xp[0, 0, :, :] = zrow
            xp[0, H + 1, :, :] = zrow
            xp[0, :, 0, :] = zcol
            xp[0, :, W + 1, :] = zcol
        acc_ref[...] = x_ref[...]

    def conv_zero_pad(src, w_ref, b_row, relu, emit):
        """3x3 zero-pad conv reading the bf16 halo `src`; per-tap MXU dots
        accumulate in f32; `emit(r0, rch, chunk)` consumes each row chunk
        directly (no concat / re-store of the full image)."""
        # TODO(synk): dx=1/2 taps are sublane-misaligned views; pltpu.roll on
        # the otherwise idle XLU could make the shifts free.
        for r0 in range(0, H, rc):
            rch = min(rc, H - r0)
            acc = jnp.zeros((rch * W, C), jnp.float32)
            for dy in range(3):
                for dx in range(3):
                    tap = src[0, r0 + dy:r0 + dy + rch, dx:dx + W, :]
                    acc = acc + jnp.dot(tap.reshape(rch * W, C),
                                        w_ref[0, dy * 3 + dx],
                                        preferred_element_type=jnp.float32)
            acc = acc + b_row
            if relu:
                acc = jnp.maximum(acc, 0.0)
            emit(r0, rch, acc)

    # Stage the resident activation into the bf16 zero-padded halo (one cast).
    xp0_ref[0, 1:H + 1, 1:W + 1, :] = acc_ref[0].astype(jnp.bfloat16)

    # conv1 + ReLU -> written chunk-by-chunk straight into the second halo.
    def emit_h(r0, rch, chunk):
        xp1_ref[0, 1 + r0:1 + r0 + rch, 1:W + 1, :] = (
            chunk.astype(jnp.bfloat16).reshape(rch, W, C))

    conv_zero_pad(xp0_ref, w1_ref, b1_ref[0], True, emit_h)

    # conv2 (no activation) -> res scratch (f32); the channel-attention global
    # average pool is folded into this epilogue (per-chunk row sums).
    pooled_sum = [jnp.zeros((1, C), jnp.float32)]

    def emit_res(r0, rch, chunk):
        res_ref[0, r0:r0 + rch, :, :] = chunk.reshape(rch, W, C)
        pooled_sum[0] = pooled_sum[0] + jnp.sum(chunk, axis=0, keepdims=True)

    conv_zero_pad(xp1_ref, w2_ref, b2_ref[0], False, emit_res)

    # Channel attention: scale = sigmoid(W2 relu(W1 avgpool(res)))  (f32 VPU)
    pooled = pooled_sum[0] * (1.0 / float(H * W))                      # (1, C)
    hid = jnp.sum(pooled * caw1_ref[0], axis=-1, keepdims=True) + cab1_ref[0]
    hid = jnp.maximum(hid, 0.0)                                        # (Cr, 1)
    scale = jnp.sum(hid * caw2_ref[0], axis=0, keepdims=True) + cab2_ref[0]
    scale = jax.nn.sigmoid(scale)                                      # (1, C)

    # Residual add; running activation stays resident in VMEM (f32).
    acc_ref[0] = acc_ref[0] + res_ref[0] * scale.reshape(1, 1, C)

    @pl.when(l == n_layers - 1)
    def _flush():
        o_ref[...] = acc_ref[...]


def rcab_stack(feats, trunk, n_layers, *, rc):
    """feats: (N, H, W, Cp) f32 with Cp == LANE. Applies trunk layers [0, n_layers)."""
    N, H, W, C = feats.shape
    L = n_layers
    w1s, b1s = trunk["w1"][:L], trunk["b1"][:L]
    w2s, b2s = trunk["w2"][:L], trunk["b2"][:L]
    caw1s, cab1s = trunk["caw1"][:L], trunk["cab1"][:L]
    caw2s, cab2s = trunk["caw2"][:L], trunk["cab2"][:L]
    Cr = caw1s.shape[1]

    scratch_bytes = (2 * H * W * C * 4                      # acc + res (f32)
                     + 2 * (H + 2) * (W + 2) * C * 2)       # two bf16 halos
    block_bytes = 2 * (2 * H * W * C * 4                    # feats in + out
                       + 2 * 9 * C * C * 2                  # conv weights (bf16)
                       + 4 * C * 4 + 2 * Cr * C * 4 + Cr * 4)

    kernel = functools.partial(_rcab_stack_kernel, rc=rc)
    return pl.pallas_call(
        kernel,
        out_shape=jax.ShapeDtypeStruct((N, H, W, C), jnp.float32),
        grid=(N, L),
        in_specs=[
            pl.BlockSpec((1, H, W, C), lambda n, l: (n, 0, 0, 0)),   # feats (DMA'd once per n)
            pl.BlockSpec((1, 9, C, C), lambda n, l: (l, 0, 0, 0)),   # conv1 weight (bf16)
            pl.BlockSpec((1, 1, C), lambda n, l: (l, 0, 0)),         # conv1 bias
            pl.BlockSpec((1, 9, C, C), lambda n, l: (l, 0, 0, 0)),   # conv2 weight (bf16)
            pl.BlockSpec((1, 1, C), lambda n, l: (l, 0, 0)),         # conv2 bias
            pl.BlockSpec((1, Cr, C), lambda n, l: (l, 0, 0)),        # CA W1   (Cr, C)
            pl.BlockSpec((1, Cr, 1), lambda n, l: (l, 0, 0)),        # CA b1   (Cr, 1)
            pl.BlockSpec((1, Cr, C), lambda n, l: (l, 0, 0)),        # CA W2^T (Cr, C)
            pl.BlockSpec((1, 1, C), lambda n, l: (l, 0, 0)),         # CA b2   (1, C)
        ],
        out_specs=pl.BlockSpec((1, H, W, C), lambda n, l: (n, 0, 0, 0)),
        scratch_shapes=[
            pltpu.VMEM((1, H, W, C), jnp.float32),                   # resident activation
            pltpu.VMEM((1, H, W, C), jnp.float32),                   # conv2 residual
            pltpu.VMEM((1, H + 2, W + 2, C), jnp.bfloat16),          # halo: conv1 input
            pltpu.VMEM((1, H + 2, W + 2, C), jnp.bfloat16),          # halo: conv2 input
        ],
        compiler_params=pltpu.CompilerParams(
            dimension_semantics=("parallel", "arbitrary"),
            vmem_limit_bytes=_vmem_budget(scratch_bytes + block_bytes)),
    )(feats, w1s, b1s, w2s, b2s, caw1s, cab1s, caw2s, cab2s)


# ----------------------------------------------------------------------------
# Fused ReconstructionLayer: 4 reflect-pad 3x3 convs + ReLU in ONE pallas_call.
# Intermediates stay lane-padded (128) in two ping-pong bf16 VMEM halos; only
# the final (H, W, in_features) image leaves VMEM.
# ----------------------------------------------------------------------------
def _recon_kernel(x_ref, w_ref, b_ref, o_ref, xp0_ref, xp1_ref, *, rc):
    """x_ref: (1,H,W,CP) f32; w_ref: (4,9,CP,CP) bf16; b_ref: (4,1,CP) f32;
    o_ref: (1,H,W,Cout) f32; xp0/xp1: (1,H+2,W+2,CP) bf16 halo buffers."""
    H, W, CP = x_ref.shape[1], x_ref.shape[2], x_ref.shape[3]
    Cout = o_ref.shape[3]

    def reflect_pad(xp):
        # 1-px reflect border (PyTorch 'reflect'): padded[0] = x[1], etc.
        # Rows first (interior columns), then full-height columns -> corners
        # come out as x[1, 1] / x[1, W-2] / ... exactly like F.pad reflect.
        xp[0, 0, 1:W + 1, :] = xp[0, 2, 1:W + 1, :]
        xp[0, H + 1, 1:W + 1, :] = xp[0, H - 1, 1:W + 1, :]
        xp[0, :, 0, :] = xp[0, :, 2, :]
        xp[0, :, W + 1, :] = xp[0, :, W - 1, :]

    def conv_relu(src, idx, emit):
        for r0 in range(0, H, rc):
            rch = min(rc, H - r0)
            acc = jnp.zeros((rch * W, CP), jnp.float32)
            for dy in range(3):
                for dx in range(3):
                    tap = src[0, r0 + dy:r0 + dy + rch, dx:dx + W, :]
                    acc = acc + jnp.dot(tap.reshape(rch * W, CP),
                                        w_ref[idx, dy * 3 + dx],
                                        preferred_element_type=jnp.float32)
            acc = jnp.maximum(acc + b_ref[idx], 0.0)   # every recon conv is ReLU'd
            emit(r0, rch, acc)

    # Stage trunk features (reflect padded) into the first halo buffer.
    xp0_ref[0, 1:H + 1, 1:W + 1, :] = x_ref[0].astype(jnp.bfloat16)
    reflect_pad(xp0_ref)

    bufs = (xp0_ref, xp1_ref)
    for i in range(3):                               # convs 1..3 -> next VMEM buffer
        dst = bufs[(i + 1) % 2]

        def emit_mid(r0, rch, chunk, dst=dst):
            dst[0, 1 + r0:1 + r0 + rch, 1:W + 1, :] = (
                chunk.astype(jnp.bfloat16).reshape(rch, W, CP))

        conv_relu(bufs[i % 2], i, emit_mid)
        reflect_pad(dst)

    # Final conv: only the true output channels leave VMEM.
    def emit_last(r0, rch, chunk):
        o_ref[0, r0:r0 + rch, :, :] = chunk.reshape(rch, W, CP)[:, :, :Cout]

    conv_relu(bufs[1], 3, emit_last)


def reconstruction(feats, rw, rb, out_channels, *, rc):
    N, H, W, CP = feats.shape
    scratch_bytes = 2 * (H + 2) * (W + 2) * CP * 2
    block_bytes = 2 * (H * W * CP * 4 + H * W * out_channels * 4
                       + 4 * 9 * CP * CP * 2 + 4 * CP * 4)
    kernel = functools.partial(_recon_kernel, rc=rc)
    return pl.pallas_call(
        kernel,
        out_shape=jax.ShapeDtypeStruct((N, H, W, out_channels), jnp.float32),
        grid=(N,),
        in_specs=[
            pl.BlockSpec((1, H, W, CP), lambda n: (n, 0, 0, 0)),
            pl.BlockSpec((4, 9, CP, CP), lambda n: (0, 0, 0, 0)),
            pl.BlockSpec((4, 1, CP), lambda n: (0, 0, 0)),
        ],
        out_specs=pl.BlockSpec((1, H, W, out_channels), lambda n: (n, 0, 0, 0)),
        scratch_shapes=[
            pltpu.VMEM((1, H + 2, W + 2, CP), jnp.bfloat16),
            pltpu.VMEM((1, H + 2, W + 2, CP), jnp.bfloat16),
        ],
        compiler_params=pltpu.CompilerParams(
            dimension_semantics=("parallel",),
            vmem_limit_bytes=_vmem_budget(scratch_bytes + block_bytes)),
    )(feats, rw, rb)


# ----------------------------------------------------------------------------
# Bilinear 2x upsample (XLA glue; matches F.interpolate(scale_factor=2,
# mode='bilinear', align_corners=False)).  Gather-free: fixed 0.25/0.75 blend.
# ----------------------------------------------------------------------------
def _up2x_axis(x, axis):
    n = x.shape[axis]
    prev_ = jnp.concatenate([lax.slice_in_dim(x, 0, 1, axis=axis),
                             lax.slice_in_dim(x, 0, n - 1, axis=axis)], axis=axis)
    next_ = jnp.concatenate([lax.slice_in_dim(x, 1, n, axis=axis),
                             lax.slice_in_dim(x, n - 1, n, axis=axis)], axis=axis)
    even = 0.25 * prev_ + 0.75 * x          # out[2i]   (edge clamps to x[0])
    odd = 0.75 * x + 0.25 * next_           # out[2i+1] (edge clamps to x[n-1])
    out = jnp.stack([even, odd], axis=axis + 1)
    new_shape = list(x.shape)
    new_shape[axis] = 2 * n
    return out.reshape(new_shape)


def upsample2x_bilinear(x_nhwc):
    return _up2x_axis(_up2x_axis(x_nhwc, 1), 2)


# ----------------------------------------------------------------------------
# Parameter init / packing (deterministic, synthetic)
# ----------------------------------------------------------------------------
def _conv_init(key, kh, kw, cin, cout):
    wkey, bkey = jax.random.split(key)
    fan_in = kh * kw * cin
    w = jax.random.normal(wkey, (kh, kw, cin, cout), jnp.float32) * (2.0 / fan_in) ** 0.5
    b = jax.random.normal(bkey, (cout,), jnp.float32) * 0.01
    return w, b


def _pad_last(x, cp):
    pad = cp - x.shape[-1]
    if pad <= 0:
        return x
    return jnp.pad(x, [(0, 0)] * (x.ndim - 1) + [(0, pad)])


def _pack_conv_w(w, cp):
    """(3,3,cin,cout) -> (9, cp, cp) bf16, zero padded in both channel dims."""
    kh, kw, cin, cout = w.shape
    wp = jnp.zeros((kh * kw, cp, cp), jnp.float32)
    wp = wp.at[:, :cin, :cout].set(w.reshape(kh * kw, cin, cout))
    return wp.astype(jnp.bfloat16)


def _rcab_init(key, c, reduction=16):
    k1, k2, k3, k4 = jax.random.split(key, 4)
    cr = max(1, c // reduction)
    w1, b1 = _conv_init(k1, 3, 3, c, c)
    w2, b2 = _conv_init(k2, 3, 3, c, c)
    caw1, cab1 = _conv_init(k3, 1, 1, c, cr)      # 1x1: C -> Cr
    caw2, cab2 = _conv_init(k4, 1, 1, cr, c)      # 1x1: Cr -> C
    return dict(w1=w1, b1=b1, w2=w2, b2=b2,
                caw1=caw1.reshape(c, cr).T,       # (Cr, C) == W1
                cab1=cab1,                        # (Cr,)
                caw2t=caw2.reshape(cr, c),        # (Cr, C) == W2^T
                cab2=cab2)                        # (C,)


class ResidualChannelAttentionGeneratorPallas:
    def __init__(self, shape_originals, upsample_factor=4, init_prog_step=2,
                 n_blocks=25, reduction=16, key=None):
        assert upsample_factor > 0 and math.log2(upsample_factor).is_integer()
        if key is None:
            key = jax.random.PRNGKey(0)
        num_prog_steps = int(math.log2(upsample_factor)) + 1
        in_features = shape_originals[0]
        c = 16 * in_features
        # TODO(synk): tile the channel dimension if 16*in_features > 128.
        assert c <= LANE
        cp = LANE
        cr = max(1, c // reduction)
        self.n_blocks = n_blocks
        self.prog_depth = init_prog_step
        self.out_channels = in_features

        n_layers = 1 + n_blocks * num_prog_steps
        keys = jax.random.split(key, 1 + n_layers + 4)

        # head: Conv2d(in_features, 16*in_features, 3, padding=1); Cout lane-padded.
        hw, hb = _conv_init(keys[0], 3, 3, in_features, c)
        hw = _pad_last(hw, cp)                                        # (3,3,in,cp)
        hb = _pad_last(hb, cp)                                        # (cp,)
        self.head_wk = hw.reshape(9 * in_features, cp).astype(jnp.bfloat16)
        self.head_bk = hb.reshape(1, cp).astype(jnp.float32)

        # RCAB trunk, packed & stacked for the single fused pallas_call.
        raw = [_rcab_init(keys[1 + i], c, reduction) for i in range(n_layers)]
        self.trunk = dict(
            w1=jnp.stack([_pack_conv_w(p["w1"], cp) for p in raw]),              # (L,9,cp,cp) bf16
            b1=jnp.stack([_pad_last(p["b1"], cp).reshape(1, cp) for p in raw]),  # (L,1,cp)
            w2=jnp.stack([_pack_conv_w(p["w2"], cp) for p in raw]),
            b2=jnp.stack([_pad_last(p["b2"], cp).reshape(1, cp) for p in raw]),
            caw1=jnp.stack([_pad_last(p["caw1"], cp) for p in raw]),             # (L,cr,cp)
            cab1=jnp.stack([p["cab1"].reshape(cr, 1) for p in raw]),             # (L,cr,1)
            caw2=jnp.stack([_pad_last(p["caw2t"], cp) for p in raw]),            # (L,cr,cp)
            cab2=jnp.stack([_pad_last(p["cab2"], cp).reshape(1, cp) for p in raw]),
        )

        # ReconstructionLayer: 16C -> 8C -> 4C -> 2C -> C, reflect pad, ReLU each.
        # All 4 weights are zero-padded to 128x128 lanes (padded lanes of the
        # activations are provably zero, so the padded matmuls are exact).
        true_chans = [c, 8 * in_features, 4 * in_features, 2 * in_features, in_features]
        rw, rb = [], []
        for i in range(4):
            w, b = _conv_init(keys[1 + n_layers + i], 3, 3,
                              true_chans[i], true_chans[i + 1])
            rw.append(_pack_conv_w(w, cp))
            rb.append(_pad_last(b, cp).reshape(1, cp))
        self.recon_w = jnp.stack(rw)                                   # (4,9,cp,cp) bf16
        self.recon_b = jnp.stack(rb).astype(jnp.float32)               # (4,1,cp)

    def __call__(self, image_nchw):
        x = jnp.transpose(image_nchw, (0, 2, 3, 1)).astype(jnp.float32)  # NCHW -> NHWC
        step = 0
        for step in range(1, self.prog_depth + 1):
            x = upsample2x_bilinear(x)
        feats = head_conv(x, self.head_wk, self.head_bk)
        H, W = feats.shape[1], feats.shape[2]
        rc = _row_chunk(H, W)
        n_used = 1 + self.n_blocks * step
        feats = rcab_stack(feats, self.trunk, n_used, rc=rc)
        img = reconstruction(feats, self.recon_w, self.recon_b,
                             self.out_channels, rc=rc)
        return {"generated": jnp.transpose(img, (0, 3, 1, 2))}           # NHWC -> NCHW


if __name__ == "__main__":
    key = jax.random.PRNGKey(0)
    kparams, kx = jax.random.split(key)

    # B=2, C=4, H=W=16, 4x upsample -> 64x64 output
    gen = ResidualChannelAttentionGeneratorPallas(
        shape_originals=(4, 16, 16),
        upsample_factor=4,
        init_prog_step=2,
        n_blocks=2,          # kept small for the demo (module default is 25)
        key=kparams,
    )
    x = jax.random.normal(kx, (2, 4, 16, 16), jnp.float32)

    out = gen(x)
    generated = jax.block_until_ready(out["generated"])
    assert generated.shape == (2, 4, 64, 64), generated.shape
    assert bool(jnp.all(jnp.isfinite(generated)))
    print("KERNEL_OK")
</pallas_src>

<mosaic_0001>
module attributes {stable_mosaic.version = 11 : i64} {
  func.func @_head_matmul_kernel(%arg0: i32, %arg1: memref<1x4096x36xbf16, #tpu.memory_space<vmem>>, %arg2: memref<36x128xbf16, #tpu.memory_space<vmem>>, %arg3: memref<1x128xf32, #tpu.memory_space<vmem>>, %arg4: memref<1x4096x128xf32, #tpu.memory_space<vmem>>) attributes {dimension_semantics = [#tpu.dimension_semantics<parallel>], iteration_bounds = array<i64: 2>, scalar_prefetch = 0 : i64, scratch_operands = 0 : i64, tpu.core_type = #tpu.core_type<tc>, window_params = [{transform_indices = @transform_0, window_bounds = array<i64: 1, 4096, 36>}, {pipeline_mode = #tpu.pipeline_mode<synchronous>, transform_indices = @transform_1, window_bounds = array<i64: 36, 128>}, {pipeline_mode = #tpu.pipeline_mode<synchronous>, transform_indices = @transform_2, window_bounds = array<i64: 1, 128>}, {transform_indices = @transform_3, window_bounds = array<i64: 1, 4096, 128>}]} {
    %c0 = arith.constant 0 : index
    %c0_0 = arith.constant 0 : index
    %c0_1 = arith.constant 0 : index
    %0 = vector.load %arg1[%c0, %c0_0, %c0_1] : memref<1x4096x36xbf16, #tpu.memory_space<vmem>>, vector<1x4096x36xbf16>
    %1 = vector.shape_cast %0 : vector<1x4096x36xbf16> to vector<4096x36xbf16>
    %c0_2 = arith.constant 0 : index
    %c0_3 = arith.constant 0 : index
    %2 = vector.load %arg2[%c0_2, %c0_3] : memref<36x128xbf16, #tpu.memory_space<vmem>>, vector<36x128xbf16>
    %cst = arith.constant dense<0.000000e+00> : vector<4096x128xf32>
    %3 = tpu.matmul %1, %2, %cst {dimension_numbers = #tpu.dot_dimension_numbers<[1], [0], [0], [1], [0, 0, 1, 1], [], []>} : vector<4096x36xbf16>, vector<36x128xbf16>, vector<4096x128xf32> -> vector<4096x128xf32>
    %c0_4 = arith.constant 0 : index
    %c0_5 = arith.constant 0 : index
    %4 = vector.load %arg3[%c0_4, %c0_5] : memref<1x128xf32, #tpu.memory_space<vmem>>, vector<1x128xf32>
    %5 = vector.shape_cast %4 : vector<1x128xf32> to vector<128xf32>
    %6 = vector.shape_cast %5 : vector<128xf32> to vector<1x128xf32>
    %7 = vector.broadcast %6 : vector<1x128xf32> to vector<4096x128xf32>
    %8 = arith.addf %3, %7 : vector<4096x128xf32>
    %c0_6 = arith.constant 0 : index
    %c0_7 = arith.constant 0 : index
    %c0_8 = arith.constant 0 : index
    %9 = vector.load %arg4[%c0_6, %c0_7, %c0_8] : memref<1x4096x128xf32, #tpu.memory_space<vmem>>, vector<1x4096x128xf32>
    %10 = vector.shape_cast %9 : vector<1x4096x128xf32> to vector<4096x128xf32>
    %11 = vector.shape_cast %8 : vector<4096x128xf32> to vector<1x4096x128xf32>
    tpu.vector_store %arg4[%c0_6, %c0_7, %c0_8], %11 {strides = array<i32>} : memref<1x4096x128xf32, #tpu.memory_space<vmem>>, vector<1x4096x128xf32>,
    return
  }
  func.func @transform_0(%arg0: i32) -> (i32, i32, i32) {
    %c0_i32 = arith.constant 0 : i32
    %c0_i32_0 = arith.constant 0 : i32
    %c0_i32_1 = arith.constant 0 : i32
    return %arg0, %c0_i32, %c0_i32_0 : i32, i32, i32
  }
  func.func @transform_1(%arg0: i32) -> (i32, i32) {
    %c0_i32 = arith.constant 0 : i32
    %c0_i32_0 = arith.constant 0 : i32
    %c0_i32_1 = arith.constant 0 : i32
    return %c0_i32, %c0_i32_0 : i32, i32
  }
  func.func @transform_2(%arg0: i32) -> (i32, i32) {
    %c0_i32 = arith.constant 0 : i32
    %c0_i32_0 = arith.constant 0 : i32
    %c0_i32_1 = arith.constant 0 : i32
    return %c0_i32, %c0_i32_0 : i32, i32
  }
  func.func @transform_3(%arg0: i32) -> (i32, i32, i32) {
    %c0_i32 = arith.constant 0 : i32
    %c0_i32_0 = arith.constant 0 : i32
    %c0_i32_1 = arith.constant 0 : i32
    return %arg0, %c0_i32, %c0_i32_0 : i32, i32, i32
  }
}

</mosaic_0001>

<bundles_post_ra>
// kernel: tpu_custom_call.1
= control target key start
LH: loop header
LB: loop body
LE: loop exit
PB: predicated region body
PF: predicated region fallthrough
CT: control target
= control target key end

     0   :  { %8 = vsyncpa [#allocation3], 0  ;;  %s8971_s0 = inlined_call_operand.vmem [shape: bf16[2,4096,36], index: 0, kind: input, shape index: {}]   ;;  %s8972_s1 = inlined_call_operand.hbm [shape: bf16[36,128], index: 1, kind: input, shape index: {}]   ;;  %s8973_s2 = inlined_call_operand.hbm [shape: f32[1,128], index: 2, kind: input, shape index: {}]   ;;  %s8974_s3 = inlined_call_operand.hbm [shape: f32[2,4096,128], index: 3, kind: output, shape index: {}]  }
   0x1   :  { %9 = vsyncpa [#allocation6], 0 }
   0x2   :  { %10 = vsyncpa [#allocation4], 0 }
   0x3   :  { %12 = vsyncpa [#allocation4 + $0x1], 0  ;;  %s7275_s12 = smov 0   ;;  %s7277_s13 = smov 0  }
   0x4   :  { %s7279_s14 = smov 0   ;;  %s7281_s15 = smov 0  }
   0x5 LB: > { %s7296_s16 = sadd.s32 4294967295, %s7246_s15   ;;  %s5481_s17 = sadd.s32 4294967294, %s7246_s15   ;;  %s7246_s15 = sphi %s7281_s15, %s8987_s15   ;;  %s7242_s14 = sphi %s7279_s14, %s8986_s14   ;;  %s7238_s13 = sphi %s7277_s13, %s8985_s13   ;;  %s7234_s12 = sphi %s7275_s12, %s8984_s12  }
   0x6   : > { %s7300_s18 = sadd.s32 1, %s7246_s15   ;;  %s93_s19 = sadd.s32 1, %s7242_s14 }
   0x7   : > { %s90_s20 = ssub.s32 %s7246_s15, %s7300_s18  ;;  %p103_p0 = scmp.ne.s32.totalorder %s7242_s14, %s7238_s13 }
   0x8   : > { %p91_p1 = scmp.eq.s32.totalorder %s90_s20, 0  ;;  %p104_p2 = scmp.eq.s32.totalorder %s7296_s16, 1 }
   0x9   : > { %p109_p3 = scmp.ne.s32.totalorder %s7238_s13, %s7234_s12  ;;  %p110_p4 = scmp.eq.s32.totalorder %s5481_s17, 1 }
   0xa   : > { %s7311_s21 = scalar_select %p91_p1, %s7242_s14, %s93_s19  }
   0xb   : > { %p7313_p5 = por %p104_p2, %p103_p0  ;;  %p7317_p6 = por %p110_p4, %p109_p3 }
   0xc   : > { %p5482_p7 = scmp.ge.s32.totalorder %s7246_s15, 1  ;;  %p117_p8 = scmp.lt.s32.totalorder %s7246_s15, 3 }
   0xd   : > { %p8975_p9 = scmp.eq.s32.totalorder %s7296_s16, 0  ;;  %s7248_s25 = smov [#allocation2]  }
   0xe   : > { %p7324_p10 = pnand %p5482_p7, %p117_p8  ;;  %s129_s26 = sshll.u32 %s7248_s25, 4  ;;  %s130_s26 = int_to_ptr.vmem [resolvable:$true] %s129_s26 }
   0xf   : > { %s7249_s28 = smov [#allocation5]   ;;  %s7137_s30 = scalar_lea.vmem %s130_s26, 320 }
  0x10   : > { %p6810_p11 = pneg %p7324_p10  ;;  %s143_s29 = sshll.u32 %s7249_s28, 4  ;;  %s144_s29 = int_to_ptr.vmem [resolvable:$true] %s143_s29 }
  0x11   : > { %p7138_p0 = scmp.ne.s32.totalorder %s130_s26, %s7137_s30  ;;  %p7145_p3 = scmp.lt.s32.totalorder %s130_s26, %s130_s26 }
  0x12   : > { %p7332_p12 = pnand %p8975_p9, %p6810_p11  ;;  %p7146_p4 = scmp.lt.s32.totalorder %s7137_s30, %s7137_s30 }
  0x14   : > { %p7128_p13 = pneg %p7332_p12  ;;  %p7147_p7 = por %p7146_p4, %p7145_p3 }
  0x16   : > { %p7140_p1 = pnand %p7138_p0, %p7128_p13 }
  0x18   : > { %p7141_p2 = pneg %p7140_p1 }
  0x1a   : > { %p7148_p8 = pnand %p7147_p7, %p7141_p2 }
  0x1c   : > { %7151 = shalt.err (!%p7148_p8)
}
  0x1d   : > { %s7250_s4 = smov 64   ;;  %s7251_s5 = smov 4  }
  0x1e   : > { %6813 = dma.hbm_to_vmem [thread:$0]  (!%p7332_p12), %s8972_s1, 320, %s130_s26, [#allocation3], %s7250_s4, %s7250_s4, %s7251_s5  }
  0x1f   : > { %s7163_s8 = scalar_lea.vmem %s144_s29, 16  ;;  %s7170_s9 = scalar_lea.vmem %s144_s29, 32 }
  0x20   : > { %p7164_p11 = scmp.ne.s32.totalorder %s144_s29, %s7163_s8  ;;  %p7171_p9 = scmp.lt.s32.totalorder %s144_s29, %s144_s29 }
  0x21   : > { %p7172_p3 = scmp.lt.s32.totalorder %s7170_s9, %s7163_s8 }
  0x22   : > { %p7166_p0 = pnand %p7164_p11, %p7128_p13 }
  0x23   : > { %p7173_p2 = por %p7172_p3, %p7171_p9 }
  0x24   : > { %p7167_p1 = pneg %p7166_p0 }
  0x26   : > { %p7174_p4 = pnand %p7173_p2, %p7167_p1 }
  0x28   : > { %7177 = shalt.err (!%p7174_p4)
}
  0x29   : > { %6816 = dma.hbm_to_vmem [thread:$0]  (!%p7332_p12), %s8973_s2, 16, %s144_s29, [#allocation6]  }
  0x2a   : > { %164 = sbr.rel (%p7324_p10) target bundleno = 783 (0x30f), region = 32  ;;  %p8980_p7 = scmp.eq.s32.totalorder (!%p7324_p10), %s7296_s16, 0 }
  0x2f   : > { %7221 = dma.done.wait (%p8980_p7), [#allocation3], 320   ;;  %p8981_p13 = pmov %p8980_p7 }
  0x30   : > { %p8982_p8 = pmov %p8980_p7 }
  0x31   : > { %7223 = vsyncadd (%p8981_p13), [#allocation3], 4294966976 }
  0x32   : > { %7225 = dma.done.wait (%p8982_p8), [#allocation6], 16   ;;  %p8983_p9 = pmov %p8980_p7 }
  0x33   : > { %p192_p11 = scmp.lt.s32.totalorder %s7296_s16, 1  ;;  %vm2786_vm0 = vcmask 1041408   ;;  %vm2017_vm1 = vcmask 293888   ;;  %v6864_v0 = vld [vmem:[#allocation2 + $0x10] ss:$0 sps:$4 sm:$0x33]  }
  0x34   : > { %7227 = vsyncadd (%p8983_p9), [#allocation6], 4294967280  ;;  %v6865_v1 = vld [vmem:[#allocation2 + $0x8] sm:$0xff]   ;;  %6798 = vmatprep.subr.msk.bf16.mxu0 %vm2786_vm0, %v6864_v0  ;;  %6799 = vmatprep.subr.msk.bf16.mxu1 %vm2786_vm0, %v6864_v0  ;;  %v2788_v2 = vsel %vm2786_vm0, %v6864_v0, 0  ;;  %v6866_v3 = vld [vmem:[#allocation2] sm:$0xff]   ;;  %s189_s26 = sand.u32 1, %s7238_s13  }
  0x35   : > { %s193_s17 = scalar_select %p192_p11, %s7296_s16, 1  ;;  %6275 = vmatpush3.bf16.msra.mxu0 %v2788_v2  ;;  %6795 = vmatpush3.bf16.msra.mxu1 %v2788_v2 }
  0x36   : > { %6276 = vmatprep.subr.bf16.mxu0 %v6865_v1  ;;  %6793 = vmatprep.subr.bf16.mxu1 %v6865_v1  ;;  %s5489_s27 = sshll.u32 %s189_s26, 12  ;;  %s6014_s29 = sshll.u32 %s7296_s16, 16 }
  0x37   : > { %s6013_s19 = sshll.u32 %s193_s17, 11  ;;  %s7584_s28 = scalar_lea.vmem [#allocation7], %s5489_s27 }
  0x38   : > { %s7369_s25 = scalar_lea.vmem %s8971_s0, %s6013_s19  ;;  %s5397_s30 = sshll.u32 %s7584_s28, 4  ;;  %s8921_s30 = int_to_ptr.vmem [resolvable:$true] %s5397_s30 }
  0x39   : > { %v6867_v4 = vld [vmem:[%s7369_s25] sm:$0xff]   ;;  %6277 = vmatpush3.bf16.msra.mxu0 %v6865_v1  ;;  %6796 = vmatpush3.bf16.msra.mxu1 %v6865_v1  ;;  %v6869_v6 = vld [vmem:[%s7369_s25 + $0x8] sm:$0xff]   ;;  %v6871_v8 = vld [vmem:[%s7369_s25 + $0x10] sm:$0xff]   ;;  %s8919_s6 = scalar_lea.hbm %s8974_s3, %s6014_s29  ;;  %s8931_s16 = scalar_lea.sflag [#allocation4], %s189_s26 }
  0x3a   : > { %v6868_v5 = vld [vmem:[%s7369_s25 + $0x400] sm:$0xff]   ;;  %6280 = vmatprep.mubr.msk.bf16.mxu0 %vm2017_vm1, %v6867_v4  ;;  %6278 = vmatprep.subr.bf16.mxu0 %v6866_v3  ;;  %v6870_v7 = vld [vmem:[%s7369_s25 + $0x408] sm:$0xff]   ;;  %v6872_v9 = vld [vmem:[%s7369_s25 + $0x410] sm:$0xff]   ;;  %s7178_s7 = scalar_lea.vmem %s8921_s30, 65536  ;;  %s7252_s8 = smov [#allocation7]  }
  0x3b   : > { %6536 = vmatprep.mubr.msk.bf16.mxu1 %vm2017_vm1, %v6868_v5  ;;  %6794 = vmatprep.subr.bf16.mxu1 %v6866_v3  ;;  %v6873_v10 = vld [vmem:[%s7369_s25 + $0x18] sm:$0xff]   ;;  %v6875_v12 = vld [vmem:[%s7369_s25 + $0x20] sm:$0xff]   ;;  %v6877_v14 = vld [vmem:[%s7369_s25 + $0x28] sm:$0xff]   ;;  %p7179_p10 = scmp.ne.s32.totalorder %s8921_s30, %s7178_s7  ;;  %s7182_s9 = sshll.u32 %s7252_s8, 4  ;;  %s7183_s9 = int_to_ptr.vmem [resolvable:$false] %s7182_s9 }
  0x3c   : > { %v6874_v11 = vld [vmem:[%s7369_s25 + $0x418] sm:$0xff]   ;;  %v6876_v13 = vld [vmem:[%s7369_s25 + $0x420] sm:$0xff]   ;;  %v6878_v15 = vld [vmem:[%s7369_s25 + $0x428] sm:$0xff]   ;;  %s7184_s10 = scalar_lea.vmem %s7183_s9, 131072  ;;  %p7185_p1 = scmp.lt.s32.totalorder %s8921_s30, %s7183_s9 }
  0x3d   : > { %6279 = vmatpush3.bf16.msra.mxu0 %v6866_v3  ;;  %6797 = vmatpush3.bf16.msra.mxu1 %v6866_v3  ;;  %v6879_v16 = vld [vmem:[%s7369_s25 + $0x30] sm:$0xff]   ;;  %v6881_v18 = vld [vmem:[%s7369_s25 + $0x38] sm:$0xff]   ;;  %v6883_v20 = vld [vmem:[%s7369_s25 + $0x40] sm:$0xff]   ;;  %p7180_p12 = pnand %p7179_p10, %p7313_p5  ;;  %p7186_p3 = scmp.lt.s32.totalorder %s7184_s10, %s7178_s7 }
  0x3e   : > { %v6880_v17 = vld [vmem:[%s7369_s25 + $0x430] sm:$0xff]   ;;  %v6882_v19 = vld [vmem:[%s7369_s25 + $0x438] sm:$0xff]   ;;  %v6884_v21 = vld [vmem:[%s7369_s25 + $0x440] sm:$0xff]  }
  0x3f   : > { %v6885_v22 = vld [vmem:[%s7369_s25 + $0x48] sm:$0xff]   ;;  %v6887_v24 = vld [vmem:[%s7369_s25 + $0x50] sm:$0xff]   ;;  %v6889_v26 = vld [vmem:[%s7369_s25 + $0x58] sm:$0xff]   ;;  %p7181_p0 = pneg %p7180_p12  ;;  %p7187_p2 = por %p7186_p3, %p7185_p1 }
  0x40   : > { %6281 = vmatmul.mubr.msk.bf16.vlgmr.msra.gmra.mxu0 %vm2017_vm1, %v6869_v6  ;;  %6537 = vmatmul.mubr.msk.bf16.vlgmr.msra.gmra.mxu1 %vm2017_vm1, %v6870_v7  ;;  %v6886_v23 = vld [vmem:[%s7369_s25 + $0x448] sm:$0xff]   ;;  %v6888_v25 = vld [vmem:[%s7369_s25 + $0x450] sm:$0xff]   ;;  %v6890_v27 = vld [vmem:[%s7369_s25 + $0x458] sm:$0xff]  }
  0x41   : > { %6284 = vmatprep.mubr.msk.bf16.mxu0 %vm2017_vm1, %v6871_v8  ;;  %6540 = vmatprep.mubr.msk.bf16.mxu1 %vm2017_vm1, %v6872_v9  ;;  %v6891_v28 = vld [vmem:[%s7369_s25 + $0x60] sm:$0xff]   ;;  %v6893_v30 = vld [vmem:[%s7369_s25 + $0x68] sm:$0xff]   ;;  %v6895_v32 = vld [vmem:[%s7369_s25 + $0x70] sm:$0xff]   ;;  %p7188_p4 = pnand %p7187_p2, %p7181_p0 }
  0x42   : > { %v6892_v29 = vld [vmem:[%s7369_s25 + $0x460] sm:$0xff]   ;;  %v6894_v31 = vld [vmem:[%s7369_s25 + $0x468] sm:$0xff]   ;;  %v6896_v33 = vld [vmem:[%s7369_s25 + $0x470] sm:$0xff]  }
  0x43   : > { %v6897_v34 = vld [vmem:[%s7369_s25 + $0x78] sm:$0xff]   ;;  %v6899_v36 = vld [vmem:[%s7369_s25 + $0x80] sm:$0xff]   ;;  %v6901_v38 = vld [vmem:[%s7369_s25 + $0x88] sm:$0xff]  }
  0x44   : > { %v6898_v35 = vld [vmem:[%s7369_s25 + $0x478] sm:$0xff]   ;;  %v6900_v37 = vld [vmem:[%s7369_s25 + $0x480] sm:$0xff]   ;;  %v6902_v39 = vld [vmem:[%s7369_s25 + $0x488] sm:$0xff]  }
  0x45   : > { %v6903_v40 = vld [vmem:[%s7369_s25 + $0x90] sm:$0xff]   ;;  %v6905_v42 = vld [vmem:[%s7369_s25 + $0x98] sm:$0xff]   ;;  %v6907_v44 = vld [vmem:[%s7369_s25 + $0xa0] sm:$0xff]  }
  0x46   : > { %v6904_v41 = vld [vmem:[%s7369_s25 + $0x490] sm:$0xff]   ;;  %v6906_v43 = vld [vmem:[%s7369_s25 + $0x498] sm:$0xff]   ;;  %v6908_v45 = vld [vmem:[%s7369_s25 + $0x4a0] sm:$0xff]  }
  0x47   : > { %v6909_v46 = vld [vmem:[%s7369_s25 + $0xa8] sm:$0xff]   ;;  %v6911_v48 = vld [vmem:[%s7369_s25 + $0xb0] sm:$0xff]   ;;  %v6913_v50 = vld [vmem:[%s7369_s25 + $0xb8] sm:$0xff]  }
  0x48   : > { %6285 = vmatmul.mubr.msk.bf16.gmra.mxu0 %vm2017_vm1, %v6873_v10  ;;  %6541 = vmatmul.mubr.msk.bf16.gmra.mxu1 %vm2017_vm1, %v6874_v11  ;;  %v6910_v47 = vld [vmem:[%s7369_s25 + $0x4a8] sm:$0xff]   ;;  %v6912_v49 = vld [vmem:[%s7369_s25 + $0x4b0] sm:$0xff]   ;;  %v6914_v51 = vld [vmem:[%s7369_s25 + $0x4b8] sm:$0xff]  }
  0x49   : > { %6288 = vmatprep.mubr.msk.bf16.mxu0 %vm2017_vm1, %v6875_v12  ;;  %6544 = vmatprep.mubr.msk.bf16.mxu1 %vm2017_vm1, %v6876_v13  ;;  %v6915_v52 = vld [vmem:[%s7369_s25 + $0xc0] sm:$0xff]   ;;  %v6917_v54 = vld [vmem:[%s7369_s25 + $0xc8] sm:$0xff]   ;;  %v6919_v56 = vld [vmem:[%s7369_s25 + $0xd0] sm:$0xff]  }
  0x4a   : > { %v6916_v53 = vld [vmem:[%s7369_s25 + $0x4c0] sm:$0xff]   ;;  %v6918_v55 = vld [vmem:[%s7369_s25 + $0x4c8] sm:$0xff]   ;;  %v6920_v57 = vld [vmem:[%s7369_s25 + $0x4d0] sm:$0xff]  }
  0x4b   : > { %v6921_v58 = vld [vmem:[%s7369_s25 + $0xd8] sm:$0xff]   ;;  %v6923_v60 = vld [vmem:[%s7369_s25 + $0xe0] sm:$0xff]   ;;  %v6925_v62 = vld [vmem:[%s7369_s25 + $0xe8] sm:$0xff]  }
  0x4c   : > { %v6922_v59 = vld [vmem:[%s7369_s25 + $0x4d8] sm:$0xff]   ;;  %v6924_v61 = vld [vmem:[%s7369_s25 + $0x4e0] sm:$0xff]   ;;  %v6926_v63 = vld [vmem:[%s7369_s25 + $0x4e8] sm:$0xff]  }
  0x4d   : > { %v6927_v0 = vld [vmem:[%s7369_s25 + $0xf0] sm:$0xff]   ;;  %v6929_v2 = vld [vmem:[%s7369_s25 + $0xf8] sm:$0xff]   ;;  %v6931_v4 = vld [vmem:[%s7369_s25 + $0x100] sm:$0xff]  }
  0x4e   : > { %v6928_v1 = vld [vmem:[%s7369_s25 + $0x4f0] sm:$0xff]   ;;  %v6930_v3 = vld [vmem:[%s7369_s25 + $0x4f8] sm:$0xff]   ;;  %v6932_v5 = vld [vmem:[%s7369_s25 + $0x500] sm:$0xff]  }
  0x4f   : > { %v6933_v6 = vld [vmem:[%s7369_s25 + $0x108] sm:$0xff]   ;;  %v6935_v8 = vld [vmem:[%s7369_s25 + $0x110] sm:$0xff]   ;;  %v6937_v10 = vld [vmem:[%s7369_s25 + $0x118] sm:$0xff]  }
  0x50   : > { %6289 = vmatmul.mubr.msk.bf16.gmra.mxu0 %vm2017_vm1, %v6877_v14  ;;  %6545 = vmatmul.mubr.msk.bf16.gmra.mxu1 %vm2017_vm1, %v6878_v15  ;;  %v6934_v7 = vld [vmem:[%s7369_s25 + $0x508] sm:$0xff]   ;;  %v6936_v9 = vld [vmem:[%s7369_s25 + $0x510] sm:$0xff]   ;;  %v6938_v11 = vld [vmem:[%s7369_s25 + $0x518] sm:$0xff]  }
  0x51   : > { %6292 = vmatprep.mubr.msk.bf16.mxu0 %vm2017_vm1, %v6879_v16  ;;  %6548 = vmatprep.mubr.msk.bf16.mxu1 %vm2017_vm1, %v6880_v17  ;;  %v6939_v12 = vld [vmem:[%s7369_s25 + $0x120] sm:$0xff]   ;;  %v6941_v14 = vld [vmem:[%s7369_s25 + $0x128] sm:$0xff]   ;;  %v6943_v16 = vld [vmem:[%s7369_s25 + $0x130] sm:$0xff]  }
  0x52   : > { %v6940_v13 = vld [vmem:[%s7369_s25 + $0x520] sm:$0xff]   ;;  %v6942_v15 = vld [vmem:[%s7369_s25 + $0x528] sm:$0xff]   ;;  %v6944_v17 = vld [vmem:[%s7369_s25 + $0x530] sm:$0xff]  }
  0x58   : > { %6293 = vmatmul.mubr.msk.bf16.gmra.mxu0 %vm2017_vm1, %v6881_v18  ;;  %6549 = vmatmul.mubr.msk.bf16.gmra.mxu1 %vm2017_vm1, %v6882_v19  ;;  %v6945_v18 = vld [vmem:[%s7369_s25 + $0x138] sm:$0xff]  }
  0x59   : > { %6296 = vmatprep.mubr.msk.bf16.mxu0 %vm2017_vm1, %v6883_v20  ;;  %6552 = vmatprep.mubr.msk.bf16.mxu1 %vm2017_vm1, %v6884_v21  ;;  %v6946_v19 = vld [vmem:[%s7369_s25 + $0x538] sm:$0xff]   ;;  %v6947_v20 = vld [vmem:[%s7369_s25 + $0x140] sm:$0xff]  }
  0x5a   : > { %v6948_v21 = vld [vmem:[%s7369_s25 + $0x540] sm:$0xff]  }
  0x60   : > { %6297 = vmatmul.mubr.msk.bf16.gmra.mxu0 %vm2017_vm1, %v6885_v22  ;;  %6553 = vmatmul.mubr.msk.bf16.gmra.mxu1 %vm2017_vm1, %v6886_v23  ;;  %v6949_v22 = vld [vmem:[%s7369_s25 + $0x148] sm:$0xff]  }
  0x61   : > { %6300 = vmatprep.mubr.msk.bf16.mxu0 %vm2017_vm1, %v6887_v24  ;;  %6556 = vmatprep.mubr.msk.bf16.mxu1 %vm2017_vm1, %v6888_v25  ;;  %v6950_v23 = vld [vmem:[%s7369_s25 + $0x548] sm:$0xff]   ;;  %v6951_v24 = vld [vmem:[%s7369_s25 + $0x150] sm:$0xff]  }
  0x62   : > { %v6952_v25 = vld [vmem:[%s7369_s25 + $0x550] sm:$0xff]  }
  0x68   : > { %6301 = vmatmul.mubr.msk.bf16.gmra.mxu0 %vm2017_vm1, %v6889_v26  ;;  %6557 = vmatmul.mubr.msk.bf16.gmra.mxu1 %vm2017_vm1, %v6890_v27  ;;  %v6953_v26 = vld [vmem:[%s7369_s25 + $0x158] sm:$0xff]  }
  0x69   : > { %6304 = vmatprep.mubr.msk.bf16.mxu0 %vm2017_vm1, %v6891_v28  ;;  %6560 = vmatprep.mubr.msk.bf16.mxu1 %vm2017_vm1, %v6892_v29  ;;  %v6954_v27 = vld [vmem:[%s7369_s25 + $0x558] sm:$0xff]   ;;  %v6955_v28 = vld [vmem:[%s7369_s25 + $0x160] sm:$0xff]  }
  0x6a   : > { %v6956_v29 = vld [vmem:[%s7369_s25 + $0x560] sm:$0xff]  }
  0x70   : > { %6305 = vmatmul.mubr.msk.bf16.gmra.mxu0 %vm2017_vm1, %v6893_v30  ;;  %6561 = vmatmul.mubr.msk.bf16.gmra.mxu1 %vm2017_vm1, %v6894_v31  ;;  %v6957_v30 = vld [vmem:[%s7369_s25 + $0x168] sm:$0xff]  }
  0x71   : > { %6308 = vmatprep.mubr.msk.bf16.mxu0 %vm2017_vm1, %v6895_v32  ;;  %6564 = vmatprep.mubr.msk.bf16.mxu1 %vm2017_vm1, %v6896_v33  ;;  %v6958_v31 = vld [vmem:[%s7369_s25 + $0x568] sm:$0xff]   ;;  %v6959_v32 = vld [vmem:[%s7369_s25 + $0x170] sm:$0xff]  }
  0x72   : > { %v6960_v33 = vld [vmem:[%s7369_s25 + $0x570] sm:$0xff]  }
  0x78   : > { %6309 = vmatmul.mubr.msk.bf16.gmra.mxu0 %vm2017_vm1, %v6897_v34  ;;  %6565 = vmatmul.mubr.msk.bf16.gmra.mxu1 %vm2017_vm1, %v6898_v35  ;;  %v6961_v34 = vld [vmem:[%s7369_s25 + $0x178] sm:$0xff]  }
  0x79   : > { %6312 = vmatprep.mubr.msk.bf16.mxu0 %vm2017_vm1, %v6899_v36  ;;  %6568 = vmatprep.mubr.msk.bf16.mxu1 %vm2017_vm1, %v6900_v37  ;;  %v6962_v35 = vld [vmem:[%s7369_s25 + $0x578] sm:$0xff]   ;;  %v6963_v36 = vld [vmem:[%s7369_s25 + $0x180] sm:$0xff]  }
  0x7a   : > { %v6964_v37 = vld [vmem:[%s7369_s25 + $0x580] sm:$0xff]  }
  0x80   : > { %6313 = vmatmul.mubr.msk.bf16.gmra.mxu0 %vm2017_vm1, %v6901_v38  ;;  %6569 = vmatmul.mubr.msk.bf16.gmra.mxu1 %vm2017_vm1, %v6902_v39  ;;  %v6965_v38 = vld [vmem:[%s7369_s25 + $0x188] sm:$0xff]  }
  0x81   : > { %6316 = vmatprep.mubr.msk.bf16.mxu0 %vm2017_vm1, %v6903_v40  ;;  %6572 = vmatprep.mubr.msk.bf16.mxu1 %vm2017_vm1, %v6904_v41  ;;  %v6966_v39 = vld [vmem:[%s7369_s25 + $0x588] sm:$0xff]   ;;  %v6967_v40 = vld [vmem:[%s7369_s25 + $0x190] sm:$0xff]  }
  0x82   : > { %v6968_v41 = vld [vmem:[%s7369_s25 + $0x590] sm:$0xff]  }
  0x88   : > { %6317 = vmatmul.mubr.msk.bf16.gmra.mxu0 %vm2017_vm1, %v6905_v42  ;;  %6573 = vmatmul.mubr.msk.bf16.gmra.mxu1 %vm2017_vm1, %v6906_v43  ;;  %v7574_v42 = vld [vmem:[#allocation5] ss:$0 sm:$0xff] }
  0x89   : > { %6320 = vmatprep.mubr.msk.bf16.mxu0 %vm2017_vm1, %v6907_v44  ;;  %6576 = vmatprep.mubr.msk.bf16.mxu1 %vm2017_vm1, %v6908_v45 }
  0x90   : > { %6321 = vmatmul.mubr.msk.bf16.gmra.mxu0 %vm2017_vm1, %v6909_v46  ;;  %6577 = vmatmul.mubr.msk.bf16.gmra.mxu1 %vm2017_vm1, %v6910_v47 }
  0x91   : > { %6324 = vmatprep.mubr.msk.bf16.mxu0 %vm2017_vm1, %v6911_v48  ;;  %6580 = vmatprep.mubr.msk.bf16.mxu1 %vm2017_vm1, %v6912_v49  ;;  %v6969_v49 = vld [vmem:[%s7369_s25 + $0x198] sm:$0xff]  }
  0x98   : > { %6325 = vmatmul.mubr.msk.bf16.gmra.mxu0 %vm2017_vm1, %v6913_v50  ;;  %6581 = vmatmul.mubr.msk.bf16.gmra.mxu1 %vm2017_vm1, %v6914_v51  ;;  %v6970_v50 = vld [vmem:[%s7369_s25 + $0x598] sm:$0xff]  }
  0x99   : > { %6328 = vmatprep.mubr.msk.bf16.mxu0 %vm2017_vm1, %v6915_v52  ;;  %6584 = vmatprep.mubr.msk.bf16.mxu1 %vm2017_vm1, %v6916_v53 }
  0xa0   : > { %6329 = vmatmul.mubr.msk.bf16.gmra.mxu0 %vm2017_vm1, %v6917_v54  ;;  %6585 = vmatmul.mubr.msk.bf16.gmra.mxu1 %vm2017_vm1, %v6918_v55 }
  0xa1   : > { %6332 = vmatprep.mubr.msk.bf16.mxu0 %vm2017_vm1, %v6919_v56  ;;  %6588 = vmatprep.mubr.msk.bf16.mxu1 %vm2017_vm1, %v6920_v57  ;;  %v6971_v57 = vld [vmem:[%s7369_s25 + $0x1a0] sm:$0xff]  }
  0xa8   : > { %6333 = vmatmul.mubr.msk.bf16.gmra.mxu0 %vm2017_vm1, %v6921_v58  ;;  %6589 = vmatmul.mubr.msk.bf16.gmra.mxu1 %vm2017_vm1, %v6922_v59  ;;  %v6972_v58 = vld [vmem:[%s7369_s25 + $0x5a0] sm:$0xff]  }
  0xa9   : > { %6336 = vmatprep.mubr.msk.bf16.mxu0 %vm2017_vm1, %v6923_v60  ;;  %6592 = vmatprep.mubr.msk.bf16.mxu1 %vm2017_vm1, %v6924_v61 }
  0xb0   : > { %6337 = vmatmul.mubr.msk.bf16.gmra.mxu0 %vm2017_vm1, %v6925_v62  ;;  %6593 = vmatmul.mubr.msk.bf16.gmra.mxu1 %vm2017_vm1, %v6926_v63 }
  0xb1   : > { %6340 = vmatprep.mubr.msk.bf16.mxu0 %vm2017_vm1, %v6927_v0  ;;  %6596 = vmatprep.mubr.msk.bf16.mxu1 %vm2017_vm1, %v6928_v1 }
  0xb8   : > { %6341 = vmatmul.mubr.msk.bf16.gmra.mxu0 %vm2017_vm1, %v6929_v2  ;;  %6597 = vmatmul.mubr.msk.bf16.gmra.mxu1 %vm2017_vm1, %v6930_v3 }
  0xb9   : > { %6344 = vmatprep.mubr.msk.bf16.mxu0 %vm2017_vm1, %v6931_v4  ;;  %6600 = vmatprep.mubr.msk.bf16.mxu1 %vm2017_vm1, %v6932_v5  ;;  %v6973_v5 = vld [vmem:[%s7369_s25 + $0x1a8] sm:$0xff]  }
  0xc0   : > { %6345 = vmatmul.mubr.msk.bf16.gmra.mxu0 %vm2017_vm1, %v6933_v6  ;;  %6601 = vmatmul.mubr.msk.bf16.gmra.mxu1 %vm2017_vm1, %v6934_v7  ;;  %v6974_v6 = vld [vmem:[%s7369_s25 + $0x5a8] sm:$0xff]  }
  0xc1   : > { %6348 = vmatprep.mubr.msk.bf16.mxu0 %vm2017_vm1, %v6935_v8  ;;  %6604 = vmatprep.mubr.msk.bf16.mxu1 %vm2017_vm1, %v6936_v9 }
  0xc8   : > { %6349 = vmatmul.mubr.msk.bf16.gmra.mxu0 %vm2017_vm1, %v6937_v10  ;;  %6605 = vmatmul.mubr.msk.bf16.gmra.mxu1 %vm2017_vm1, %v6938_v11 }
  0xc9   : > { %6352 = vmatprep.mubr.msk.bf16.mxu0 %vm2017_vm1, %v6939_v12  ;;  %6608 = vmatprep.mubr.msk.bf16.mxu1 %vm2017_vm1, %v6940_v13  ;;  %v6975_v13 = vld [vmem:[%s7369_s25 + $0x1b0] sm:$0xff]  }
  0xd0   : > { %6353 = vmatmul.mubr.msk.bf16.gmra.mxu0 %vm2017_vm1, %v6941_v14  ;;  %6609 = vmatmul.mubr.msk.bf16.gmra.mxu1 %vm2017_vm1, %v6942_v15  ;;  %v6976_v14 = vld [vmem:[%s7369_s25 + $0x5b0] sm:$0xff]  }
  0xd1   : > { %6356 = vmatprep.mubr.msk.bf16.mxu0 %vm2017_vm1, %v6943_v16  ;;  %6612 = vmatprep.mubr.msk.bf16.mxu1 %vm2017_vm1, %v6944_v17 }
  0xd8   : > { %6357 = vmatmul.mubr.msk.bf16.gmra.mxu0 %vm2017_vm1, %v6945_v18  ;;  %6613 = vmatmul.mubr.msk.bf16.gmra.mxu1 %vm2017_vm1, %v6946_v19 }
  0xd9   : > { %6360 = vmatprep.mubr.msk.bf16.mxu0 %vm2017_vm1, %v6947_v20  ;;  %6616 = vmatprep.mubr.msk.bf16.mxu1 %vm2017_vm1, %v6948_v21 }
  0xe0   : > { %6361 = vmatmul.mubr.msk.bf16.gmra.mxu0 %vm2017_vm1, %v6949_v22  ;;  %6617 = vmatmul.mubr.msk.bf16.gmra.mxu1 %vm2017_vm1, %v6950_v23 }
  0xe1   : > { %6364 = vmatprep.mubr.msk.bf16.mxu0 %vm2017_vm1, %v6951_v24  ;;  %6620 = vmatprep.mubr.msk.bf16.mxu1 %vm2017_vm1, %v6952_v25  ;;  %v6977_v25 = vld [vmem:[%s7369_s25 + $0x1b8] sm:$0xff]  }
  0xe8   : > { %6365 = vmatmul.mubr.msk.bf16.gmra.mxu0 %vm2017_vm1, %v6953_v26  ;;  %6621 = vmatmul.mubr.msk.bf16.gmra.mxu1 %vm2017_vm1, %v6954_v27  ;;  %v6978_v26 = vld [vmem:[%s7369_s25 + $0x5b8] sm:$0xff]  }
  0xe9   : > { %6368 = vmatprep.mubr.msk.bf16.mxu0 %vm2017_vm1, %v6955_v28  ;;  %6624 = vmatprep.mubr.msk.bf16.mxu1 %vm2017_vm1, %v6956_v29 }
  0xf0   : > { %6369 = vmatmul.mubr.msk.bf16.gmra.mxu0 %vm2017_vm1, %v6957_v30  ;;  %6625 = vmatmul.mubr.msk.bf16.gmra.mxu1 %vm2017_vm1, %v6958_v31 }
  0xf1   : > { %6372 = vmatprep.mubr.msk.bf16.mxu0 %vm2017_vm1, %v6959_v32  ;;  %6628 = vmatprep.mubr.msk.bf16.mxu1 %vm2017_vm1, %v6960_v33  ;;  %v6979_v33 = vld [vmem:[%s7369_s25 + $0x1c0] sm:$0xff]  }
  0xf8   : > { %6373 = vmatmul.mubr.msk.bf16.gmra.mxu0 %vm2017_vm1, %v6961_v34  ;;  %6629 = vmatmul.mubr.msk.bf16.gmra.mxu1 %vm2017_vm1, %v6962_v35  ;;  %v6980_v34 = vld [vmem:[%s7369_s25 + $0x5c0] sm:$0xff]  }
  0xf9   : > { %6376 = vmatprep.mubr.msk.bf16.mxu0 %vm2017_vm1, %v6963_v36  ;;  %6632 = vmatprep.mubr.msk.bf16.mxu1 %vm2017_vm1, %v6964_v37 }
 0x100   : > { %v6282_v43 = vpop.f32.mrf.mxu0  ;;  %6377 = vmatmul.mubr.msk.bf16.gmra.mxu0 %vm2017_vm1, %v6965_v38  ;;  %v6538_v44 = vpop.f32.mrf.mxu1  ;;  %6633 = vmatmul.mubr.msk.bf16.gmra.mxu1 %vm2017_vm1, %v6966_v39 }
 0x101   : > { %v2833_v45 = vadd.f32 %v6282_v43, %v7574_v42  ;;  %v3857_v46 = vadd.f32 %v6538_v44, %v7574_v42  ;;  %6380 = vmatprep.mubr.msk.bf16.mxu0 %vm2017_vm1, %v6967_v40  ;;  %6636 = vmatprep.mubr.msk.bf16.mxu1 %vm2017_vm1, %v6968_v41 }
 0x102   : > { %v2824_v47 = vpop.f32.mrf.mxu0  ;;  %v3848_v48 = vpop.f32.mrf.mxu1 }
 0x103   : > { %4873 = vst [vmem:[%s7584_s28 + $0x10] sm:$0xff] %v2833_v45  ;;  %5129 = vst [vmem:[%s7584_s28 + $0x810] sm:$0xff] %v3857_v46  ;;  %v2825_v51 = vadd.f32 %v7574_v42, %v2824_v47  ;;  %v3849_v52 = vadd.f32 %v7574_v42, %v3848_v48 }
 0x104   : > { %v6283_v53 = vpop.f32.mrf.mxu0  ;;  %v6539_v54 = vpop.f32.mrf.mxu1 }
 0x105   : > { %4871 = vst [vmem:[%s7584_s28] sm:$0xff] %v2825_v51  ;;  %5127 = vst [vmem:[%s7584_s28 + $0x800] sm:$0xff] %v3849_v52  ;;  %v2836_v55 = vadd.f32 %v6283_v53, %v7574_v42  ;;  %v3860_v56 = vadd.f32 %v6539_v54, %v7574_v42  ;;  %v6982_v51 = vld [vmem:[%s7369_s25 + $0x5c8] sm:$0xff]   ;;  %v6983_v54 = vld [vmem:[%s7369_s25 + $0x1d0] sm:$0xff]  }
 0x106   : > { %v2827_v59 = vpop.f32.mrf.mxu0  ;;  %v3851_v60 = vpop.f32.mrf.mxu1 }
 0x107   : > { %4874 = vst [vmem:[%s7584_s28 + $0x18] sm:$0xff] %v2836_v55  ;;  %5130 = vst [vmem:[%s7584_s28 + $0x818] sm:$0xff] %v3860_v56  ;;  %v2828_v61 = vadd.f32 %v7574_v42, %v2827_v59  ;;  %v3852_v62 = vadd.f32 %v7574_v42, %v3851_v60  ;;  %v6984_v55 = vld [vmem:[%s7369_s25 + $0x5d0] sm:$0xff]  }
 0x108   : > { %v6286_v63 = vpop.f32.mrf.mxu0  ;;  %6381 = vmatmul.mubr.msk.bf16.gmra.mxu0 %vm2017_vm1, %v6969_v49  ;;  %v6542_v0 = vpop.f32.mrf.mxu1  ;;  %6637 = vmatmul.mubr.msk.bf16.gmra.mxu1 %vm2017_vm1, %v6970_v50  ;;  %v6981_v50 = vld [vmem:[%s7369_s25 + $0x1c8] sm:$0xff]  }
 0x109   : > { %4872 = vst [vmem:[%s7584_s28 + $0x8] sm:$0xff] %v2828_v61  ;;  %5128 = vst [vmem:[%s7584_s28 + $0x808] sm:$0xff] %v3852_v62  ;;  %v2849_v1 = vadd.f32 %v6286_v63, %v7574_v42  ;;  %v3873_v2 = vadd.f32 %v6542_v0, %v7574_v42  ;;  %6384 = vmatprep.mubr.msk.bf16.mxu0 %vm2017_vm1, %v6971_v57  ;;  %6640 = vmatprep.mubr.msk.bf16.mxu1 %vm2017_vm1, %v6972_v58 }
 0x10a   : > { %v2840_v3 = vpop.f32.mrf.mxu0  ;;  %v3864_v4 = vpop.f32.mrf.mxu1 }
 0x10b   : > { %4877 = vst [vmem:[%s7584_s28 + $0x30] sm:$0xff] %v2849_v1  ;;  %5133 = vst [vmem:[%s7584_s28 + $0x830] sm:$0xff] %v3873_v2  ;;  %v2841_v7 = vadd.f32 %v7574_v42, %v2840_v3  ;;  %v3865_v8 = vadd.f32 %v7574_v42, %v3864_v4 }
 0x10c   : > { %v6287_v9 = vpop.f32.mrf.mxu0  ;;  %v6543_v10 = vpop.f32.mrf.mxu1 }
 0x10d   : > { %4875 = vst [vmem:[%s7584_s28 + $0x20] sm:$0xff] %v2841_v7  ;;  %5131 = vst [vmem:[%s7584_s28 + $0x820] sm:$0xff] %v3865_v8  ;;  %v2852_v11 = vadd.f32 %v6287_v9, %v7574_v42  ;;  %v3876_v12 = vadd.f32 %v6543_v10, %v7574_v42  ;;  %v6986_v7 = vld [vmem:[%s7369_s25 + $0x5d8] sm:$0xff]   ;;  %v6987_v10 = vld [vmem:[%s7369_s25 + $0x1e0] sm:$0xff]  }
 0x10e   : > { %v2843_v15 = vpop.f32.mrf.mxu0  ;;  %v3867_v16 = vpop.f32.mrf.mxu1 }
 0x10f   : > { %4878 = vst [vmem:[%s7584_s28 + $0x38] sm:$0xff] %v2852_v11  ;;  %5134 = vst [vmem:[%s7584_s28 + $0x838] sm:$0xff] %v3876_v12  ;;  %v2844_v17 = vadd.f32 %v7574_v42, %v2843_v15  ;;  %v3868_v18 = vadd.f32 %v7574_v42, %v3867_v16  ;;  %v6988_v11 = vld [vmem:[%s7369_s25 + $0x5e0] sm:$0xff]  }
 0x110   : > { %v6290_v19 = vpop.f32.mrf.mxu0  ;;  %6385 = vmatmul.mubr.msk.bf16.gmra.mxu0 %vm2017_vm1, %v6973_v5  ;;  %v6546_v20 = vpop.f32.mrf.mxu1  ;;  %6641 = vmatmul.mubr.msk.bf16.gmra.mxu1 %vm2017_vm1, %v6974_v6  ;;  %v6985_v6 = vld [vmem:[%s7369_s25 + $0x1d8] sm:$0xff]  }
 0x111   : > { %4876 = vst [vmem:[%s7584_s28 + $0x28] sm:$0xff] %v2844_v17  ;;  %5132 = vst [vmem:[%s7584_s28 + $0x828] sm:$0xff] %v3868_v18  ;;  %v2865_v21 = vadd.f32 %v6290_v19, %v7574_v42  ;;  %v3889_v22 = vadd.f32 %v6546_v20, %v7574_v42  ;;  %6388 = vmatprep.mubr.msk.bf16.mxu0 %vm2017_vm1, %v6975_v13  ;;  %6644 = vmatprep.mubr.msk.bf16.mxu1 %vm2017_vm1, %v6976_v14 }
 0x112   : > { %v2856_v23 = vpop.f32.mrf.mxu0  ;;  %v3880_v24 = vpop.f32.mrf.mxu1 }
 0x113   : > { %4881 = vst [vmem:[%s7584_s28 + $0x50] sm:$0xff] %v2865_v21  ;;  %5137 = vst [vmem:[%s7584_s28 + $0x850] sm:$0xff] %v3889_v22  ;;  %v2857_v27 = vadd.f32 %v7574_v42, %v2856_v23  ;;  %v3881_v28 = vadd.f32 %v7574_v42, %v3880_v24 }
 0x114   : > { %v6291_v29 = vpop.f32.mrf.mxu0  ;;  %v6547_v30 = vpop.f32.mrf.mxu1 }
 0x115   : > { %4879 = vst [vmem:[%s7584_s28 + $0x40] sm:$0xff] %v2857_v27  ;;  %5135 = vst [vmem:[%s7584_s28 + $0x840] sm:$0xff] %v3881_v28  ;;  %v2868_v31 = vadd.f32 %v6291_v29, %v7574_v42  ;;  %v3892_v32 = vadd.f32 %v6547_v30, %v7574_v42  ;;  %v6990_v27 = vld [vmem:[%s7369_s25 + $0x5e8] sm:$0xff]   ;;  %v6991_v30 = vld [vmem:[%s7369_s25 + $0x1f0] sm:$0xff]  }
 0x116   : > { %v2859_v35 = vpop.f32.mrf.mxu0  ;;  %v3883_v36 = vpop.f32.mrf.mxu1 }
 0x117   : > { %4882 = vst [vmem:[%s7584_s28 + $0x58] sm:$0xff] %v2868_v31  ;;  %5138 = vst [vmem:[%s7584_s28 + $0x858] sm:$0xff] %v3892_v32  ;;  %v2860_v37 = vadd.f32 %v7574_v42, %v2859_v35  ;;  %v3884_v38 = vadd.f32 %v7574_v42, %v3883_v36  ;;  %v6992_v31 = vld [vmem:[%s7369_s25 + $0x5f0] sm:$0xff]  }
 0x118   : > { %v6294_v39 = vpop.f32.mrf.mxu0  ;;  %6389 = vmatmul.mubr.msk.bf16.gmra.mxu0 %vm2017_vm1, %v6977_v25  ;;  %v6550_v40 = vpop.f32.mrf.mxu1  ;;  %6645 = vmatmul.mubr.msk.bf16.gmra.mxu1 %vm2017_vm1, %v6978_v26  ;;  %v6989_v26 = vld [vmem:[%s7369_s25 + $0x1e8] sm:$0xff]  }
 0x119   : > { %4880 = vst [vmem:[%s7584_s28 + $0x48] sm:$0xff] %v2860_v37  ;;  %5136 = vst [vmem:[%s7584_s28 + $0x848] sm:$0xff] %v3884_v38  ;;  %v2881_v41 = vadd.f32 %v6294_v39, %v7574_v42  ;;  %v3905_v43 = vadd.f32 %v6550_v40, %v7574_v42  ;;  %6392 = vmatprep.mubr.msk.bf16.mxu0 %vm2017_vm1, %v6979_v33  ;;  %6648 = vmatprep.mubr.msk.bf16.mxu1 %vm2017_vm1, %v6980_v34 }
 0x11a   : > { %v2872_v44 = vpop.f32.mrf.mxu0  ;;  %v3896_v45 = vpop.f32.mrf.mxu1 }
 0x11b   : > { %4885 = vst [vmem:[%s7584_s28 + $0x70] sm:$0xff] %v2881_v41  ;;  %5141 = vst [vmem:[%s7584_s28 + $0x870] sm:$0xff] %v3905_v43  ;;  %v2873_v46 = vadd.f32 %v7574_v42, %v2872_v44  ;;  %v3897_v47 = vadd.f32 %v7574_v42, %v3896_v45 }
 0x11c   : > { %v6295_v48 = vpop.f32.mrf.mxu0  ;;  %v6551_v49 = vpop.f32.mrf.mxu1 }
 0x11d   : > { %4883 = vst [vmem:[%s7584_s28 + $0x60] sm:$0xff] %v2873_v46  ;;  %5139 = vst [vmem:[%s7584_s28 + $0x860] sm:$0xff] %v3897_v47  ;;  %v2884_v52 = vadd.f32 %v6295_v48, %v7574_v42  ;;  %v3908_v53 = vadd.f32 %v6551_v49, %v7574_v42  ;;  %v6993_v47 = vld [vmem:[%s7369_s25 + $0x1f8] sm:$0xff]  }
 0x11e   : > { %v2875_v56 = vpop.f32.mrf.mxu0  ;;  %v3899_v57 = vpop.f32.mrf.mxu1  ;;  %v6994_v48 = vld [vmem:[%s7369_s25 + $0x5f8] sm:$0xff]  }
 0x11f   : > { %4886 = vst [vmem:[%s7584_s28 + $0x78] sm:$0xff] %v2884_v52  ;;  %5142 = vst [vmem:[%s7584_s28 + $0x878] sm:$0xff] %v3908_v53  ;;  %v2876_v58 = vadd.f32 %v7574_v42, %v2875_v56  ;;  %v3900_v59 = vadd.f32 %v7574_v42, %v3899_v57  ;;  %v6996_v52 = vld [vmem:[%s7369_s25 + $0x600] sm:$0xff]  }
 0x120   : > { %v6298_v60 = vpop.f32.mrf.mxu0  ;;  %6393 = vmatmul.mubr.msk.bf16.gmra.mxu0 %vm2017_vm1, %v6981_v50  ;;  %v6554_v61 = vpop.f32.mrf.mxu1  ;;  %6649 = vmatmul.mubr.msk.bf16.gmra.mxu1 %vm2017_vm1, %v6982_v51  ;;  %v6995_v51 = vld [vmem:[%s7369_s25 + $0x200] sm:$0xff]  }
 0x121   : > { %4884 = vst [vmem:[%s7584_s28 + $0x68] sm:$0xff] %v2876_v58  ;;  %5140 = vst [vmem:[%s7584_s28 + $0x868] sm:$0xff] %v3900_v59  ;;  %v2897_v62 = vadd.f32 %v6298_v60, %v7574_v42  ;;  %v3921_v63 = vadd.f32 %v6554_v61, %v7574_v42  ;;  %6396 = vmatprep.mubr.msk.bf16.mxu0 %vm2017_vm1, %v6983_v54  ;;  %6652 = vmatprep.mubr.msk.bf16.mxu1 %vm2017_vm1, %v6984_v55 }
 0x122   : > { %v2888_v0 = vpop.f32.mrf.mxu0  ;;  %v3912_v1 = vpop.f32.mrf.mxu1 }
 0x123   : > { %4889 = vst [vmem:[%s7584_s28 + $0x90] sm:$0xff] %v2897_v62  ;;  %5145 = vst [vmem:[%s7584_s28 + $0x890] sm:$0xff] %v3921_v63  ;;  %v2889_v2 = vadd.f32 %v7574_v42, %v2888_v0  ;;  %v3913_v3 = vadd.f32 %v7574_v42, %v3912_v1 }
 0x124   : > { %v6299_v4 = vpop.f32.mrf.mxu0  ;;  %v6555_v5 = vpop.f32.mrf.mxu1 }
 0x125   : > { %4887 = vst [vmem:[%s7584_s28 + $0x80] sm:$0xff] %v2889_v2  ;;  %5143 = vst [vmem:[%s7584_s28 + $0x880] sm:$0xff] %v3913_v3  ;;  %v2900_v8 = vadd.f32 %v6299_v4, %v7574_v42  ;;  %v3924_v9 = vadd.f32 %v6555_v5, %v7574_v42  ;;  %v6997_v3 = vld [vmem:[%s7369_s25 + $0x208] sm:$0xff]  }
 0x126   : > { %v2891_v12 = vpop.f32.mrf.mxu0  ;;  %v3915_v13 = vpop.f32.mrf.mxu1  ;;  %v6998_v4 = vld [vmem:[%s7369_s25 + $0x608] sm:$0xff]  }
 0x127   : > { %4890 = vst [vmem:[%s7584_s28 + $0x98] sm:$0xff] %v2900_v8  ;;  %5146 = vst [vmem:[%s7584_s28 + $0x898] sm:$0xff] %v3924_v9  ;;  %v2892_v14 = vadd.f32 %v7574_v42, %v2891_v12  ;;  %v3916_v15 = vadd.f32 %v7574_v42, %v3915_v13  ;;  %v7000_v8 = vld [vmem:[%s7369_s25 + $0x610] sm:$0xff]  }
 0x128   : > { %v6302_v16 = vpop.f32.mrf.mxu0  ;;  %6397 = vmatmul.mubr.msk.bf16.gmra.mxu0 %vm2017_vm1, %v6985_v6  ;;  %v6558_v17 = vpop.f32.mrf.mxu1  ;;  %6653 = vmatmul.mubr.msk.bf16.gmra.mxu1 %vm2017_vm1, %v6986_v7  ;;  %v6999_v7 = vld [vmem:[%s7369_s25 + $0x210] sm:$0xff]  }
 0x129   : > { %4888 = vst [vmem:[%s7584_s28 + $0x88] sm:$0xff] %v2892_v14  ;;  %5144 = vst [vmem:[%s7584_s28 + $0x888] sm:$0xff] %v3916_v15  ;;  %v2913_v18 = vadd.f32 %v6302_v16, %v7574_v42  ;;  %v3937_v19 = vadd.f32 %v6558_v17, %v7574_v42  ;;  %6400 = vmatprep.mubr.msk.bf16.mxu0 %vm2017_vm1, %v6987_v10  ;;  %6656 = vmatprep.mubr.msk.bf16.mxu1 %vm2017_vm1, %v6988_v11 }
 0x12a   : > { %v2904_v20 = vpop.f32.mrf.mxu0  ;;  %v3928_v21 = vpop.f32.mrf.mxu1 }
 0x12b   : > { %4893 = vst [vmem:[%s7584_s28 + $0xb0] sm:$0xff] %v2913_v18  ;;  %5149 = vst [vmem:[%s7584_s28 + $0x8b0] sm:$0xff] %v3937_v19  ;;  %v2905_v22 = vadd.f32 %v7574_v42, %v2904_v20  ;;  %v3929_v23 = vadd.f32 %v7574_v42, %v3928_v21 }
 0x12c   : > { %v6303_v24 = vpop.f32.mrf.mxu0  ;;  %v6559_v25 = vpop.f32.mrf.mxu1 }
 0x12d   : > { %4891 = vst [vmem:[%s7584_s28 + $0xa0] sm:$0xff] %v2905_v22  ;;  %5147 = vst [vmem:[%s7584_s28 + $0x8a0] sm:$0xff] %v3929_v23  ;;  %v2916_v28 = vadd.f32 %v6303_v24, %v7574_v42  ;;  %v3940_v29 = vadd.f32 %v6559_v25, %v7574_v42  ;;  %v7001_v23 = vld [vmem:[%s7369_s25 + $0x218] sm:$0xff]  }
 0x12e   : > { %v2907_v32 = vpop.f32.mrf.mxu0  ;;  %v3931_v33 = vpop.f32.mrf.mxu1  ;;  %v7002_v24 = vld [vmem:[%s7369_s25 + $0x618] sm:$0xff]  }
 0x12f   : > { %4894 = vst [vmem:[%s7584_s28 + $0xb8] sm:$0xff] %v2916_v28  ;;  %5150 = vst [vmem:[%s7584_s28 + $0x8b8] sm:$0xff] %v3940_v29  ;;  %v2908_v34 = vadd.f32 %v7574_v42, %v2907_v32  ;;  %v3932_v35 = vadd.f32 %v7574_v42, %v3931_v33  ;;  %v7004_v28 = vld [vmem:[%s7369_s25 + $0x620] sm:$0xff]  }
 0x130   : > { %v6306_v36 = vpop.f32.mrf.mxu0  ;;  %6401 = vmatmul.mubr.msk.bf16.gmra.mxu0 %vm2017_vm1, %v6989_v26  ;;  %v6562_v37 = vpop.f32.mrf.mxu1  ;;  %6657 = vmatmul.mubr.msk.bf16.gmra.mxu1 %vm2017_vm1, %v6990_v27  ;;  %v7003_v27 = vld [vmem:[%s7369_s25 + $0x220] sm:$0xff]  }
 0x131   : > { %4892 = vst [vmem:[%s7584_s28 + $0xa8] sm:$0xff] %v2908_v34  ;;  %5148 = vst [vmem:[%s7584_s28 + $0x8a8] sm:$0xff] %v3932_v35  ;;  %v2929_v38 = vadd.f32 %v6306_v36, %v7574_v42  ;;  %v3953_v39 = vadd.f32 %v6562_v37, %v7574_v42  ;;  %6404 = vmatprep.mubr.msk.bf16.mxu0 %vm2017_vm1, %v6991_v30  ;;  %6660 = vmatprep.mubr.msk.bf16.mxu1 %vm2017_vm1, %v6992_v31 }
 0x132   : > { %v2920_v40 = vpop.f32.mrf.mxu0  ;;  %v3944_v41 = vpop.f32.mrf.mxu1 }
 0x133   : > { %4897 = vst [vmem:[%s7584_s28 + $0xd0] sm:$0xff] %v2929_v38  ;;  %5153 = vst [vmem:[%s7584_s28 + $0x8d0] sm:$0xff] %v3953_v39  ;;  %v2921_v43 = vadd.f32 %v7574_v42, %v2920_v40  ;;  %v3945_v44 = vadd.f32 %v7574_v42, %v3944_v41 }
 0x134   : > { %v6307_v45 = vpop.f32.mrf.mxu0  ;;  %v6563_v46 = vpop.f32.mrf.mxu1 }
 0x135   : > { %4895 = vst [vmem:[%s7584_s28 + $0xc0] sm:$0xff] %v2921_v43  ;;  %5151 = vst [vmem:[%s7584_s28 + $0x8c0] sm:$0xff] %v3945_v44  ;;  %v2932_v49 = vadd.f32 %v6307_v45, %v7574_v42  ;;  %v3956_v50 = vadd.f32 %v6563_v46, %v7574_v42  ;;  %v7005_v44 = vld [vmem:[%s7369_s25 + $0x228] sm:$0xff]  }
 0x136   : > { %v2923_v53 = vpop.f32.mrf.mxu0  ;;  %v3947_v54 = vpop.f32.mrf.mxu1  ;;  %v7006_v45 = vld [vmem:[%s7369_s25 + $0x628] sm:$0xff]  }
 0x137   : > { %4898 = vst [vmem:[%s7584_s28 + $0xd8] sm:$0xff] %v2932_v49  ;;  %5154 = vst [vmem:[%s7584_s28 + $0x8d8] sm:$0xff] %v3956_v50  ;;  %v2924_v55 = vadd.f32 %v7574_v42, %v2923_v53  ;;  %v3948_v56 = vadd.f32 %v7574_v42, %v3947_v54  ;;  %v7008_v49 = vld [vmem:[%s7369_s25 + $0x630] sm:$0xff]  }
 0x138   : > { %v6310_v57 = vpop.f32.mrf.mxu0  ;;  %6405 = vmatmul.mubr.msk.bf16.gmra.mxu0 %vm2017_vm1, %v6993_v47  ;;  %v6566_v58 = vpop.f32.mrf.mxu1  ;;  %6661 = vmatmul.mubr.msk.bf16.gmra.mxu1 %vm2017_vm1, %v6994_v48  ;;  %v7007_v48 = vld [vmem:[%s7369_s25 + $0x230] sm:$0xff]  }
 0x139   : > { %4896 = vst [vmem:[%s7584_s28 + $0xc8] sm:$0xff] %v2924_v55  ;;  %5152 = vst [vmem:[%s7584_s28 + $0x8c8] sm:$0xff] %v3948_v56  ;;  %v2945_v59 = vadd.f32 %v6310_v57, %v7574_v42  ;;  %v3969_v60 = vadd.f32 %v6566_v58, %v7574_v42  ;;  %6408 = vmatprep.mubr.msk.bf16.mxu0 %vm2017_vm1, %v6995_v51  ;;  %6664 = vmatprep.mubr.msk.bf16.mxu1 %vm2017_vm1, %v6996_v52 }
 0x13a   : > { %v2936_v61 = vpop.f32.mrf.mxu0  ;;  %v3960_v62 = vpop.f32.mrf.mxu1 }
 0x13b   : > { %4901 = vst [vmem:[%s7584_s28 + $0xf0] sm:$0xff] %v2945_v59  ;;  %5157 = vst [vmem:[%s7584_s28 + $0x8f0] sm:$0xff] %v3969_v60  ;;  %v2937_v63 = vadd.f32 %v7574_v42, %v2936_v61  ;;  %v3961_v0 = vadd.f32 %v7574_v42, %v3960_v62 }
 0x13c   : > { %v6311_v1 = vpop.f32.mrf.mxu0  ;;  %v6567_v2 = vpop.f32.mrf.mxu1 }
 0x13d   : > { %4899 = vst [vmem:[%s7584_s28 + $0xe0] sm:$0xff] %v2937_v63  ;;  %5155 = vst [vmem:[%s7584_s28 + $0x8e0] sm:$0xff] %v3961_v0  ;;  %v2948_v5 = vadd.f32 %v6311_v1, %v7574_v42  ;;  %v3972_v6 = vadd.f32 %v6567_v2, %v7574_v42  ;;  %v7009_v0 = vld [vmem:[%s7369_s25 + $0x238] sm:$0xff]  }
 0x13e   : > { %v2939_v9 = vpop.f32.mrf.mxu0  ;;  %v3963_v10 = vpop.f32.mrf.mxu1  ;;  %v7010_v1 = vld [vmem:[%s7369_s25 + $0x638] sm:$0xff]  }
 0x13f   : > { %4902 = vst [vmem:[%s7584_s28 + $0xf8] sm:$0xff] %v2948_v5  ;;  %5158 = vst [vmem:[%s7584_s28 + $0x8f8] sm:$0xff] %v3972_v6  ;;  %v2940_v11 = vadd.f32 %v7574_v42, %v2939_v9  ;;  %v3964_v12 = vadd.f32 %v7574_v42, %v3963_v10  ;;  %v7012_v5 = vld [vmem:[%s7369_s25 + $0x640] sm:$0xff]  }
 0x140   : > { %v6314_v13 = vpop.f32.mrf.mxu0  ;;  %6409 = vmatmul.mubr.msk.bf16.gmra.mxu0 %vm2017_vm1, %v6997_v3  ;;  %v6570_v14 = vpop.f32.mrf.mxu1  ;;  %6665 = vmatmul.mubr.msk.bf16.gmra.mxu1 %vm2017_vm1, %v6998_v4  ;;  %v7011_v4 = vld [vmem:[%s7369_s25 + $0x240] sm:$0xff]  }
 0x141   : > { %4900 = vst [vmem:[%s7584_s28 + $0xe8] sm:$0xff] %v2940_v11  ;;  %5156 = vst [vmem:[%s7584_s28 + $0x8e8] sm:$0xff] %v3964_v12  ;;  %v2961_v15 = vadd.f32 %v6314_v13, %v7574_v42  ;;  %v3985_v16 = vadd.f32 %v6570_v14, %v7574_v42  ;;  %6412 = vmatprep.mubr.msk.bf16.mxu0 %vm2017_vm1, %v6999_v7  ;;  %6668 = vmatprep.mubr.msk.bf16.mxu1 %vm2017_vm1, %v7000_v8 }
 0x142   : > { %v2952_v17 = vpop.f32.mrf.mxu0  ;;  %v3976_v18 = vpop.f32.mrf.mxu1 }
 0x143   : > { %4905 = vst [vmem:[%s7584_s28 + $0x110] sm:$0xff] %v2961_v15  ;;  %5161 = vst [vmem:[%s7584_s28 + $0x910] sm:$0xff] %v3985_v16  ;;  %v2953_v19 = vadd.f32 %v7574_v42, %v2952_v17  ;;  %v3977_v20 = vadd.f32 %v7574_v42, %v3976_v18 }
 0x144   : > { %v6315_v21 = vpop.f32.mrf.mxu0  ;;  %v6571_v22 = vpop.f32.mrf.mxu1 }
 0x145   : > { %4903 = vst [vmem:[%s7584_s28 + $0x100] sm:$0xff] %v2953_v19  ;;  %5159 = vst [vmem:[%s7584_s28 + $0x900] sm:$0xff] %v3977_v20  ;;  %v2964_v25 = vadd.f32 %v6315_v21, %v7574_v42  ;;  %v3988_v26 = vadd.f32 %v6571_v22, %v7574_v42  ;;  %v7013_v20 = vld [vmem:[%s7369_s25 + $0x248] sm:$0xff]  }
 0x146   : > { %v2955_v29 = vpop.f32.mrf.mxu0  ;;  %v3979_v30 = vpop.f32.mrf.mxu1  ;;  %v7014_v21 = vld [vmem:[%s7369_s25 + $0x648] sm:$0xff]  }
 0x147   : > { %4906 = vst [vmem:[%s7584_s28 + $0x118] sm:$0xff] %v2964_v25  ;;  %5162 = vst [vmem:[%s7584_s28 + $0x918] sm:$0xff] %v3988_v26  ;;  %v2956_v31 = vadd.f32 %v7574_v42, %v2955_v29  ;;  %v3980_v32 = vadd.f32 %v7574_v42, %v3979_v30  ;;  %v7016_v25 = vld [vmem:[%s7369_s25 + $0x650] sm:$0xff]  }
 0x148   : > { %v6318_v33 = vpop.f32.mrf.mxu0  ;;  %6413 = vmatmul.mubr.msk.bf16.gmra.mxu0 %vm2017_vm1, %v7001_v23  ;;  %v6574_v34 = vpop.f32.mrf.mxu1  ;;  %6669 = vmatmul.mubr.msk.bf16.gmra.mxu1 %vm2017_vm1, %v7002_v24  ;;  %v7015_v24 = vld [vmem:[%s7369_s25 + $0x250] sm:$0xff]  }
 0x149   : > { %4904 = vst [vmem:[%s7584_s28 + $0x108] sm:$0xff] %v2956_v31  ;;  %5160 = vst [vmem:[%s7584_s28 + $0x908] sm:$0xff] %v3980_v32  ;;  %v2977_v35 = vadd.f32 %v6318_v33, %v7574_v42  ;;  %v4001_v36 = vadd.f32 %v6574_v34, %v7574_v42  ;;  %6416 = vmatprep.mubr.msk.bf16.mxu0 %vm2017_vm1, %v7003_v27  ;;  %6672 = vmatprep.mubr.msk.bf16.mxu1 %vm2017_vm1, %v7004_v28 }
 0x14a   : > { %v2968_v37 = vpop.f32.mrf.mxu0  ;;  %v3992_v38 = vpop.f32.mrf.mxu1 }
 0x14b   : > { %4909 = vst [vmem:[%s7584_s28 + $0x130] sm:$0xff] %v2977_v35  ;;  %5165 = vst [vmem:[%s7584_s28 + $0x930] sm:$0xff] %v4001_v36  ;;  %v2969_v39 = vadd.f32 %v7574_v42, %v2968_v37  ;;  %v3993_v40 = vadd.f32 %v7574_v42, %v3992_v38 }
 0x14c   : > { %v6319_v41 = vpop.f32.mrf.mxu0  ;;  %v6575_v43 = vpop.f32.mrf.mxu1 }
 0x14d   : > { %4907 = vst [vmem:[%s7584_s28 + $0x120] sm:$0xff] %v2969_v39  ;;  %5163 = vst [vmem:[%s7584_s28 + $0x920] sm:$0xff] %v3993_v40  ;;  %v2980_v46 = vadd.f32 %v6319_v41, %v7574_v42  ;;  %v4004_v47 = vadd.f32 %v6575_v43, %v7574_v42  ;;  %v7017_v40 = vld [vmem:[%s7369_s25 + $0x258] sm:$0xff]  }
 0x14e   : > { %v2971_v50 = vpop.f32.mrf.mxu0  ;;  %v3995_v51 = vpop.f32.mrf.mxu1  ;;  %v7018_v41 = vld [vmem:[%s7369_s25 + $0x658] sm:$0xff]  }
 0x14f   : > { %4910 = vst [vmem:[%s7584_s28 + $0x138] sm:$0xff] %v2980_v46  ;;  %5166 = vst [vmem:[%s7584_s28 + $0x938] sm:$0xff] %v4004_v47  ;;  %v2972_v52 = vadd.f32 %v7574_v42, %v2971_v50  ;;  %v3996_v53 = vadd.f32 %v7574_v42, %v3995_v51  ;;  %v7020_v46 = vld [vmem:[%s7369_s25 + $0x660] sm:$0xff]  }
 0x150   : > { %v6322_v54 = vpop.f32.mrf.mxu0  ;;  %6417 = vmatmul.mubr.msk.bf16.gmra.mxu0 %vm2017_vm1, %v7005_v44  ;;  %v6578_v55 = vpop.f32.mrf.mxu1  ;;  %6673 = vmatmul.mubr.msk.bf16.gmra.mxu1 %vm2017_vm1, %v7006_v45  ;;  %v7019_v45 = vld [vmem:[%s7369_s25 + $0x260] sm:$0xff]  }
 0x151   : > { %4908 = vst [vmem:[%s7584_s28 + $0x128] sm:$0xff] %v2972_v52  ;;  %5164 = vst [vmem:[%s7584_s28 + $0x928] sm:$0xff] %v3996_v53  ;;  %v2993_v56 = vadd.f32 %v6322_v54, %v7574_v42  ;;  %v4017_v57 = vadd.f32 %v6578_v55, %v7574_v42  ;;  %6420 = vmatprep.mubr.msk.bf16.mxu0 %vm2017_vm1, %v7007_v48  ;;  %6676 = vmatprep.mubr.msk.bf16.mxu1 %vm2017_vm1, %v7008_v49 }
 0x152   : > { %v2984_v58 = vpop.f32.mrf.mxu0  ;;  %v4008_v59 = vpop.f32.mrf.mxu1 }
 0x153   : > { %4913 = vst [vmem:[%s7584_s28 + $0x150] sm:$0xff] %v2993_v56  ;;  %5169 = vst [vmem:[%s7584_s28 + $0x950] sm:$0xff] %v4017_v57  ;;  %v2985_v60 = vadd.f32 %v7574_v42, %v2984_v58  ;;  %v4009_v61 = vadd.f32 %v7574_v42, %v4008_v59 }
 0x154   : > { %v6323_v62 = vpop.f32.mrf.mxu0  ;;  %v6579_v63 = vpop.f32.mrf.mxu1 }
 0x155   : > { %4911 = vst [vmem:[%s7584_s28 + $0x140] sm:$0xff] %v2985_v60  ;;  %5167 = vst [vmem:[%s7584_s28 + $0x940] sm:$0xff] %v4009_v61  ;;  %v2996_v2 = vadd.f32 %v6323_v62, %v7574_v42  ;;  %v4020_v3 = vadd.f32 %v6579_v63, %v7574_v42  ;;  %v7021_v61 = vld [vmem:[%s7369_s25 + $0x268] sm:$0xff]  }
 0x156   : > { %v2987_v6 = vpop.f32.mrf.mxu0  ;;  %v4011_v7 = vpop.f32.mrf.mxu1  ;;  %v7022_v62 = vld [vmem:[%s7369_s25 + $0x668] sm:$0xff]  }
 0x157   : > { %4914 = vst [vmem:[%s7584_s28 + $0x158] sm:$0xff] %v2996_v2  ;;  %5170 = vst [vmem:[%s7584_s28 + $0x958] sm:$0xff] %v4020_v3  ;;  %v2988_v8 = vadd.f32 %v7574_v42, %v2987_v6  ;;  %v4012_v9 = vadd.f32 %v7574_v42, %v4011_v7  ;;  %v7024_v2 = vld [vmem:[%s7369_s25 + $0x670] sm:$0xff]  }
 0x158   : > { %v6326_v10 = vpop.f32.mrf.mxu0  ;;  %6421 = vmatmul.mubr.msk.bf16.gmra.mxu0 %vm2017_vm1, %v7009_v0  ;;  %v6582_v11 = vpop.f32.mrf.mxu1  ;;  %6677 = vmatmul.mubr.msk.bf16.gmra.mxu1 %vm2017_vm1, %v7010_v1  ;;  %v7023_v1 = vld [vmem:[%s7369_s25 + $0x270] sm:$0xff]  }
 0x159   : > { %4912 = vst [vmem:[%s7584_s28 + $0x148] sm:$0xff] %v2988_v8  ;;  %5168 = vst [vmem:[%s7584_s28 + $0x948] sm:$0xff] %v4012_v9  ;;  %v3009_v12 = vadd.f32 %v6326_v10, %v7574_v42  ;;  %v4033_v13 = vadd.f32 %v6582_v11, %v7574_v42  ;;  %6424 = vmatprep.mubr.msk.bf16.mxu0 %vm2017_vm1, %v7011_v4  ;;  %6680 = vmatprep.mubr.msk.bf16.mxu1 %vm2017_vm1, %v7012_v5  ;;  %v7910_v5 = vld [vmem:[#allocation5] ss:$0 sm:$0xff] }
 0x15a   : > { %v3000_v14 = vpop.f32.mrf.mxu0  ;;  %v4024_v15 = vpop.f32.mrf.mxu1 }
 0x15b   : > { %4917 = vst [vmem:[%s7584_s28 + $0x170] sm:$0xff] %v3009_v12  ;;  %5173 = vst [vmem:[%s7584_s28 + $0x970] sm:$0xff] %v4033_v13  ;;  %v3001_v16 = vadd.f32 %v7574_v42, %v3000_v14  ;;  %v4025_v17 = vadd.f32 %v7574_v42, %v4024_v15 }
 0x15c   : > { %v6327_v18 = vpop.f32.mrf.mxu0  ;;  %v6583_v19 = vpop.f32.mrf.mxu1 }
 0x15d   : > { %4915 = vst [vmem:[%s7584_s28 + $0x160] sm:$0xff] %v3001_v16  ;;  %5171 = vst [vmem:[%s7584_s28 + $0x960] sm:$0xff] %v4025_v17  ;;  %v3012_v22 = vadd.f32 %v6327_v18, %v7574_v42  ;;  %v4036_v23 = vadd.f32 %v6583_v19, %v7574_v42  ;;  %v7025_v17 = vld [vmem:[%s7369_s25 + $0x278] sm:$0xff]  }
 0x15e   : > { %v3003_v26 = vpop.f32.mrf.mxu0  ;;  %v4027_v27 = vpop.f32.mrf.mxu1  ;;  %v7026_v18 = vld [vmem:[%s7369_s25 + $0x678] sm:$0xff]  }
 0x15f   : > { %4918 = vst [vmem:[%s7584_s28 + $0x178] sm:$0xff] %v3012_v22  ;;  %5174 = vst [vmem:[%s7584_s28 + $0x978] sm:$0xff] %v4036_v23  ;;  %v3004_v28 = vadd.f32 %v7574_v42, %v3003_v26  ;;  %v4028_v29 = vadd.f32 %v7574_v42, %v4027_v27  ;;  %v7028_v22 = vld [vmem:[%s7369_s25 + $0x680] sm:$0xff]  }
 0x160   : > { %v6330_v30 = vpop.f32.mrf.mxu0  ;;  %6425 = vmatmul.mubr.msk.bf16.gmra.mxu0 %vm2017_vm1, %v7013_v20  ;;  %v6586_v31 = vpop.f32.mrf.mxu1  ;;  %6681 = vmatmul.mubr.msk.bf16.gmra.mxu1 %vm2017_vm1, %v7014_v21  ;;  %v7027_v21 = vld [vmem:[%s7369_s25 + $0x280] sm:$0xff]  }
 0x161   : > { %4916 = vst [vmem:[%s7584_s28 + $0x168] sm:$0xff] %v3004_v28  ;;  %5172 = vst [vmem:[%s7584_s28 + $0x968] sm:$0xff] %v4028_v29  ;;  %v3025_v32 = vadd.f32 %v6330_v30, %v7574_v42  ;;  %v4049_v33 = vadd.f32 %v6586_v31, %v7574_v42  ;;  %6428 = vmatprep.mubr.msk.bf16.mxu0 %vm2017_vm1, %v7015_v24  ;;  %6684 = vmatprep.mubr.msk.bf16.mxu1 %vm2017_vm1, %v7016_v25 }
 0x162   : > { %v3016_v34 = vpop.f32.mrf.mxu0  ;;  %v4040_v35 = vpop.f32.mrf.mxu1 }
 0x163   : > { %4921 = vst [vmem:[%s7584_s28 + $0x190] sm:$0xff] %v3025_v32  ;;  %5177 = vst [vmem:[%s7584_s28 + $0x990] sm:$0xff] %v4049_v33  ;;  %v3017_v36 = vadd.f32 %v7574_v42, %v3016_v34  ;;  %v4041_v37 = vadd.f32 %v7574_v42, %v4040_v35 }
 0x164   : > { %v6331_v38 = vpop.f32.mrf.mxu0  ;;  %v6587_v39 = vpop.f32.mrf.mxu1 }
 0x165   : > { %4919 = vst [vmem:[%s7584_s28 + $0x180] sm:$0xff] %v3017_v36  ;;  %5175 = vst [vmem:[%s7584_s28 + $0x980] sm:$0xff] %v4041_v37  ;;  %v3028_v43 = vadd.f32 %v6331_v38, %v7574_v42  ;;  %v4052_v44 = vadd.f32 %v6587_v39, %v7574_v42  ;;  %v7029_v37 = vld [vmem:[%s7369_s25 + $0x288] sm:$0xff]  }
 0x166   : > { %v3019_v47 = vpop.f32.mrf.mxu0  ;;  %v4043_v48 = vpop.f32.mrf.mxu1  ;;  %v7030_v38 = vld [vmem:[%s7369_s25 + $0x688] sm:$0xff]  }
 0x167   : > { %4922 = vst [vmem:[%s7584_s28 + $0x198] sm:$0xff] %v3028_v43  ;;  %5178 = vst [vmem:[%s7584_s28 + $0x998] sm:$0xff] %v4052_v44  ;;  %v3020_v49 = vadd.f32 %v7574_v42, %v3019_v47  ;;  %v4044_v50 = vadd.f32 %v7574_v42, %v4043_v48  ;;  %v7032_v43 = vld [vmem:[%s7369_s25 + $0x690] sm:$0xff]  }
 0x168   : > { %v6334_v51 = vpop.f32.mrf.mxu0  ;;  %6429 = vmatmul.mubr.msk.bf16.gmra.mxu0 %vm2017_vm1, %v7017_v40  ;;  %v6590_v52 = vpop.f32.mrf.mxu1  ;;  %6685 = vmatmul.mubr.msk.bf16.gmra.mxu1 %vm2017_vm1, %v7018_v41  ;;  %v7031_v41 = vld [vmem:[%s7369_s25 + $0x290] sm:$0xff]  }
 0x169   : > { %4920 = vst [vmem:[%s7584_s28 + $0x188] sm:$0xff] %v3020_v49  ;;  %5176 = vst [vmem:[%s7584_s28 + $0x988] sm:$0xff] %v4044_v50  ;;  %v3041_v53 = vadd.f32 %v6334_v51, %v7574_v42  ;;  %v4065_v54 = vadd.f32 %v6590_v52, %v7574_v42  ;;  %6432 = vmatprep.mubr.msk.bf16.mxu0 %vm2017_vm1, %v7019_v45  ;;  %6688 = vmatprep.mubr.msk.bf16.mxu1 %vm2017_vm1, %v7020_v46 }
 0x16a   : > { %v3032_v55 = vpop.f32.mrf.mxu0  ;;  %v4056_v56 = vpop.f32.mrf.mxu1 }
 0x16b   : > { %4925 = vst [vmem:[%s7584_s28 + $0x1b0] sm:$0xff] %v3041_v53  ;;  %5181 = vst [vmem:[%s7584_s28 + $0x9b0] sm:$0xff] %v4065_v54  ;;  %v3033_v57 = vadd.f32 %v7574_v42, %v3032_v55  ;;  %v4057_v58 = vadd.f32 %v7574_v42, %v4056_v56 }
 0x16c   : > { %v6335_v59 = vpop.f32.mrf.mxu0  ;;  %v6591_v60 = vpop.f32.mrf.mxu1 }
 0x16d   : > { %4923 = vst [vmem:[%s7584_s28 + $0x1a0] sm:$0xff] %v3033_v57  ;;  %5179 = vst [vmem:[%s7584_s28 + $0x9a0] sm:$0xff] %v4057_v58  ;;  %v3044_v63 = vadd.f32 %v6335_v59, %v7574_v42  ;;  %v4068_v0 = vadd.f32 %v6591_v60, %v7574_v42  ;;  %v7033_v58 = vld [vmem:[%s7369_s25 + $0x298] sm:$0xff]  }
 0x16e   : > { %v3035_v3 = vpop.f32.mrf.mxu0  ;;  %v4059_v4 = vpop.f32.mrf.mxu1  ;;  %v7034_v59 = vld [vmem:[%s7369_s25 + $0x698] sm:$0xff]  }
 0x16f   : > { %4926 = vst [vmem:[%s7584_s28 + $0x1b8] sm:$0xff] %v3044_v63  ;;  %5182 = vst [vmem:[%s7584_s28 + $0x9b8] sm:$0xff] %v4068_v0  ;;  %v3036_v6 = vadd.f32 %v7910_v5, %v3035_v3  ;;  %v4060_v7 = vadd.f32 %v7910_v5, %v4059_v4  ;;  %v7036_v63 = vld [vmem:[%s7369_s25 + $0x6a0] sm:$0xff]  }
 0x170   : > { %v6338_v8 = vpop.f32.mrf.mxu0  ;;  %6433 = vmatmul.mubr.msk.bf16.gmra.mxu0 %vm2017_vm1, %v7021_v61  ;;  %v6594_v9 = vpop.f32.mrf.mxu1  ;;  %6689 = vmatmul.mubr.msk.bf16.gmra.mxu1 %vm2017_vm1, %v7022_v62  ;;  %v7035_v62 = vld [vmem:[%s7369_s25 + $0x2a0] sm:$0xff]  }
 0x171   : > { %4924 = vst [vmem:[%s7584_s28 + $0x1a8] sm:$0xff] %v3036_v6  ;;  %5180 = vst [vmem:[%s7584_s28 + $0x9a8] sm:$0xff] %v4060_v7  ;;  %v3057_v42 = vadd.f32 %v7910_v5, %v6338_v8  ;;  %v4081_v10 = vadd.f32 %v7910_v5, %v6594_v9  ;;  %6436 = vmatprep.mubr.msk.bf16.mxu0 %vm2017_vm1, %v7023_v1  ;;  %6692 = vmatprep.mubr.msk.bf16.mxu1 %vm2017_vm1, %v7024_v2 }
 0x172   : > { %v3048_v11 = vpop.f32.mrf.mxu0  ;;  %v4072_v12 = vpop.f32.mrf.mxu1 }
 0x173   : > { %4929 = vst [vmem:[%s7584_s28 + $0x1d0] sm:$0xff] %v3057_v42  ;;  %5185 = vst [vmem:[%s7584_s28 + $0x9d0] sm:$0xff] %v4081_v10  ;;  %v3049_v13 = vadd.f32 %v7910_v5, %v3048_v11  ;;  %v4073_v14 = vadd.f32 %v7910_v5, %v4072_v12 }
 0x174   : > { %v6339_v15 = vpop.f32.mrf.mxu0  ;;  %v6595_v16 = vpop.f32.mrf.mxu1 }
 0x175   : > { %4927 = vst [vmem:[%s7584_s28 + $0x1c0] sm:$0xff] %v3049_v13  ;;  %5183 = vst [vmem:[%s7584_s28 + $0x9c0] sm:$0xff] %v4073_v14  ;;  %v3060_v19 = vadd.f32 %v7910_v5, %v6339_v15  ;;  %v4084_v20 = vadd.f32 %v7910_v5, %v6595_v16  ;;  %v7037_v14 = vld [vmem:[%s7369_s25 + $0x2a8] sm:$0xff]  }
 0x176   : > { %v3051_v23 = vpop.f32.mrf.mxu0  ;;  %v4075_v24 = vpop.f32.mrf.mxu1  ;;  %v7038_v15 = vld [vmem:[%s7369_s25 + $0x6a8] sm:$0xff]  }
 0x177   : > { %4930 = vst [vmem:[%s7584_s28 + $0x1d8] sm:$0xff] %v3060_v19  ;;  %5186 = vst [vmem:[%s7584_s28 + $0x9d8] sm:$0xff] %v4084_v20  ;;  %v3052_v25 = vadd.f32 %v7910_v5, %v3051_v23  ;;  %v4076_v26 = vadd.f32 %v7910_v5, %v4075_v24  ;;  %v7040_v19 = vld [vmem:[%s7369_s25 + $0x6b0] sm:$0xff]  }
 0x178   : > { %v6342_v27 = vpop.f32.mrf.mxu0  ;;  %6437 = vmatmul.mubr.msk.bf16.gmra.mxu0 %vm2017_vm1, %v7025_v17  ;;  %v6598_v28 = vpop.f32.mrf.mxu1  ;;  %6693 = vmatmul.mubr.msk.bf16.gmra.mxu1 %vm2017_vm1, %v7026_v18  ;;  %v7039_v18 = vld [vmem:[%s7369_s25 + $0x2b0] sm:$0xff]  }
 0x179   : > { %4928 = vst [vmem:[%s7584_s28 + $0x1c8] sm:$0xff] %v3052_v25  ;;  %5184 = vst [vmem:[%s7584_s28 + $0x9c8] sm:$0xff] %v4076_v26  ;;  %v3073_v29 = vadd.f32 %v7910_v5, %v6342_v27  ;;  %v4097_v30 = vadd.f32 %v7910_v5, %v6598_v28  ;;  %6440 = vmatprep.mubr.msk.bf16.mxu0 %vm2017_vm1, %v7027_v21  ;;  %6696 = vmatprep.mubr.msk.bf16.mxu1 %vm2017_vm1, %v7028_v22 }
 0x17a   : > { %v3064_v31 = vpop.f32.mrf.mxu0  ;;  %v4088_v32 = vpop.f32.mrf.mxu1 }
 0x17b   : > { %4933 = vst [vmem:[%s7584_s28 + $0x1f0] sm:$0xff] %v3073_v29  ;;  %5189 = vst [vmem:[%s7584_s28 + $0x9f0] sm:$0xff] %v4097_v30  ;;  %v3065_v33 = vadd.f32 %v7910_v5, %v3064_v31  ;;  %v4089_v34 = vadd.f32 %v7910_v5, %v4088_v32 }
 0x17c   : > { %v6343_v35 = vpop.f32.mrf.mxu0  ;;  %v6599_v36 = vpop.f32.mrf.mxu1 }
 0x17d   : > { %4931 = vst [vmem:[%s7584_s28 + $0x1e0] sm:$0xff] %v3065_v33  ;;  %5187 = vst [vmem:[%s7584_s28 + $0x9e0] sm:$0xff] %v4089_v34  ;;  %v3076_v39 = vadd.f32 %v7910_v5, %v6343_v35  ;;  %v4100_v40 = vadd.f32 %v7910_v5, %v6599_v36  ;;  %v7041_v34 = vld [vmem:[%s7369_s25 + $0x2b8] sm:$0xff]  }
 0x17e   : > { %v3067_v44 = vpop.f32.mrf.mxu0  ;;  %v4091_v45 = vpop.f32.mrf.mxu1  ;;  %v7042_v35 = vld [vmem:[%s7369_s25 + $0x6b8] sm:$0xff]  }
 0x17f   : > { %4934 = vst [vmem:[%s7584_s28 + $0x1f8] sm:$0xff] %v3076_v39  ;;  %5190 = vst [vmem:[%s7584_s28 + $0x9f8] sm:$0xff] %v4100_v40  ;;  %v3068_v46 = vadd.f32 %v7910_v5, %v3067_v44  ;;  %v4092_v47 = vadd.f32 %v7910_v5, %v4091_v45  ;;  %v7044_v39 = vld [vmem:[%s7369_s25 + $0x6c0] sm:$0xff]  }
 0x180   : > { %v6346_v48 = vpop.f32.mrf.mxu0  ;;  %6441 = vmatmul.mubr.msk.bf16.gmra.mxu0 %vm2017_vm1, %v7029_v37  ;;  %v6602_v49 = vpop.f32.mrf.mxu1  ;;  %6697 = vmatmul.mubr.msk.bf16.gmra.mxu1 %vm2017_vm1, %v7030_v38  ;;  %v7043_v38 = vld [vmem:[%s7369_s25 + $0x2c0] sm:$0xff]  }
 0x181   : > { %4932 = vst [vmem:[%s7584_s28 + $0x1e8] sm:$0xff] %v3068_v46  ;;  %5188 = vst [vmem:[%s7584_s28 + $0x9e8] sm:$0xff] %v4092_v47  ;;  %v3089_v50 = vadd.f32 %v7910_v5, %v6346_v48  ;;  %v4113_v51 = vadd.f32 %v7910_v5, %v6602_v49  ;;  %6444 = vmatprep.mubr.msk.bf16.mxu0 %vm2017_vm1, %v7031_v41  ;;  %6700 = vmatprep.mubr.msk.bf16.mxu1 %vm2017_vm1, %v7032_v43 }
 0x182   : > { %v3080_v52 = vpop.f32.mrf.mxu0  ;;  %v4104_v53 = vpop.f32.mrf.mxu1 }
 0x183   : > { %4937 = vst [vmem:[%s7584_s28 + $0x210] sm:$0xff] %v3089_v50  ;;  %5193 = vst [vmem:[%s7584_s28 + $0xa10] sm:$0xff] %v4113_v51  ;;  %v3081_v54 = vadd.f32 %v7910_v5, %v3080_v52  ;;  %v4105_v55 = vadd.f32 %v7910_v5, %v4104_v53 }
 0x184   : > { %v6347_v56 = vpop.f32.mrf.mxu0  ;;  %v6603_v57 = vpop.f32.mrf.mxu1 }
 0x185   : > { %4935 = vst [vmem:[%s7584_s28 + $0x200] sm:$0xff] %v3081_v54  ;;  %5191 = vst [vmem:[%s7584_s28 + $0xa00] sm:$0xff] %v4105_v55  ;;  %v3092_v60 = vadd.f32 %v7910_v5, %v6347_v56  ;;  %v4116_v61 = vadd.f32 %v7910_v5, %v6603_v57  ;;  %v7045_v55 = vld [vmem:[%s7369_s25 + $0x2c8] sm:$0xff]  }
 0x186   : > { %v3083_v0 = vpop.f32.mrf.mxu0  ;;  %v4107_v1 = vpop.f32.mrf.mxu1  ;;  %v7046_v56 = vld [vmem:[%s7369_s25 + $0x6c8] sm:$0xff]  }
 0x187   : > { %4938 = vst [vmem:[%s7584_s28 + $0x218] sm:$0xff] %v3092_v60  ;;  %5194 = vst [vmem:[%s7584_s28 + $0xa18] sm:$0xff] %v4116_v61  ;;  %v3084_v2 = vadd.f32 %v7910_v5, %v3083_v0  ;;  %v4108_v3 = vadd.f32 %v7910_v5, %v4107_v1  ;;  %v7048_v60 = vld [vmem:[%s7369_s25 + $0x6d0] sm:$0xff]  }
 0x188   : > { %v6350_v4 = vpop.f32.mrf.mxu0  ;;  %6445 = vmatmul.mubr.msk.bf16.gmra.mxu0 %vm2017_vm1, %v7033_v58  ;;  %v6606_v6 = vpop.f32.mrf.mxu1  ;;  %6701 = vmatmul.mubr.msk.bf16.gmra.mxu1 %vm2017_vm1, %v7034_v59  ;;  %v7047_v59 = vld [vmem:[%s7369_s25 + $0x2d0] sm:$0xff]  }
 0x189   : > { %4936 = vst [vmem:[%s7584_s28 + $0x208] sm:$0xff] %v3084_v2  ;;  %5192 = vst [vmem:[%s7584_s28 + $0xa08] sm:$0xff] %v4108_v3  ;;  %v3105_v7 = vadd.f32 %v7910_v5, %v6350_v4  ;;  %v4129_v8 = vadd.f32 %v7910_v5, %v6606_v6  ;;  %6448 = vmatprep.mubr.msk.bf16.mxu0 %vm2017_vm1, %v7035_v62  ;;  %6704 = vmatprep.mubr.msk.bf16.mxu1 %vm2017_vm1, %v7036_v63 }
 0x18a   : > { %v3096_v9 = vpop.f32.mrf.mxu0  ;;  %v4120_v42 = vpop.f32.mrf.mxu1 }
 0x18b   : > { %4941 = vst [vmem:[%s7584_s28 + $0x230] sm:$0xff] %v3105_v7  ;;  %5197 = vst [vmem:[%s7584_s28 + $0xa30] sm:$0xff] %v4129_v8  ;;  %v3097_v10 = vadd.f32 %v7910_v5, %v3096_v9  ;;  %v4121_v11 = vadd.f32 %v7910_v5, %v4120_v42 }
 0x18c   : > { %v6351_v12 = vpop.f32.mrf.mxu0  ;;  %v6607_v13 = vpop.f32.mrf.mxu1 }
 0x18d   : > { %4939 = vst [vmem:[%s7584_s28 + $0x220] sm:$0xff] %v3097_v10  ;;  %5195 = vst [vmem:[%s7584_s28 + $0xa20] sm:$0xff] %v4121_v11  ;;  %v3108_v16 = vadd.f32 %v7910_v5, %v6351_v12  ;;  %v4132_v17 = vadd.f32 %v7910_v5, %v6607_v13  ;;  %v7049_v11 = vld [vmem:[%s7369_s25 + $0x2d8] sm:$0xff]  }
 0x18e   : > { %v3099_v20 = vpop.f32.mrf.mxu0  ;;  %v4123_v21 = vpop.f32.mrf.mxu1  ;;  %v7050_v12 = vld [vmem:[%s7369_s25 + $0x6d8] sm:$0xff]  }
 0x18f   : > { %4942 = vst [vmem:[%s7584_s28 + $0x238] sm:$0xff] %v3108_v16  ;;  %5198 = vst [vmem:[%s7584_s28 + $0xa38] sm:$0xff] %v4132_v17  ;;  %v3100_v22 = vadd.f32 %v7910_v5, %v3099_v20  ;;  %v4124_v23 = vadd.f32 %v7910_v5, %v4123_v21  ;;  %v7052_v16 = vld [vmem:[%s7369_s25 + $0x6e0] sm:$0xff]  }
 0x190   : > { %v6354_v24 = vpop.f32.mrf.mxu0  ;;  %6449 = vmatmul.mubr.msk.bf16.gmra.mxu0 %vm2017_vm1, %v7037_v14  ;;  %v6610_v25 = vpop.f32.mrf.mxu1  ;;  %6705 = vmatmul.mubr.msk.bf16.gmra.mxu1 %vm2017_vm1, %v7038_v15  ;;  %v7051_v15 = vld [vmem:[%s7369_s25 + $0x2e0] sm:$0xff]  }
 0x191   : > { %4940 = vst [vmem:[%s7584_s28 + $0x228] sm:$0xff] %v3100_v22  ;;  %5196 = vst [vmem:[%s7584_s28 + $0xa28] sm:$0xff] %v4124_v23  ;;  %v3121_v26 = vadd.f32 %v7910_v5, %v6354_v24  ;;  %v4145_v27 = vadd.f32 %v7910_v5, %v6610_v25  ;;  %6452 = vmatprep.mubr.msk.bf16.mxu0 %vm2017_vm1, %v7039_v18  ;;  %6708 = vmatprep.mubr.msk.bf16.mxu1 %vm2017_vm1, %v7040_v19 }
 0x192   : > { %v3112_v28 = vpop.f32.mrf.mxu0  ;;  %v4136_v29 = vpop.f32.mrf.mxu1 }
 0x193   : > { %4945 = vst [vmem:[%s7584_s28 + $0x250] sm:$0xff] %v3121_v26  ;;  %5201 = vst [vmem:[%s7584_s28 + $0xa50] sm:$0xff] %v4145_v27  ;;  %v3113_v30 = vadd.f32 %v7910_v5, %v3112_v28  ;;  %v4137_v31 = vadd.f32 %v7910_v5, %v4136_v29 }
 0x194   : > { %v6355_v32 = vpop.f32.mrf.mxu0  ;;  %v6611_v33 = vpop.f32.mrf.mxu1 }
 0x195   : > { %4943 = vst [vmem:[%s7584_s28 + $0x240] sm:$0xff] %v3113_v30  ;;  %5199 = vst [vmem:[%s7584_s28 + $0xa40] sm:$0xff] %v4137_v31  ;;  %v3124_v36 = vadd.f32 %v7910_v5, %v6355_v32  ;;  %v4148_v37 = vadd.f32 %v7910_v5, %v6611_v33  ;;  %v7053_v31 = vld [vmem:[%s7369_s25 + $0x2e8] sm:$0xff]  }
 0x196   : > { %v3115_v40 = vpop.f32.mrf.mxu0  ;;  %v4139_v41 = vpop.f32.mrf.mxu1  ;;  %v7054_v32 = vld [vmem:[%s7369_s25 + $0x6e8] sm:$0xff]  }
 0x197   : > { %4946 = vst [vmem:[%s7584_s28 + $0x258] sm:$0xff] %v3124_v36  ;;  %5202 = vst [vmem:[%s7584_s28 + $0xa58] sm:$0xff] %v4148_v37  ;;  %v3116_v43 = vadd.f32 %v7910_v5, %v3115_v40  ;;  %v4140_v44 = vadd.f32 %v7910_v5, %v4139_v41  ;;  %v7056_v36 = vld [vmem:[%s7369_s25 + $0x6f0] sm:$0xff]  }
 0x198   : > { %v6358_v45 = vpop.f32.mrf.mxu0  ;;  %6453 = vmatmul.mubr.msk.bf16.gmra.mxu0 %vm2017_vm1, %v7041_v34  ;;  %v6614_v46 = vpop.f32.mrf.mxu1  ;;  %6709 = vmatmul.mubr.msk.bf16.gmra.mxu1 %vm2017_vm1, %v7042_v35  ;;  %v7055_v35 = vld [vmem:[%s7369_s25 + $0x2f0] sm:$0xff]  }
 0x199   : > { %4944 = vst [vmem:[%s7584_s28 + $0x248] sm:$0xff] %v3116_v43  ;;  %5200 = vst [vmem:[%s7584_s28 + $0xa48] sm:$0xff] %v4140_v44  ;;  %v3137_v47 = vadd.f32 %v7910_v5, %v6358_v45  ;;  %v4161_v48 = vadd.f32 %v7910_v5, %v6614_v46  ;;  %6456 = vmatprep.mubr.msk.bf16.mxu0 %vm2017_vm1, %v7043_v38  ;;  %6712 = vmatprep.mubr.msk.bf16.mxu1 %vm2017_vm1, %v7044_v39 }
 0x19a   : > { %v3128_v49 = vpop.f32.mrf.mxu0  ;;  %v4152_v50 = vpop.f32.mrf.mxu1 }
 0x19b   : > { %4949 = vst [vmem:[%s7584_s28 + $0x270] sm:$0xff] %v3137_v47  ;;  %5205 = vst [vmem:[%s7584_s28 + $0xa70] sm:$0xff] %v4161_v48  ;;  %v3129_v51 = vadd.f32 %v7910_v5, %v3128_v49  ;;  %v4153_v52 = vadd.f32 %v7910_v5, %v4152_v50 }
 0x19c   : > { %v6359_v53 = vpop.f32.mrf.mxu0  ;;  %v6615_v54 = vpop.f32.mrf.mxu1 }
 0x19d   : > { %4947 = vst [vmem:[%s7584_s28 + $0x260] sm:$0xff] %v3129_v51  ;;  %5203 = vst [vmem:[%s7584_s28 + $0xa60] sm:$0xff] %v4153_v52  ;;  %v3140_v57 = vadd.f32 %v7910_v5, %v6359_v53  ;;  %v4164_v58 = vadd.f32 %v7910_v5, %v6615_v54  ;;  %v7057_v52 = vld [vmem:[%s7369_s25 + $0x2f8] sm:$0xff]  }
 0x19e   : > { %v3131_v61 = vpop.f32.mrf.mxu0  ;;  %v4155_v62 = vpop.f32.mrf.mxu1  ;;  %v7058_v53 = vld [vmem:[%s7369_s25 + $0x6f8] sm:$0xff]  }
 0x19f   : > { %4950 = vst [vmem:[%s7584_s28 + $0x278] sm:$0xff] %v3140_v57  ;;  %5206 = vst [vmem:[%s7584_s28 + $0xa78] sm:$0xff] %v4164_v58  ;;  %v3132_v63 = vadd.f32 %v7910_v5, %v3131_v61  ;;  %v4156_v0 = vadd.f32 %v7910_v5, %v4155_v62  ;;  %v7060_v57 = vld [vmem:[%s7369_s25 + $0x700] sm:$0xff]  }
 0x1a0   : > { %v6362_v1 = vpop.f32.mrf.mxu0  ;;  %6457 = vmatmul.mubr.msk.bf16.gmra.mxu0 %vm2017_vm1, %v7045_v55  ;;  %v6618_v2 = vpop.f32.mrf.mxu1  ;;  %6713 = vmatmul.mubr.msk.bf16.gmra.mxu1 %vm2017_vm1, %v7046_v56  ;;  %v7059_v56 = vld [vmem:[%s7369_s25 + $0x300] sm:$0xff]  }
 0x1a1   : > { %4948 = vst [vmem:[%s7584_s28 + $0x268] sm:$0xff] %v3132_v63  ;;  %5204 = vst [vmem:[%s7584_s28 + $0xa68] sm:$0xff] %v4156_v0  ;;  %v3153_v3 = vadd.f32 %v7910_v5, %v6362_v1  ;;  %v4177_v4 = vadd.f32 %v7910_v5, %v6618_v2  ;;  %6460 = vmatprep.mubr.msk.bf16.mxu0 %vm2017_vm1, %v7047_v59  ;;  %6716 = vmatprep.mubr.msk.bf16.mxu1 %vm2017_vm1, %v7048_v60 }
 0x1a2   : > { %v3144_v6 = vpop.f32.mrf.mxu0  ;;  %v4168_v7 = vpop.f32.mrf.mxu1 }
 0x1a3   : > { %4953 = vst [vmem:[%s7584_s28 + $0x290] sm:$0xff] %v3153_v3  ;;  %5209 = vst [vmem:[%s7584_s28 + $0xa90] sm:$0xff] %v4177_v4  ;;  %v3145_v8 = vadd.f32 %v7910_v5, %v3144_v6  ;;  %v4169_v9 = vadd.f32 %v7910_v5, %v4168_v7 }
 0x1a4   : > { %v6363_v42 = vpop.f32.mrf.mxu0  ;;  %v6619_v10 = vpop.f32.mrf.mxu1 }
 0x1a5   : > { %4951 = vst [vmem:[%s7584_s28 + $0x280] sm:$0xff] %v3145_v8  ;;  %5207 = vst [vmem:[%s7584_s28 + $0xa80] sm:$0xff] %v4169_v9  ;;  %v3156_v13 = vadd.f32 %v7910_v5, %v6363_v42  ;;  %v4180_v14 = vadd.f32 %v7910_v5, %v6619_v10  ;;  %v7061_v9 = vld [vmem:[%s7369_s25 + $0x308] sm:$0xff]  }
 0x1a6   : > { %v3147_v17 = vpop.f32.mrf.mxu0  ;;  %v4171_v18 = vpop.f32.mrf.mxu1  ;;  %v7062_v42 = vld [vmem:[%s7369_s25 + $0x708] sm:$0xff]  }
 0x1a7   : > { %4954 = vst [vmem:[%s7584_s28 + $0x298] sm:$0xff] %v3156_v13  ;;  %5210 = vst [vmem:[%s7584_s28 + $0xa98] sm:$0xff] %v4180_v14  ;;  %v3148_v19 = vadd.f32 %v7910_v5, %v3147_v17  ;;  %v4172_v20 = vadd.f32 %v7910_v5, %v4171_v18  ;;  %v7064_v13 = vld [vmem:[%s7369_s25 + $0x710] sm:$0xff]  }
 0x1a8   : > { %v6366_v21 = vpop.f32.mrf.mxu0  ;;  %6461 = vmatmul.mubr.msk.bf16.gmra.mxu0 %vm2017_vm1, %v7049_v11  ;;  %v6622_v22 = vpop.f32.mrf.mxu1  ;;  %6717 = vmatmul.mubr.msk.bf16.gmra.mxu1 %vm2017_vm1, %v7050_v12  ;;  %v7063_v12 = vld [vmem:[%s7369_s25 + $0x310] sm:$0xff]  }
 0x1a9   : > { %4952 = vst [vmem:[%s7584_s28 + $0x288] sm:$0xff] %v3148_v19  ;;  %5208 = vst [vmem:[%s7584_s28 + $0xa88] sm:$0xff] %v4172_v20  ;;  %v3169_v23 = vadd.f32 %v7910_v5, %v6366_v21  ;;  %v4193_v24 = vadd.f32 %v7910_v5, %v6622_v22  ;;  %6464 = vmatprep.mubr.msk.bf16.mxu0 %vm2017_vm1, %v7051_v15  ;;  %6720 = vmatprep.mubr.msk.bf16.mxu1 %vm2017_vm1, %v7052_v16 }
 0x1aa   : > { %v3160_v25 = vpop.f32.mrf.mxu0  ;;  %v4184_v26 = vpop.f32.mrf.mxu1 }
 0x1ab   : > { %4957 = vst [vmem:[%s7584_s28 + $0x2b0] sm:$0xff] %v3169_v23  ;;  %5213 = vst [vmem:[%s7584_s28 + $0xab0] sm:$0xff] %v4193_v24  ;;  %v3161_v27 = vadd.f32 %v7910_v5, %v3160_v25  ;;  %v4185_v28 = vadd.f32 %v7910_v5, %v4184_v26 }
 0x1ac   : > { %v6367_v29 = vpop.f32.mrf.mxu0  ;;  %v6623_v30 = vpop.f32.mrf.mxu1 }
 0x1ad   : > { %4955 = vst [vmem:[%s7584_s28 + $0x2a0] sm:$0xff] %v3161_v27  ;;  %5211 = vst [vmem:[%s7584_s28 + $0xaa0] sm:$0xff] %v4185_v28  ;;  %v3172_v33 = vadd.f32 %v7910_v5, %v6367_v29  ;;  %v4196_v34 = vadd.f32 %v7910_v5, %v6623_v30  ;;  %v7065_v28 = vld [vmem:[%s7369_s25 + $0x318] sm:$0xff]  }
 0x1ae   : > { %v3163_v37 = vpop.f32.mrf.mxu0  ;;  %v4187_v38 = vpop.f32.mrf.mxu1  ;;  %v7066_v29 = vld [vmem:[%s7369_s25 + $0x718] sm:$0xff]  }
 0x1af   : > { %4958 = vst [vmem:[%s7584_s28 + $0x2b8] sm:$0xff] %v3172_v33  ;;  %5214 = vst [vmem:[%s7584_s28 + $0xab8] sm:$0xff] %v4196_v34  ;;  %v3164_v39 = vadd.f32 %v7910_v5, %v3163_v37  ;;  %v4188_v40 = vadd.f32 %v7910_v5, %v4187_v38  ;;  %v7068_v33 = vld [vmem:[%s7369_s25 + $0x720] sm:$0xff]  }
 0x1b0   : > { %v6370_v41 = vpop.f32.mrf.mxu0  ;;  %6465 = vmatmul.mubr.msk.bf16.gmra.mxu0 %vm2017_vm1, %v7053_v31  ;;  %v6626_v43 = vpop.f32.mrf.mxu1  ;;  %6721 = vmatmul.mubr.msk.bf16.gmra.mxu1 %vm2017_vm1, %v7054_v32  ;;  %v7067_v32 = vld [vmem:[%s7369_s25 + $0x320] sm:$0xff]  }
 0x1b1   : > { %4956 = vst [vmem:[%s7584_s28 + $0x2a8] sm:$0xff] %v3164_v39  ;;  %5212 = vst [vmem:[%s7584_s28 + $0xaa8] sm:$0xff] %v4188_v40  ;;  %v3185_v44 = vadd.f32 %v7910_v5, %v6370_v41  ;;  %v4209_v45 = vadd.f32 %v7910_v5, %v6626_v43  ;;  %6468 = vmatprep.mubr.msk.bf16.mxu0 %vm2017_vm1, %v7055_v35  ;;  %6724 = vmatprep.mubr.msk.bf16.mxu1 %vm2017_vm1, %v7056_v36 }
 0x1b2   : > { %v3176_v46 = vpop.f32.mrf.mxu0  ;;  %v4200_v47 = vpop.f32.mrf.mxu1 }
 0x1b3   : > { %4961 = vst [vmem:[%s7584_s28 + $0x2d0] sm:$0xff] %v3185_v44  ;;  %5217 = vst [vmem:[%s7584_s28 + $0xad0] sm:$0xff] %v4209_v45  ;;  %v3177_v48 = vadd.f32 %v7910_v5, %v3176_v46  ;;  %v4201_v49 = vadd.f32 %v7910_v5, %v4200_v47 }
 0x1b4   : > { %v6371_v50 = vpop.f32.mrf.mxu0  ;;  %v6627_v51 = vpop.f32.mrf.mxu1 }
 0x1b5   : > { %4959 = vst [vmem:[%s7584_s28 + $0x2c0] sm:$0xff] %v3177_v48  ;;  %5215 = vst [vmem:[%s7584_s28 + $0xac0] sm:$0xff] %v4201_v49  ;;  %v3188_v54 = vadd.f32 %v7910_v5, %v6371_v50  ;;  %v4212_v55 = vadd.f32 %v7910_v5, %v6627_v51  ;;  %v7069_v49 = vld [vmem:[%s7369_s25 + $0x328] sm:$0xff]  }
 0x1b6   : > { %v3179_v58 = vpop.f32.mrf.mxu0  ;;  %v4203_v59 = vpop.f32.mrf.mxu1  ;;  %v7070_v50 = vld [vmem:[%s7369_s25 + $0x728] sm:$0xff]  }
 0x1b7   : > { %4962 = vst [vmem:[%s7584_s28 + $0x2d8] sm:$0xff] %v3188_v54  ;;  %5218 = vst [vmem:[%s7584_s28 + $0xad8] sm:$0xff] %v4212_v55  ;;  %v3180_v60 = vadd.f32 %v7910_v5, %v3179_v58  ;;  %v4204_v61 = vadd.f32 %v7910_v5, %v4203_v59  ;;  %v7072_v54 = vld [vmem:[%s7369_s25 + $0x730] sm:$0xff]  }
 0x1b8   : > { %v6374_v62 = vpop.f32.mrf.mxu0  ;;  %6469 = vmatmul.mubr.msk.bf16.gmra.mxu0 %vm2017_vm1, %v7057_v52  ;;  %v6630_v63 = vpop.f32.mrf.mxu1  ;;  %6725 = vmatmul.mubr.msk.bf16.gmra.mxu1 %vm2017_vm1, %v7058_v53  ;;  %v7071_v53 = vld [vmem:[%s7369_s25 + $0x330] sm:$0xff]  }
 0x1b9   : > { %4960 = vst [vmem:[%s7584_s28 + $0x2c8] sm:$0xff] %v3180_v60  ;;  %5216 = vst [vmem:[%s7584_s28 + $0xac8] sm:$0xff] %v4204_v61  ;;  %v3201_v0 = vadd.f32 %v7910_v5, %v6374_v62  ;;  %v4225_v1 = vadd.f32 %v7910_v5, %v6630_v63  ;;  %6472 = vmatprep.mubr.msk.bf16.mxu0 %vm2017_vm1, %v7059_v56  ;;  %6728 = vmatprep.mubr.msk.bf16.mxu1 %vm2017_vm1, %v7060_v57 }
 0x1ba   : > { %v3192_v2 = vpop.f32.mrf.mxu0  ;;  %v4216_v3 = vpop.f32.mrf.mxu1 }
 0x1bb   : > { %4965 = vst [vmem:[%s7584_s28 + $0x2f0] sm:$0xff] %v3201_v0  ;;  %5221 = vst [vmem:[%s7584_s28 + $0xaf0] sm:$0xff] %v4225_v1  ;;  %v3193_v4 = vadd.f32 %v7910_v5, %v3192_v2  ;;  %v4217_v6 = vadd.f32 %v7910_v5, %v4216_v3 }
 0x1bc   : > { %v6375_v7 = vpop.f32.mrf.mxu0  ;;  %v6631_v8 = vpop.f32.mrf.mxu1 }
 0x1bd   : > { %4963 = vst [vmem:[%s7584_s28 + $0x2e0] sm:$0xff] %v3193_v4  ;;  %5219 = vst [vmem:[%s7584_s28 + $0xae0] sm:$0xff] %v4217_v6  ;;  %v3204_v10 = vadd.f32 %v7910_v5, %v6375_v7  ;;  %v4228_v11 = vadd.f32 %v7910_v5, %v6631_v8  ;;  %v7073_v6 = vld [vmem:[%s7369_s25 + $0x338] sm:$0xff]  }
 0x1be   : > { %v3195_v14 = vpop.f32.mrf.mxu0  ;;  %v4219_v15 = vpop.f32.mrf.mxu1  ;;  %v7074_v7 = vld [vmem:[%s7369_s25 + $0x738] sm:$0xff]  }
 0x1bf   : > { %4966 = vst [vmem:[%s7584_s28 + $0x2f8] sm:$0xff] %v3204_v10  ;;  %5222 = vst [vmem:[%s7584_s28 + $0xaf8] sm:$0xff] %v4228_v11  ;;  %v3196_v16 = vadd.f32 %v7910_v5, %v3195_v14  ;;  %v4220_v17 = vadd.f32 %v7910_v5, %v4219_v15  ;;  %v7076_v10 = vld [vmem:[%s7369_s25 + $0x740] sm:$0xff]  }
 0x1c0   : > { %v6378_v18 = vpop.f32.mrf.mxu0  ;;  %6473 = vmatmul.mubr.msk.bf16.gmra.mxu0 %vm2017_vm1, %v7061_v9  ;;  %v6634_v19 = vpop.f32.mrf.mxu1  ;;  %6729 = vmatmul.mubr.msk.bf16.gmra.mxu1 %vm2017_vm1, %v7062_v42  ;;  %v7075_v42 = vld [vmem:[%s7369_s25 + $0x340] sm:$0xff]  }
 0x1c1   : > { %4964 = vst [vmem:[%s7584_s28 + $0x2e8] sm:$0xff] %v3196_v16  ;;  %5220 = vst [vmem:[%s7584_s28 + $0xae8] sm:$0xff] %v4220_v17  ;;  %v3217_v20 = vadd.f32 %v7910_v5, %v6378_v18  ;;  %v4241_v21 = vadd.f32 %v7910_v5, %v6634_v19  ;;  %6476 = vmatprep.mubr.msk.bf16.mxu0 %vm2017_vm1, %v7063_v12  ;;  %6732 = vmatprep.mubr.msk.bf16.mxu1 %vm2017_vm1, %v7064_v13 }
 0x1c2   : > { %v3208_v22 = vpop.f32.mrf.mxu0  ;;  %v4232_v23 = vpop.f32.mrf.mxu1 }
 0x1c3   : > { %4969 = vst [vmem:[%s7584_s28 + $0x310] sm:$0xff] %v3217_v20  ;;  %5225 = vst [vmem:[%s7584_s28 + $0xb10] sm:$0xff] %v4241_v21  ;;  %v3209_v24 = vadd.f32 %v7910_v5, %v3208_v22  ;;  %v4233_v25 = vadd.f32 %v7910_v5, %v4232_v23 }
 0x1c4   : > { %v6379_v26 = vpop.f32.mrf.mxu0  ;;  %v6635_v27 = vpop.f32.mrf.mxu1 }
 0x1c5   : > { %4967 = vst [vmem:[%s7584_s28 + $0x300] sm:$0xff] %v3209_v24  ;;  %5223 = vst [vmem:[%s7584_s28 + $0xb00] sm:$0xff] %v4233_v25  ;;  %v3220_v30 = vadd.f32 %v7910_v5, %v6379_v26  ;;  %v4244_v31 = vadd.f32 %v7910_v5, %v6635_v27  ;;  %v7077_v25 = vld [vmem:[%s7369_s25 + $0x348] sm:$0xff]  }
 0x1c6   : > { %v3211_v34 = vpop.f32.mrf.mxu0  ;;  %v4235_v35 = vpop.f32.mrf.mxu1  ;;  %v7078_v26 = vld [vmem:[%s7369_s25 + $0x748] sm:$0xff]  }
 0x1c7   : > { %4970 = vst [vmem:[%s7584_s28 + $0x318] sm:$0xff] %v3220_v30  ;;  %5226 = vst [vmem:[%s7584_s28 + $0xb18] sm:$0xff] %v4244_v31  ;;  %v3212_v36 = vadd.f32 %v7910_v5, %v3211_v34  ;;  %v4236_v37 = vadd.f32 %v7910_v5, %v4235_v35  ;;  %v7080_v30 = vld [vmem:[%s7369_s25 + $0x750] sm:$0xff]  }
 0x1c8   : > { %v6382_v38 = vpop.f32.mrf.mxu0  ;;  %6477 = vmatmul.mubr.msk.bf16.gmra.mxu0 %vm2017_vm1, %v7065_v28  ;;  %v6638_v39 = vpop.f32.mrf.mxu1  ;;  %6733 = vmatmul.mubr.msk.bf16.gmra.mxu1 %vm2017_vm1, %v7066_v29  ;;  %v7079_v29 = vld [vmem:[%s7369_s25 + $0x350] sm:$0xff]  }
 0x1c9   : > { %4968 = vst [vmem:[%s7584_s28 + $0x308] sm:$0xff] %v3212_v36  ;;  %5224 = vst [vmem:[%s7584_s28 + $0xb08] sm:$0xff] %v4236_v37  ;;  %v3233_v40 = vadd.f32 %v7910_v5, %v6382_v38  ;;  %v4257_v41 = vadd.f32 %v7910_v5, %v6638_v39  ;;  %6480 = vmatprep.mubr.msk.bf16.mxu0 %vm2017_vm1, %v7067_v32  ;;  %6736 = vmatprep.mubr.msk.bf16.mxu1 %vm2017_vm1, %v7068_v33 }
 0x1ca   : > { %v3224_v43 = vpop.f32.mrf.mxu0  ;;  %v4248_v44 = vpop.f32.mrf.mxu1 }
 0x1cb   : > { %4973 = vst [vmem:[%s7584_s28 + $0x330] sm:$0xff] %v3233_v40  ;;  %5229 = vst [vmem:[%s7584_s28 + $0xb30] sm:$0xff] %v4257_v41  ;;  %v3225_v45 = vadd.f32 %v7910_v5, %v3224_v43  ;;  %v4249_v46 = vadd.f32 %v7910_v5, %v4248_v44 }
 0x1cc   : > { %v6383_v47 = vpop.f32.mrf.mxu0  ;;  %v6639_v48 = vpop.f32.mrf.mxu1 }
 0x1cd   : > { %4971 = vst [vmem:[%s7584_s28 + $0x320] sm:$0xff] %v3225_v45  ;;  %5227 = vst [vmem:[%s7584_s28 + $0xb20] sm:$0xff] %v4249_v46  ;;  %v3236_v51 = vadd.f32 %v7910_v5, %v6383_v47  ;;  %v4260_v52 = vadd.f32 %v7910_v5, %v6639_v48  ;;  %v7081_v46 = vld [vmem:[%s7369_s25 + $0x358] sm:$0xff]  }
 0x1ce   : > { %v3227_v55 = vpop.f32.mrf.mxu0  ;;  %v4251_v56 = vpop.f32.mrf.mxu1  ;;  %v7082_v47 = vld [vmem:[%s7369_s25 + $0x758] sm:$0xff]  }
 0x1cf   : > { %4974 = vst [vmem:[%s7584_s28 + $0x338] sm:$0xff] %v3236_v51  ;;  %5230 = vst [vmem:[%s7584_s28 + $0xb38] sm:$0xff] %v4260_v52  ;;  %v3228_v57 = vadd.f32 %v7910_v5, %v3227_v55  ;;  %v4252_v58 = vadd.f32 %v7910_v5, %v4251_v56  ;;  %v7084_v51 = vld [vmem:[%s7369_s25 + $0x760] sm:$0xff]  }
 0x1d0   : > { %v6386_v59 = vpop.f32.mrf.mxu0  ;;  %6481 = vmatmul.mubr.msk.bf16.gmra.mxu0 %vm2017_vm1, %v7069_v49  ;;  %v6642_v60 = vpop.f32.mrf.mxu1  ;;  %6737 = vmatmul.mubr.msk.bf16.gmra.mxu1 %vm2017_vm1, %v7070_v50  ;;  %v7083_v50 = vld [vmem:[%s7369_s25 + $0x360] sm:$0xff]  }
 0x1d1   : > { %4972 = vst [vmem:[%s7584_s28 + $0x328] sm:$0xff] %v3228_v57  ;;  %5228 = vst [vmem:[%s7584_s28 + $0xb28] sm:$0xff] %v4252_v58  ;;  %v3249_v61 = vadd.f32 %v7910_v5, %v6386_v59  ;;  %v4273_v62 = vadd.f32 %v7910_v5, %v6642_v60  ;;  %6484 = vmatprep.mubr.msk.bf16.mxu0 %vm2017_vm1, %v7071_v53  ;;  %6740 = vmatprep.mubr.msk.bf16.mxu1 %vm2017_vm1, %v7072_v54 }
 0x1d2   : > { %v3240_v63 = vpop.f32.mrf.mxu0  ;;  %v4264_v0 = vpop.f32.mrf.mxu1 }
 0x1d3   : > { %4977 = vst [vmem:[%s7584_s28 + $0x350] sm:$0xff] %v3249_v61  ;;  %5233 = vst [vmem:[%s7584_s28 + $0xb50] sm:$0xff] %v4273_v62  ;;  %v3241_v1 = vadd.f32 %v7910_v5, %v3240_v63  ;;  %v4265_v2 = vadd.f32 %v7910_v5, %v4264_v0 }
 0x1d4   : > { %v6387_v3 = vpop.f32.mrf.mxu0  ;;  %v6643_v4 = vpop.f32.mrf.mxu1 }
 0x1d5   : > { %4975 = vst [vmem:[%s7584_s28 + $0x340] sm:$0xff] %v3241_v1  ;;  %5231 = vst [vmem:[%s7584_s28 + $0xb40] sm:$0xff] %v4265_v2  ;;  %v3252_v8 = vadd.f32 %v7910_v5, %v6387_v3  ;;  %v4276_v9 = vadd.f32 %v7910_v5, %v6643_v4  ;;  %v7085_v2 = vld [vmem:[%s7369_s25 + $0x368] sm:$0xff]  }
 0x1d6   : > { %v3243_v11 = vpop.f32.mrf.mxu0  ;;  %v4267_v12 = vpop.f32.mrf.mxu1  ;;  %v7086_v3 = vld [vmem:[%s7369_s25 + $0x768] sm:$0xff]  }
 0x1d7   : > { %4978 = vst [vmem:[%s7584_s28 + $0x358] sm:$0xff] %v3252_v8  ;;  %5234 = vst [vmem:[%s7584_s28 + $0xb58] sm:$0xff] %v4276_v9  ;;  %v3244_v13 = vadd.f32 %v7910_v5, %v3243_v11  ;;  %v4268_v14 = vadd.f32 %v7910_v5, %v4267_v12  ;;  %v7088_v8 = vld [vmem:[%s7369_s25 + $0x770] sm:$0xff]  }
 0x1d8   : > { %v6390_v15 = vpop.f32.mrf.mxu0  ;;  %6485 = vmatmul.mubr.msk.bf16.gmra.mxu0 %vm2017_vm1, %v7073_v6  ;;  %v6646_v16 = vpop.f32.mrf.mxu1  ;;  %6741 = vmatmul.mubr.msk.bf16.gmra.mxu1 %vm2017_vm1, %v7074_v7  ;;  %v7087_v7 = vld [vmem:[%s7369_s25 + $0x370] sm:$0xff]  }
 0x1d9   : > { %4976 = vst [vmem:[%s7584_s28 + $0x348] sm:$0xff] %v3244_v13  ;;  %5232 = vst [vmem:[%s7584_s28 + $0xb48] sm:$0xff] %v4268_v14  ;;  %v3265_v17 = vadd.f32 %v7910_v5, %v6390_v15  ;;  %v4289_v18 = vadd.f32 %v7910_v5, %v6646_v16  ;;  %6488 = vmatprep.mubr.msk.bf16.mxu0 %vm2017_vm1, %v7075_v42  ;;  %6744 = vmatprep.mubr.msk.bf16.mxu1 %vm2017_vm1, %v7076_v10  ;;  %v8296_v10 = vld [vmem:[#allocation5] ss:$0 sm:$0xff] }
 0x1da   : > { %v3256_v19 = vpop.f32.mrf.mxu0  ;;  %v4280_v20 = vpop.f32.mrf.mxu1 }
 0x1db   : > { %4981 = vst [vmem:[%s7584_s28 + $0x370] sm:$0xff] %v3265_v17  ;;  %5237 = vst [vmem:[%s7584_s28 + $0xb70] sm:$0xff] %v4289_v18  ;;  %v3257_v21 = vadd.f32 %v7910_v5, %v3256_v19  ;;  %v4281_v22 = vadd.f32 %v7910_v5, %v4280_v20 }
 0x1dc   : > { %v6391_v23 = vpop.f32.mrf.mxu0  ;;  %v6647_v24 = vpop.f32.mrf.mxu1 }
 0x1dd   : > { %4979 = vst [vmem:[%s7584_s28 + $0x360] sm:$0xff] %v3257_v21  ;;  %5235 = vst [vmem:[%s7584_s28 + $0xb60] sm:$0xff] %v4281_v22  ;;  %v3268_v27 = vadd.f32 %v7910_v5, %v6391_v23  ;;  %v4292_v28 = vadd.f32 %v7910_v5, %v6647_v24  ;;  %v7089_v22 = vld [vmem:[%s7369_s25 + $0x378] sm:$0xff]  }
 0x1de   : > { %v3259_v31 = vpop.f32.mrf.mxu0  ;;  %v4283_v32 = vpop.f32.mrf.mxu1  ;;  %v7090_v23 = vld [vmem:[%s7369_s25 + $0x778] sm:$0xff]  }
 0x1df   : > { %4982 = vst [vmem:[%s7584_s28 + $0x378] sm:$0xff] %v3268_v27  ;;  %5238 = vst [vmem:[%s7584_s28 + $0xb78] sm:$0xff] %v4292_v28  ;;  %v3260_v33 = vadd.f32 %v7910_v5, %v3259_v31  ;;  %v4284_v34 = vadd.f32 %v7910_v5, %v4283_v32  ;;  %v7092_v27 = vld [vmem:[%s7369_s25 + $0x780] sm:$0xff]  }
 0x1e0   : > { %v6394_v35 = vpop.f32.mrf.mxu0  ;;  %6489 = vmatmul.mubr.msk.bf16.gmra.mxu0 %vm2017_vm1, %v7077_v25  ;;  %v6650_v36 = vpop.f32.mrf.mxu1  ;;  %6745 = vmatmul.mubr.msk.bf16.gmra.mxu1 %vm2017_vm1, %v7078_v26  ;;  %v7091_v26 = vld [vmem:[%s7369_s25 + $0x380] sm:$0xff]  }
 0x1e1   : > { %4980 = vst [vmem:[%s7584_s28 + $0x368] sm:$0xff] %v3260_v33  ;;  %5236 = vst [vmem:[%s7584_s28 + $0xb68] sm:$0xff] %v4284_v34  ;;  %v3281_v37 = vadd.f32 %v7910_v5, %v6394_v35  ;;  %v4305_v38 = vadd.f32 %v7910_v5, %v6650_v36  ;;  %6492 = vmatprep.mubr.msk.bf16.mxu0 %vm2017_vm1, %v7079_v29  ;;  %6748 = vmatprep.mubr.msk.bf16.mxu1 %vm2017_vm1, %v7080_v30 }
 0x1e2   : > { %v3272_v39 = vpop.f32.mrf.mxu0  ;;  %v4296_v40 = vpop.f32.mrf.mxu1 }
 0x1e3   : > { %4985 = vst [vmem:[%s7584_s28 + $0x390] sm:$0xff] %v3281_v37  ;;  %5241 = vst [vmem:[%s7584_s28 + $0xb90] sm:$0xff] %v4305_v38  ;;  %v3273_v41 = vadd.f32 %v7910_v5, %v3272_v39  ;;  %v4297_v43 = vadd.f32 %v7910_v5, %v4296_v40 }
 0x1e4   : > { %v6395_v44 = vpop.f32.mrf.mxu0  ;;  %v6651_v45 = vpop.f32.mrf.mxu1 }
 0x1e5   : > { %4983 = vst [vmem:[%s7584_s28 + $0x380] sm:$0xff] %v3273_v41  ;;  %5239 = vst [vmem:[%s7584_s28 + $0xb80] sm:$0xff] %v4297_v43  ;;  %v3284_v48 = vadd.f32 %v7910_v5, %v6395_v44  ;;  %v4308_v49 = vadd.f32 %v7910_v5, %v6651_v45  ;;  %v7093_v43 = vld [vmem:[%s7369_s25 + $0x388] sm:$0xff]  }
 0x1e6   : > { %v3275_v52 = vpop.f32.mrf.mxu0  ;;  %v4299_v53 = vpop.f32.mrf.mxu1  ;;  %v7094_v44 = vld [vmem:[%s7369_s25 + $0x788] sm:$0xff]  }
 0x1e7   : > { %4986 = vst [vmem:[%s7584_s28 + $0x398] sm:$0xff] %v3284_v48  ;;  %5242 = vst [vmem:[%s7584_s28 + $0xb98] sm:$0xff] %v4308_v49  ;;  %v3276_v54 = vadd.f32 %v7910_v5, %v3275_v52  ;;  %v4300_v55 = vadd.f32 %v7910_v5, %v4299_v53  ;;  %v7096_v48 = vld [vmem:[%s7369_s25 + $0x790] sm:$0xff]  }
 0x1e8   : > { %v6398_v56 = vpop.f32.mrf.mxu0  ;;  %6493 = vmatmul.mubr.msk.bf16.gmra.mxu0 %vm2017_vm1, %v7081_v46  ;;  %v6654_v57 = vpop.f32.mrf.mxu1  ;;  %6749 = vmatmul.mubr.msk.bf16.gmra.mxu1 %vm2017_vm1, %v7082_v47  ;;  %v7095_v47 = vld [vmem:[%s7369_s25 + $0x390] sm:$0xff]  }
 0x1e9   : > { %4984 = vst [vmem:[%s7584_s28 + $0x388] sm:$0xff] %v3276_v54  ;;  %5240 = vst [vmem:[%s7584_s28 + $0xb88] sm:$0xff] %v4300_v55  ;;  %v3297_v58 = vadd.f32 %v7910_v5, %v6398_v56  ;;  %v4321_v59 = vadd.f32 %v7910_v5, %v6654_v57  ;;  %6496 = vmatprep.mubr.msk.bf16.mxu0 %vm2017_vm1, %v7083_v50  ;;  %6752 = vmatprep.mubr.msk.bf16.mxu1 %vm2017_vm1, %v7084_v51 }
 0x1ea   : > { %v3288_v60 = vpop.f32.mrf.mxu0  ;;  %v4312_v61 = vpop.f32.mrf.mxu1 }
 0x1eb   : > { %4989 = vst [vmem:[%s7584_s28 + $0x3b0] sm:$0xff] %v3297_v58  ;;  %5245 = vst [vmem:[%s7584_s28 + $0xbb0] sm:$0xff] %v4321_v59  ;;  %v3289_v62 = vadd.f32 %v7910_v5, %v3288_v60  ;;  %v4313_v63 = vadd.f32 %v7910_v5, %v4312_v61 }
 0x1ec   : > { %v6399_v0 = vpop.f32.mrf.mxu0  ;;  %v6655_v1 = vpop.f32.mrf.mxu1 }
 0x1ed   : > { %4987 = vst [vmem:[%s7584_s28 + $0x3a0] sm:$0xff] %v3289_v62  ;;  %5243 = vst [vmem:[%s7584_s28 + $0xba0] sm:$0xff] %v4313_v63  ;;  %v3300_v4 = vadd.f32 %v7910_v5, %v6399_v0  ;;  %v4324_v6 = vadd.f32 %v7910_v5, %v6655_v1  ;;  %v7097_v63 = vld [vmem:[%s7369_s25 + $0x398] sm:$0xff]  }
 0x1ee   : > { %v3291_v9 = vpop.f32.mrf.mxu0  ;;  %v4315_v42 = vpop.f32.mrf.mxu1  ;;  %v7098_v0 = vld [vmem:[%s7369_s25 + $0x798] sm:$0xff]  }
 0x1ef   : > { %4990 = vst [vmem:[%s7584_s28 + $0x3b8] sm:$0xff] %v3300_v4  ;;  %5246 = vst [vmem:[%s7584_s28 + $0xbb8] sm:$0xff] %v4324_v6  ;;  %v3292_v11 = vadd.f32 %v8296_v10, %v3291_v9  ;;  %v4316_v12 = vadd.f32 %v8296_v10, %v4315_v42  ;;  %v7100_v4 = vld [vmem:[%s7369_s25 + $0x7a0] sm:$0xff]  }
 0x1f0   : > { %v6402_v13 = vpop.f32.mrf.mxu0  ;;  %6497 = vmatmul.mubr.msk.bf16.gmra.mxu0 %vm2017_vm1, %v7085_v2  ;;  %v6658_v14 = vpop.f32.mrf.mxu1  ;;  %6753 = vmatmul.mubr.msk.bf16.gmra.mxu1 %vm2017_vm1, %v7086_v3  ;;  %v7099_v3 = vld [vmem:[%s7369_s25 + $0x3a0] sm:$0xff]  }
 0x1f1   : > { %4988 = vst [vmem:[%s7584_s28 + $0x3a8] sm:$0xff] %v3292_v11  ;;  %5244 = vst [vmem:[%s7584_s28 + $0xba8] sm:$0xff] %v4316_v12  ;;  %v3313_v5 = vadd.f32 %v8296_v10, %v6402_v13  ;;  %v4337_v15 = vadd.f32 %v8296_v10, %v6658_v14  ;;  %6500 = vmatprep.mubr.msk.bf16.mxu0 %vm2017_vm1, %v7087_v7  ;;  %6756 = vmatprep.mubr.msk.bf16.mxu1 %vm2017_vm1, %v7088_v8 }
 0x1f2   : > { %v3304_v16 = vpop.f32.mrf.mxu0  ;;  %v4328_v17 = vpop.f32.mrf.mxu1 }
 0x1f3   : > { %4993 = vst [vmem:[%s7584_s28 + $0x3d0] sm:$0xff] %v3313_v5  ;;  %5249 = vst [vmem:[%s7584_s28 + $0xbd0] sm:$0xff] %v4337_v15  ;;  %v3305_v18 = vadd.f32 %v8296_v10, %v3304_v16  ;;  %v4329_v19 = vadd.f32 %v8296_v10, %v4328_v17 }
 0x1f4   : > { %v6403_v20 = vpop.f32.mrf.mxu0  ;;  %v6659_v21 = vpop.f32.mrf.mxu1 }
 0x1f5   : > { %4991 = vst [vmem:[%s7584_s28 + $0x3c0] sm:$0xff] %v3305_v18  ;;  %5247 = vst [vmem:[%s7584_s28 + $0xbc0] sm:$0xff] %v4329_v19  ;;  %v3316_v24 = vadd.f32 %v8296_v10, %v6403_v20  ;;  %v4340_v25 = vadd.f32 %v8296_v10, %v6659_v21  ;;  %v7101_v19 = vld [vmem:[%s7369_s25 + $0x3a8] sm:$0xff]  }
 0x1f6   : > { %v3307_v28 = vpop.f32.mrf.mxu0  ;;  %v4331_v29 = vpop.f32.mrf.mxu1  ;;  %v7102_v20 = vld [vmem:[%s7369_s25 + $0x7a8] sm:$0xff]  }
 0x1f7   : > { %4994 = vst [vmem:[%s7584_s28 + $0x3d8] sm:$0xff] %v3316_v24  ;;  %5250 = vst [vmem:[%s7584_s28 + $0xbd8] sm:$0xff] %v4340_v25  ;;  %v3308_v30 = vadd.f32 %v8296_v10, %v3307_v28  ;;  %v4332_v31 = vadd.f32 %v8296_v10, %v4331_v29  ;;  %v7104_v24 = vld [vmem:[%s7369_s25 + $0x7b0] sm:$0xff]  }
 0x1f8   : > { %v6406_v32 = vpop.f32.mrf.mxu0  ;;  %6501 = vmatmul.mubr.msk.bf16.gmra.mxu0 %vm2017_vm1, %v7089_v22  ;;  %v6662_v33 = vpop.f32.mrf.mxu1  ;;  %6757 = vmatmul.mubr.msk.bf16.gmra.mxu1 %vm2017_vm1, %v7090_v23  ;;  %v7103_v23 = vld [vmem:[%s7369_s25 + $0x3b0] sm:$0xff]  }
 0x1f9   : > { %4992 = vst [vmem:[%s7584_s28 + $0x3c8] sm:$0xff] %v3308_v30  ;;  %5248 = vst [vmem:[%s7584_s28 + $0xbc8] sm:$0xff] %v4332_v31  ;;  %v3329_v34 = vadd.f32 %v8296_v10, %v6406_v32  ;;  %v4353_v35 = vadd.f32 %v8296_v10, %v6662_v33  ;;  %6504 = vmatprep.mubr.msk.bf16.mxu0 %vm2017_vm1, %v7091_v26  ;;  %6760 = vmatprep.mubr.msk.bf16.mxu1 %vm2017_vm1, %v7092_v27 }
 0x1fa   : > { %v3320_v36 = vpop.f32.mrf.mxu0  ;;  %v4344_v37 = vpop.f32.mrf.mxu1 }
 0x1fb   : > { %4997 = vst [vmem:[%s7584_s28 + $0x3f0] sm:$0xff] %v3329_v34  ;;  %5253 = vst [vmem:[%s7584_s28 + $0xbf0] sm:$0xff] %v4353_v35  ;;  %v3321_v38 = vadd.f32 %v8296_v10, %v3320_v36  ;;  %v4345_v39 = vadd.f32 %v8296_v10, %v4344_v37 }
 0x1fc   : > { %v6407_v40 = vpop.f32.mrf.mxu0  ;;  %v6663_v41 = vpop.f32.mrf.mxu1 }
 0x1fd   : > { %4995 = vst [vmem:[%s7584_s28 + $0x3e0] sm:$0xff] %v3321_v38  ;;  %5251 = vst [vmem:[%s7584_s28 + $0xbe0] sm:$0xff] %v4345_v39  ;;  %v3332_v45 = vadd.f32 %v8296_v10, %v6407_v40  ;;  %v4356_v46 = vadd.f32 %v8296_v10, %v6663_v41  ;;  %v7105_v39 = vld [vmem:[%s7369_s25 + $0x3b8] sm:$0xff]  }
 0x1fe   : > { %v3323_v49 = vpop.f32.mrf.mxu0  ;;  %v4347_v50 = vpop.f32.mrf.mxu1  ;;  %v7106_v40 = vld [vmem:[%s7369_s25 + $0x7b8] sm:$0xff]  }
 0x1ff   : > { %4998 = vst [vmem:[%s7584_s28 + $0x3f8] sm:$0xff] %v3332_v45  ;;  %5254 = vst [vmem:[%s7584_s28 + $0xbf8] sm:$0xff] %v4356_v46  ;;  %v3324_v51 = vadd.f32 %v8296_v10, %v3323_v49  ;;  %v4348_v52 = vadd.f32 %v8296_v10, %v4347_v50  ;;  %v7108_v45 = vld [vmem:[%s7369_s25 + $0x7c0] sm:$0xff]  }
 0x200   : > { %v6410_v53 = vpop.f32.mrf.mxu0  ;;  %6505 = vmatmul.mubr.msk.bf16.gmra.mxu0 %vm2017_vm1, %v7093_v43  ;;  %v6666_v54 = vpop.f32.mrf.mxu1  ;;  %6761 = vmatmul.mubr.msk.bf16.gmra.mxu1 %vm2017_vm1, %v7094_v44  ;;  %v7107_v44 = vld [vmem:[%s7369_s25 + $0x3c0] sm:$0xff]  }
 0x201   : > { %4996 = vst [vmem:[%s7584_s28 + $0x3e8] sm:$0xff] %v3324_v51  ;;  %5252 = vst [vmem:[%s7584_s28 + $0xbe8] sm:$0xff] %v4348_v52  ;;  %v3345_v55 = vadd.f32 %v8296_v10, %v6410_v53  ;;  %v4369_v56 = vadd.f32 %v8296_v10, %v6666_v54  ;;  %6508 = vmatprep.mubr.msk.bf16.mxu0 %vm2017_vm1, %v7095_v47  ;;  %6764 = vmatprep.mubr.msk.bf16.mxu1 %vm2017_vm1, %v7096_v48 }
 0x202   : > { %v3336_v57 = vpop.f32.mrf.mxu0  ;;  %v4360_v58 = vpop.f32.mrf.mxu1 }
 0x203   : > { %5001 = vst [vmem:[%s7584_s28 + $0x410] sm:$0xff] %v3345_v55  ;;  %5257 = vst [vmem:[%s7584_s28 + $0xc10] sm:$0xff] %v4369_v56  ;;  %v3337_v59 = vadd.f32 %v8296_v10, %v3336_v57  ;;  %v4361_v60 = vadd.f32 %v8296_v10, %v4360_v58 }
 0x204   : > { %v6411_v61 = vpop.f32.mrf.mxu0  ;;  %v6667_v62 = vpop.f32.mrf.mxu1 }
 0x205   : > { %4999 = vst [vmem:[%s7584_s28 + $0x400] sm:$0xff] %v3337_v59  ;;  %5255 = vst [vmem:[%s7584_s28 + $0xc00] sm:$0xff] %v4361_v60  ;;  %v3348_v1 = vadd.f32 %v8296_v10, %v6411_v61  ;;  %v4372_v2 = vadd.f32 %v8296_v10, %v6667_v62  ;;  %v7109_v60 = vld [vmem:[%s7369_s25 + $0x3c8] sm:$0xff]  }
 0x206   : > { %v3339_v6 = vpop.f32.mrf.mxu0  ;;  %v4363_v7 = vpop.f32.mrf.mxu1  ;;  %v7110_v61 = vld [vmem:[%s7369_s25 + $0x7c8] sm:$0xff]  }
 0x207   : > { %5002 = vst [vmem:[%s7584_s28 + $0x418] sm:$0xff] %v3348_v1  ;;  %5258 = vst [vmem:[%s7584_s28 + $0xc18] sm:$0xff] %v4372_v2  ;;  %v3340_v8 = vadd.f32 %v8296_v10, %v3339_v6  ;;  %v4364_v9 = vadd.f32 %v8296_v10, %v4363_v7  ;;  %v7112_v1 = vld [vmem:[%s7369_s25 + $0x7d0] sm:$0xff]  }
 0x208   : > { %v6414_v42 = vpop.f32.mrf.mxu0  ;;  %6509 = vmatmul.mubr.msk.bf16.gmra.mxu0 %vm2017_vm1, %v7097_v63  ;;  %v6670_v11 = vpop.f32.mrf.mxu1  ;;  %6765 = vmatmul.mubr.msk.bf16.gmra.mxu1 %vm2017_vm1, %v7098_v0  ;;  %v7111_v0 = vld [vmem:[%s7369_s25 + $0x3d0] sm:$0xff]  }
 0x209   : > { %5000 = vst [vmem:[%s7584_s28 + $0x408] sm:$0xff] %v3340_v8  ;;  %5256 = vst [vmem:[%s7584_s28 + $0xc08] sm:$0xff] %v4364_v9  ;;  %v3361_v12 = vadd.f32 %v8296_v10, %v6414_v42  ;;  %v4385_v13 = vadd.f32 %v8296_v10, %v6670_v11  ;;  %6512 = vmatprep.mubr.msk.bf16.mxu0 %vm2017_vm1, %v7099_v3  ;;  %6768 = vmatprep.mubr.msk.bf16.mxu1 %vm2017_vm1, %v7100_v4 }
 0x20a   : > { %v3352_v14 = vpop.f32.mrf.mxu0  ;;  %v4376_v5 = vpop.f32.mrf.mxu1 }
 0x20b   : > { %5005 = vst [vmem:[%s7584_s28 + $0x430] sm:$0xff] %v3361_v12  ;;  %5261 = vst [vmem:[%s7584_s28 + $0xc30] sm:$0xff] %v4385_v13  ;;  %v3353_v15 = vadd.f32 %v8296_v10, %v3352_v14  ;;  %v4377_v16 = vadd.f32 %v8296_v10, %v4376_v5 }
 0x20c   : > { %v6415_v17 = vpop.f32.mrf.mxu0  ;;  %v6671_v18 = vpop.f32.mrf.mxu1 }
 0x20d   : > { %5003 = vst [vmem:[%s7584_s28 + $0x420] sm:$0xff] %v3353_v15  ;;  %5259 = vst [vmem:[%s7584_s28 + $0xc20] sm:$0xff] %v4377_v16  ;;  %v3364_v21 = vadd.f32 %v8296_v10, %v6415_v17  ;;  %v4388_v22 = vadd.f32 %v8296_v10, %v6671_v18  ;;  %v7113_v16 = vld [vmem:[%s7369_s25 + $0x3d8] sm:$0xff]  }
 0x20e   : > { %v3355_v25 = vpop.f32.mrf.mxu0  ;;  %v4379_v26 = vpop.f32.mrf.mxu1  ;;  %v7114_v17 = vld [vmem:[%s7369_s25 + $0x7d8] sm:$0xff]  }
 0x20f   : > { %5006 = vst [vmem:[%s7584_s28 + $0x438] sm:$0xff] %v3364_v21  ;;  %5262 = vst [vmem:[%s7584_s28 + $0xc38] sm:$0xff] %v4388_v22  ;;  %v3356_v27 = vadd.f32 %v8296_v10, %v3355_v25  ;;  %v4380_v28 = vadd.f32 %v8296_v10, %v4379_v26  ;;  %v7116_v21 = vld [vmem:[%s7369_s25 + $0x7e0] sm:$0xff]  }
 0x210   : > { %v6418_v29 = vpop.f32.mrf.mxu0  ;;  %6513 = vmatmul.mubr.msk.bf16.gmra.mxu0 %vm2017_vm1, %v7101_v19  ;;  %v6674_v30 = vpop.f32.mrf.mxu1  ;;  %6769 = vmatmul.mubr.msk.bf16.gmra.mxu1 %vm2017_vm1, %v7102_v20  ;;  %v7115_v20 = vld [vmem:[%s7369_s25 + $0x3e0] sm:$0xff]  }
 0x211   : > { %5004 = vst [vmem:[%s7584_s28 + $0x428] sm:$0xff] %v3356_v27  ;;  %5260 = vst [vmem:[%s7584_s28 + $0xc28] sm:$0xff] %v4380_v28  ;;  %v3377_v31 = vadd.f32 %v8296_v10, %v6418_v29  ;;  %v4401_v32 = vadd.f32 %v8296_v10, %v6674_v30  ;;  %6516 = vmatprep.mubr.msk.bf16.mxu0 %vm2017_vm1, %v7103_v23  ;;  %6772 = vmatprep.mubr.msk.bf16.mxu1 %vm2017_vm1, %v7104_v24 }
 0x212   : > { %v3368_v33 = vpop.f32.mrf.mxu0  ;;  %v4392_v34 = vpop.f32.mrf.mxu1 }
 0x213   : > { %5009 = vst [vmem:[%s7584_s28 + $0x450] sm:$0xff] %v3377_v31  ;;  %5265 = vst [vmem:[%s7584_s28 + $0xc50] sm:$0xff] %v4401_v32  ;;  %v3369_v35 = vadd.f32 %v8296_v10, %v3368_v33  ;;  %v4393_v36 = vadd.f32 %v8296_v10, %v4392_v34 }
 0x214   : > { %v6419_v37 = vpop.f32.mrf.mxu0  ;;  %v6675_v38 = vpop.f32.mrf.mxu1 }
 0x215   : > { %5007 = vst [vmem:[%s7584_s28 + $0x440] sm:$0xff] %v3369_v35  ;;  %5263 = vst [vmem:[%s7584_s28 + $0xc40] sm:$0xff] %v4393_v36  ;;  %v3380_v41 = vadd.f32 %v8296_v10, %v6419_v37  ;;  %v4404_v43 = vadd.f32 %v8296_v10, %v6675_v38  ;;  %v7117_v36 = vld [vmem:[%s7369_s25 + $0x3e8] sm:$0xff]  }
 0x216   : > { %v3371_v46 = vpop.f32.mrf.mxu0  ;;  %v4395_v47 = vpop.f32.mrf.mxu1  ;;  %v7118_v37 = vld [vmem:[%s7369_s25 + $0x7e8] sm:$0xff]  }
 0x217   : > { %5010 = vst [vmem:[%s7584_s28 + $0x458] sm:$0xff] %v3380_v41  ;;  %5266 = vst [vmem:[%s7584_s28 + $0xc58] sm:$0xff] %v4404_v43  ;;  %v3372_v48 = vadd.f32 %v8296_v10, %v3371_v46  ;;  %v4396_v49 = vadd.f32 %v8296_v10, %v4395_v47  ;;  %v7120_v41 = vld [vmem:[%s7369_s25 + $0x7f0] sm:$0xff]  }
 0x218   : > { %v6422_v50 = vpop.f32.mrf.mxu0  ;;  %6517 = vmatmul.mubr.msk.bf16.gmra.mxu0 %vm2017_vm1, %v7105_v39  ;;  %v6678_v51 = vpop.f32.mrf.mxu1  ;;  %6773 = vmatmul.mubr.msk.bf16.gmra.mxu1 %vm2017_vm1, %v7106_v40  ;;  %v7119_v40 = vld [vmem:[%s7369_s25 + $0x3f0] sm:$0xff]  }
 0x219   : > { %5008 = vst [vmem:[%s7584_s28 + $0x448] sm:$0xff] %v3372_v48  ;;  %5264 = vst [vmem:[%s7584_s28 + $0xc48] sm:$0xff] %v4396_v49  ;;  %v3393_v52 = vadd.f32 %v8296_v10, %v6422_v50  ;;  %v4417_v53 = vadd.f32 %v8296_v10, %v6678_v51  ;;  %6520 = vmatprep.mubr.msk.bf16.mxu0 %vm2017_vm1, %v7107_v44  ;;  %6776 = vmatprep.mubr.msk.bf16.mxu1 %vm2017_vm1, %v7108_v45 }
 0x21a   : > { %v3384_v54 = vpop.f32.mrf.mxu0  ;;  %v4408_v55 = vpop.f32.mrf.mxu1 }
 0x21b   : > { %5013 = vst [vmem:[%s7584_s28 + $0x470] sm:$0xff] %v3393_v52  ;;  %5269 = vst [vmem:[%s7584_s28 + $0xc70] sm:$0xff] %v4417_v53  ;;  %v3385_v56 = vadd.f32 %v8296_v10, %v3384_v54  ;;  %v4409_v57 = vadd.f32 %v8296_v10, %v4408_v55 }
 0x21c   : > { %v6423_v58 = vpop.f32.mrf.mxu0  ;;  %v6679_v59 = vpop.f32.mrf.mxu1 }
 0x21d   : > { %5011 = vst [vmem:[%s7584_s28 + $0x460] sm:$0xff] %v3385_v56  ;;  %5267 = vst [vmem:[%s7584_s28 + $0xc60] sm:$0xff] %v4409_v57  ;;  %v3396_v62 = vadd.f32 %v8296_v10, %v6423_v58  ;;  %v4420_v63 = vadd.f32 %v8296_v10, %v6679_v59  ;;  %v7121_v57 = vld [vmem:[%s7369_s25 + $0x3f8] sm:$0xff]  }
 0x21e   : > { %v3387_v2 = vpop.f32.mrf.mxu0  ;;  %v4411_v3 = vpop.f32.mrf.mxu1  ;;  %v7122_v58 = vld [vmem:[%s7369_s25 + $0x7f8] sm:$0xff]  }
 0x21f   : > { %5014 = vst [vmem:[%s7584_s28 + $0x478] sm:$0xff] %v3396_v62  ;;  %5270 = vst [vmem:[%s7584_s28 + $0xc78] sm:$0xff] %v4420_v63  ;;  %v3388_v4 = vadd.f32 %v8296_v10, %v3387_v2  ;;  %v4412_v6 = vadd.f32 %v8296_v10, %v4411_v3 }
 0x220   : > { %v6426_v7 = vpop.f32.mrf.mxu0  ;;  %6521 = vmatmul.mubr.msk.bf16.gmra.mxu0 %vm2017_vm1, %v7109_v60  ;;  %v6682_v8 = vpop.f32.mrf.mxu1  ;;  %6777 = vmatmul.mubr.msk.bf16.gmra.mxu1 %vm2017_vm1, %v7110_v61 }
 0x221   : > { %5012 = vst [vmem:[%s7584_s28 + $0x468] sm:$0xff] %v3388_v4  ;;  %5268 = vst [vmem:[%s7584_s28 + $0xc68] sm:$0xff] %v4412_v6  ;;  %v3409_v9 = vadd.f32 %v8296_v10, %v6426_v7  ;;  %v4433_v42 = vadd.f32 %v8296_v10, %v6682_v8  ;;  %6524 = vmatprep.mubr.msk.bf16.mxu0 %vm2017_vm1, %v7111_v0  ;;  %6780 = vmatprep.mubr.msk.bf16.mxu1 %vm2017_vm1, %v7112_v1 }
 0x222   : > { %v3400_v11 = vpop.f32.mrf.mxu0  ;;  %v4424_v12 = vpop.f32.mrf.mxu1 }
 0x223   : > { %5017 = vst [vmem:[%s7584_s28 + $0x490] sm:$0xff] %v3409_v9  ;;  %5273 = vst [vmem:[%s7584_s28 + $0xc90] sm:$0xff] %v4433_v42  ;;  %v3401_v13 = vadd.f32 %v8296_v10, %v3400_v11  ;;  %v4425_v14 = vadd.f32 %v8296_v10, %v4424_v12 }
 0x224   : > { %v6427_v5 = vpop.f32.mrf.mxu0  ;;  %v6683_v15 = vpop.f32.mrf.mxu1 }
 0x225   : > { %5015 = vst [vmem:[%s7584_s28 + $0x480] sm:$0xff] %v3401_v13  ;;  %5271 = vst [vmem:[%s7584_s28 + $0xc80] sm:$0xff] %v4425_v14  ;;  %v3412_v18 = vadd.f32 %v8296_v10, %v6427_v5  ;;  %v4436_v19 = vadd.f32 %v8296_v10, %v6683_v15 }
 0x226   : > { %v3403_v22 = vpop.f32.mrf.mxu0  ;;  %v4427_v23 = vpop.f32.mrf.mxu1 }
 0x227   : > { %5018 = vst [vmem:[%s7584_s28 + $0x498] sm:$0xff] %v3412_v18  ;;  %5274 = vst [vmem:[%s7584_s28 + $0xc98] sm:$0xff] %v4436_v19  ;;  %v3404_v24 = vadd.f32 %v8296_v10, %v3403_v22  ;;  %v4428_v25 = vadd.f32 %v8296_v10, %v4427_v23 }
 0x228   : > { %v6430_v26 = vpop.f32.mrf.mxu0  ;;  %6525 = vmatmul.mubr.msk.bf16.gmra.mxu0 %vm2017_vm1, %v7113_v16  ;;  %v6686_v27 = vpop.f32.mrf.mxu1  ;;  %6781 = vmatmul.mubr.msk.bf16.gmra.mxu1 %vm2017_vm1, %v7114_v17 }
 0x229   : > { %5016 = vst [vmem:[%s7584_s28 + $0x488] sm:$0xff] %v3404_v24  ;;  %5272 = vst [vmem:[%s7584_s28 + $0xc88] sm:$0xff] %v4428_v25  ;;  %v3425_v28 = vadd.f32 %v8296_v10, %v6430_v26  ;;  %v4449_v29 = vadd.f32 %v8296_v10, %v6686_v27  ;;  %6528 = vmatprep.mubr.msk.bf16.mxu0 %vm2017_vm1, %v7115_v20  ;;  %6784 = vmatprep.mubr.msk.bf16.mxu1 %vm2017_vm1, %v7116_v21 }
 0x22a   : > { %v3416_v30 = vpop.f32.mrf.mxu0  ;;  %v4440_v31 = vpop.f32.mrf.mxu1 }
 0x22b   : > { %5021 = vst [vmem:[%s7584_s28 + $0x4b0] sm:$0xff] %v3425_v28  ;;  %5277 = vst [vmem:[%s7584_s28 + $0xcb0] sm:$0xff] %v4449_v29  ;;  %v3417_v32 = vadd.f32 %v8296_v10, %v3416_v30  ;;  %v4441_v33 = vadd.f32 %v8296_v10, %v4440_v31 }
 0x22c   : > { %v6431_v34 = vpop.f32.mrf.mxu0  ;;  %v6687_v35 = vpop.f32.mrf.mxu1 }
 0x22d   : > { %5019 = vst [vmem:[%s7584_s28 + $0x4a0] sm:$0xff] %v3417_v32  ;;  %5275 = vst [vmem:[%s7584_s28 + $0xca0] sm:$0xff] %v4441_v33  ;;  %v3428_v38 = vadd.f32 %v8296_v10, %v6431_v34  ;;  %v4452_v39 = vadd.f32 %v8296_v10, %v6687_v35 }
 0x22e   : > { %v3419_v43 = vpop.f32.mrf.mxu0  ;;  %v4443_v44 = vpop.f32.mrf.mxu1 }
 0x22f   : > { %5022 = vst [vmem:[%s7584_s28 + $0x4b8] sm:$0xff] %v3428_v38  ;;  %5278 = vst [vmem:[%s7584_s28 + $0xcb8] sm:$0xff] %v4452_v39  ;;  %v3420_v45 = vadd.f32 %v8296_v10, %v3419_v43  ;;  %v4444_v46 = vadd.f32 %v8296_v10, %v4443_v44 }
 0x230   : > { %v6434_v47 = vpop.f32.mrf.mxu0  ;;  %6529 = vmatmul.mubr.msk.bf16.gmra.mxu0 %vm2017_vm1, %v7117_v36  ;;  %v6690_v48 = vpop.f32.mrf.mxu1  ;;  %6785 = vmatmul.mubr.msk.bf16.gmra.mxu1 %vm2017_vm1, %v7118_v37 }
 0x231   : > { %5020 = vst [vmem:[%s7584_s28 + $0x4a8] sm:$0xff] %v3420_v45  ;;  %5276 = vst [vmem:[%s7584_s28 + $0xca8] sm:$0xff] %v4444_v46  ;;  %v3441_v49 = vadd.f32 %v8296_v10, %v6434_v47  ;;  %v4465_v50 = vadd.f32 %v8296_v10, %v6690_v48  ;;  %6532 = vmatprep.mubr.msk.bf16.mxu0 %vm2017_vm1, %v7119_v40  ;;  %6788 = vmatprep.mubr.msk.bf16.mxu1 %vm2017_vm1, %v7120_v41 }
 0x232   : > { %v3432_v51 = vpop.f32.mrf.mxu0  ;;  %v4456_v52 = vpop.f32.mrf.mxu1 }
 0x233   : > { %5025 = vst [vmem:[%s7584_s28 + $0x4d0] sm:$0xff] %v3441_v49  ;;  %5281 = vst [vmem:[%s7584_s28 + $0xcd0] sm:$0xff] %v4465_v50  ;;  %v3433_v53 = vadd.f32 %v8296_v10, %v3432_v51  ;;  %v4457_v54 = vadd.f32 %v8296_v10, %v4456_v52 }
 0x234   : > { %v6435_v55 = vpop.f32.mrf.mxu0  ;;  %v6691_v56 = vpop.f32.mrf.mxu1 }
 0x235   : > { %5023 = vst [vmem:[%s7584_s28 + $0x4c0] sm:$0xff] %v3433_v53  ;;  %5279 = vst [vmem:[%s7584_s28 + $0xcc0] sm:$0xff] %v4457_v54  ;;  %v3444_v59 = vadd.f32 %v8296_v10, %v6435_v55  ;;  %v4468_v60 = vadd.f32 %v8296_v10, %v6691_v56 }
 0x236   : > { %v3435_v61 = vpop.f32.mrf.mxu0  ;;  %v4459_v62 = vpop.f32.mrf.mxu1 }
 0x237   : > { %5026 = vst [vmem:[%s7584_s28 + $0x4d8] sm:$0xff] %v3444_v59  ;;  %5282 = vst [vmem:[%s7584_s28 + $0xcd8] sm:$0xff] %v4468_v60  ;;  %v3436_v63 = vadd.f32 %v8296_v10, %v3435_v61  ;;  %v4460_v0 = vadd.f32 %v8296_v10, %v4459_v62 }
 0x238   : > { %v6438_v1 = vpop.f32.mrf.mxu0  ;;  %6533 = vmatmul.mubr.msk.bf16.gmra.mxu0 %vm2017_vm1, %v7121_v57  ;;  %v6694_v2 = vpop.f32.mrf.mxu1  ;;  %6789 = vmatmul.mubr.msk.bf16.gmra.mxu1 %vm2017_vm1, %v7122_v58 }
 0x239   : > { %5024 = vst [vmem:[%s7584_s28 + $0x4c8] sm:$0xff] %v3436_v63  ;;  %5280 = vst [vmem:[%s7584_s28 + $0xcc8] sm:$0xff] %v4460_v0  ;;  %v3457_v3 = vadd.f32 %v8296_v10, %v6438_v1  ;;  %v4481_v4 = vadd.f32 %v8296_v10, %v6694_v2 }
 0x23a   : > { %v3448_v6 = vpop.f32.mrf.mxu0  ;;  %v4472_v7 = vpop.f32.mrf.mxu1 }
 0x23b   : > { %5029 = vst [vmem:[%s7584_s28 + $0x4f0] sm:$0xff] %v3457_v3  ;;  %5285 = vst [vmem:[%s7584_s28 + $0xcf0] sm:$0xff] %v4481_v4  ;;  %v3449_v8 = vadd.f32 %v8296_v10, %v3448_v6  ;;  %v4473_v9 = vadd.f32 %v8296_v10, %v4472_v7 }
 0x23c   : > { %v6439_v42 = vpop.f32.mrf.mxu0  ;;  %v6695_v11 = vpop.f32.mrf.mxu1 }
 0x23d   : > { %5027 = vst [vmem:[%s7584_s28 + $0x4e0] sm:$0xff] %v3449_v8  ;;  %5283 = vst [vmem:[%s7584_s28 + $0xce0] sm:$0xff] %v4473_v9  ;;  %v3460_v12 = vadd.f32 %v8296_v10, %v6439_v42  ;;  %v4484_v13 = vadd.f32 %v8296_v10, %v6695_v11 }
 0x23e   : > { %v3451_v14 = vpop.f32.mrf.mxu0  ;;  %v4475_v5 = vpop.f32.mrf.mxu1 }
 0x23f   : > { %5030 = vst [vmem:[%s7584_s28 + $0x4f8] sm:$0xff] %v3460_v12  ;;  %5286 = vst [vmem:[%s7584_s28 + $0xcf8] sm:$0xff] %v4484_v13  ;;  %v3452_v15 = vadd.f32 %v8296_v10, %v3451_v14  ;;  %v4476_v16 = vadd.f32 %v8296_v10, %v4475_v5 }
 0x240   : > { %v6442_v17 = vpop.f32.mrf.mxu0  ;;  %v6698_v18 = vpop.f32.mrf.mxu1 }
 0x241   : > { %5028 = vst [vmem:[%s7584_s28 + $0x4e8] sm:$0xff] %v3452_v15  ;;  %5284 = vst [vmem:[%s7584_s28 + $0xce8] sm:$0xff] %v4476_v16  ;;  %v3473_v19 = vadd.f32 %v8296_v10, %v6442_v17  ;;  %v4497_v20 = vadd.f32 %v8296_v10, %v6698_v18 }
 0x242   : > { %v3464_v21 = vpop.f32.mrf.mxu0  ;;  %v4488_v22 = vpop.f32.mrf.mxu1 }
 0x243   : > { %5033 = vst [vmem:[%s7584_s28 + $0x510] sm:$0xff] %v3473_v19  ;;  %5289 = vst [vmem:[%s7584_s28 + $0xd10] sm:$0xff] %v4497_v20  ;;  %v3465_v23 = vadd.f32 %v8296_v10, %v3464_v21  ;;  %v4489_v24 = vadd.f32 %v8296_v10, %v4488_v22 }
 0x244   : > { %v6443_v25 = vpop.f32.mrf.mxu0  ;;  %v6699_v26 = vpop.f32.mrf.mxu1 }
 0x245   : > { %5031 = vst [vmem:[%s7584_s28 + $0x500] sm:$0xff] %v3465_v23  ;;  %5287 = vst [vmem:[%s7584_s28 + $0xd00] sm:$0xff] %v4489_v24  ;;  %v3476_v27 = vadd.f32 %v8296_v10, %v6443_v25  ;;  %v4500_v28 = vadd.f32 %v8296_v10, %v6699_v26 }
 0x246   : > { %v3467_v29 = vpop.f32.mrf.mxu0  ;;  %v4491_v30 = vpop.f32.mrf.mxu1 }
 0x247   : > { %5034 = vst [vmem:[%s7584_s28 + $0x518] sm:$0xff] %v3476_v27  ;;  %5290 = vst [vmem:[%s7584_s28 + $0xd18] sm:$0xff] %v4500_v28  ;;  %v3468_v31 = vadd.f32 %v8296_v10, %v3467_v29  ;;  %v4492_v32 = vadd.f32 %v8296_v10, %v4491_v30 }
 0x248   : > { %v6446_v33 = vpop.f32.mrf.mxu0  ;;  %v6702_v34 = vpop.f32.mrf.mxu1 }
 0x249   : > { %5032 = vst [vmem:[%s7584_s28 + $0x508] sm:$0xff] %v3468_v31  ;;  %5288 = vst [vmem:[%s7584_s28 + $0xd08] sm:$0xff] %v4492_v32  ;;  %v3489_v35 = vadd.f32 %v8296_v10, %v6446_v33  ;;  %v4513_v36 = vadd.f32 %v8296_v10, %v6702_v34 }
 0x24a   : > { %v3480_v37 = vpop.f32.mrf.mxu0  ;;  %v4504_v38 = vpop.f32.mrf.mxu1 }
 0x24b   : > { %5037 = vst [vmem:[%s7584_s28 + $0x530] sm:$0xff] %v3489_v35  ;;  %5293 = vst [vmem:[%s7584_s28 + $0xd30] sm:$0xff] %v4513_v36  ;;  %v3481_v39 = vadd.f32 %v8296_v10, %v3480_v37  ;;  %v4505_v40 = vadd.f32 %v8296_v10, %v4504_v38 }
 0x24c   : > { %v6447_v41 = vpop.f32.mrf.mxu0  ;;  %v6703_v43 = vpop.f32.mrf.mxu1 }
 0x24d   : > { %5035 = vst [vmem:[%s7584_s28 + $0x520] sm:$0xff] %v3481_v39  ;;  %5291 = vst [vmem:[%s7584_s28 + $0xd20] sm:$0xff] %v4505_v40  ;;  %v3492_v44 = vadd.f32 %v8296_v10, %v6447_v41  ;;  %v4516_v45 = vadd.f32 %v8296_v10, %v6703_v43 }
 0x24e   : > { %v3483_v46 = vpop.f32.mrf.mxu0  ;;  %v4507_v47 = vpop.f32.mrf.mxu1 }
 0x24f   : > { %5038 = vst [vmem:[%s7584_s28 + $0x538] sm:$0xff] %v3492_v44  ;;  %5294 = vst [vmem:[%s7584_s28 + $0xd38] sm:$0xff] %v4516_v45  ;;  %v3484_v48 = vadd.f32 %v8296_v10, %v3483_v46  ;;  %v4508_v49 = vadd.f32 %v8296_v10, %v4507_v47 }
 0x250   : > { %v6450_v50 = vpop.f32.mrf.mxu0  ;;  %v6706_v51 = vpop.f32.mrf.mxu1 }
 0x251   : > { %5036 = vst [vmem:[%s7584_s28 + $0x528] sm:$0xff] %v3484_v48  ;;  %5292 = vst [vmem:[%s7584_s28 + $0xd28] sm:$0xff] %v4508_v49  ;;  %v3505_v52 = vadd.f32 %v8296_v10, %v6450_v50  ;;  %v4529_v53 = vadd.f32 %v8296_v10, %v6706_v51 }
 0x252   : > { %v3496_v54 = vpop.f32.mrf.mxu0  ;;  %v4520_v55 = vpop.f32.mrf.mxu1 }
 0x253   : > { %5041 = vst [vmem:[%s7584_s28 + $0x550] sm:$0xff] %v3505_v52  ;;  %5297 = vst [vmem:[%s7584_s28 + $0xd50] sm:$0xff] %v4529_v53  ;;  %v3497_v56 = vadd.f32 %v8296_v10, %v3496_v54  ;;  %v4521_v57 = vadd.f32 %v8296_v10, %v4520_v55 }
 0x254   : > { %v6451_v58 = vpop.f32.mrf.mxu0  ;;  %v6707_v59 = vpop.f32.mrf.mxu1 }
 0x255   : > { %5039 = vst [vmem:[%s7584_s28 + $0x540] sm:$0xff] %v3497_v56  ;;  %5295 = vst [vmem:[%s7584_s28 + $0xd40] sm:$0xff] %v4521_v57  ;;  %v3508_v60 = vadd.f32 %v8296_v10, %v6451_v58  ;;  %v4532_v61 = vadd.f32 %v8296_v10, %v6707_v59 }
 0x256   : > { %v3499_v62 = vpop.f32.mrf.mxu0  ;;  %v4523_v63 = vpop.f32.mrf.mxu1 }
 0x257   : > { %5042 = vst [vmem:[%s7584_s28 + $0x558] sm:$0xff] %v3508_v60  ;;  %5298 = vst [vmem:[%s7584_s28 + $0xd58] sm:$0xff] %v4532_v61  ;;  %v3500_v0 = vadd.f32 %v8296_v10, %v3499_v62  ;;  %v4524_v1 = vadd.f32 %v8296_v10, %v4523_v63 }
 0x258   : > { %v6454_v2 = vpop.f32.mrf.mxu0  ;;  %v6710_v3 = vpop.f32.mrf.mxu1 }
 0x259   : > { %5040 = vst [vmem:[%s7584_s28 + $0x548] sm:$0xff] %v3500_v0  ;;  %5296 = vst [vmem:[%s7584_s28 + $0xd48] sm:$0xff] %v4524_v1  ;;  %v3521_v4 = vadd.f32 %v8296_v10, %v6454_v2  ;;  %v4545_v6 = vadd.f32 %v8296_v10, %v6710_v3 }
 0x25a   : > { %v3512_v7 = vpop.f32.mrf.mxu0  ;;  %v4536_v8 = vpop.f32.mrf.mxu1 }
 0x25b   : > { %5045 = vst [vmem:[%s7584_s28 + $0x570] sm:$0xff] %v3521_v4  ;;  %5301 = vst [vmem:[%s7584_s28 + $0xd70] sm:$0xff] %v4545_v6  ;;  %v3513_v9 = vadd.f32 %v8296_v10, %v3512_v7  ;;  %v4537_v42 = vadd.f32 %v8296_v10, %v4536_v8 }
 0x25c   : > { %v6455_v11 = vpop.f32.mrf.mxu0  ;;  %v6711_v12 = vpop.f32.mrf.mxu1 }
 0x25d   : > { %5043 = vst [vmem:[%s7584_s28 + $0x560] sm:$0xff] %v3513_v9  ;;  %5299 = vst [vmem:[%s7584_s28 + $0xd60] sm:$0xff] %v4537_v42  ;;  %v3524_v13 = vadd.f32 %v8296_v10, %v6455_v11  ;;  %v4548_v14 = vadd.f32 %v8296_v10, %v6711_v12 }
 0x25e   : > { %v3515_v5 = vpop.f32.mrf.mxu0  ;;  %v4539_v15 = vpop.f32.mrf.mxu1 }
 0x25f   : > { %5046 = vst [vmem:[%s7584_s28 + $0x578] sm:$0xff] %v3524_v13  ;;  %5302 = vst [vmem:[%s7584_s28 + $0xd78] sm:$0xff] %v4548_v14  ;;  %v3516_v16 = vadd.f32 %v8296_v10, %v3515_v5  ;;  %v4540_v17 = vadd.f32 %v8296_v10, %v4539_v15 }
 0x260   : > { %v6458_v18 = vpop.f32.mrf.mxu0  ;;  %v6714_v19 = vpop.f32.mrf.mxu1 }
 0x261   : > { %5044 = vst [vmem:[%s7584_s28 + $0x568] sm:$0xff] %v3516_v16  ;;  %5300 = vst [vmem:[%s7584_s28 + $0xd68] sm:$0xff] %v4540_v17  ;;  %v3537_v20 = vadd.f32 %v8296_v10, %v6458_v18  ;;  %v4561_v21 = vadd.f32 %v8296_v10, %v6714_v19 }
 0x262   : > { %v3528_v22 = vpop.f32.mrf.mxu0  ;;  %v4552_v23 = vpop.f32.mrf.mxu1 }
 0x263   : > { %5049 = vst [vmem:[%s7584_s28 + $0x590] sm:$0xff] %v3537_v20  ;;  %5305 = vst [vmem:[%s7584_s28 + $0xd90] sm:$0xff] %v4561_v21  ;;  %v3529_v24 = vadd.f32 %v8296_v10, %v3528_v22  ;;  %v4553_v25 = vadd.f32 %v8296_v10, %v4552_v23 }
 0x264   : > { %v6459_v26 = vpop.f32.mrf.mxu0  ;;  %v6715_v27 = vpop.f32.mrf.mxu1 }
 0x265   : > { %5047 = vst [vmem:[%s7584_s28 + $0x580] sm:$0xff] %v3529_v24  ;;  %5303 = vst [vmem:[%s7584_s28 + $0xd80] sm:$0xff] %v4553_v25  ;;  %v3540_v28 = vadd.f32 %v8296_v10, %v6459_v26  ;;  %v4564_v29 = vadd.f32 %v8296_v10, %v6715_v27  ;;  %v8666_v25 = vld [vmem:[#allocation5] ss:$0 sm:$0xff] }
 0x266   : > { %v3531_v30 = vpop.f32.mrf.mxu0  ;;  %v4555_v31 = vpop.f32.mrf.mxu1 }
 0x267   : > { %5050 = vst [vmem:[%s7584_s28 + $0x598] sm:$0xff] %v3540_v28  ;;  %5306 = vst [vmem:[%s7584_s28 + $0xd98] sm:$0xff] %v4564_v29  ;;  %v3532_v32 = vadd.f32 %v8296_v10, %v3531_v30  ;;  %v4556_v33 = vadd.f32 %v8296_v10, %v4555_v31 }
 0x268   : > { %v6462_v34 = vpop.f32.mrf.mxu0  ;;  %v6718_v35 = vpop.f32.mrf.mxu1 }
 0x269   : > { %5048 = vst [vmem:[%s7584_s28 + $0x588] sm:$0xff] %v3532_v32  ;;  %5304 = vst [vmem:[%s7584_s28 + $0xd88] sm:$0xff] %v4556_v33  ;;  %v3553_v36 = vadd.f32 %v8296_v10, %v6462_v34  ;;  %v4577_v37 = vadd.f32 %v8296_v10, %v6718_v35 }
 0x26a   : > { %v3544_v38 = vpop.f32.mrf.mxu0  ;;  %v4568_v39 = vpop.f32.mrf.mxu1 }
 0x26b   : > { %5053 = vst [vmem:[%s7584_s28 + $0x5b0] sm:$0xff] %v3553_v36  ;;  %5309 = vst [vmem:[%s7584_s28 + $0xdb0] sm:$0xff] %v4577_v37  ;;  %v3545_v40 = vadd.f32 %v8296_v10, %v3544_v38  ;;  %v4569_v41 = vadd.f32 %v8296_v10, %v4568_v39 }
 0x26c   : > { %v6463_v43 = vpop.f32.mrf.mxu0  ;;  %v6719_v44 = vpop.f32.mrf.mxu1 }
 0x26d   : > { %5051 = vst [vmem:[%s7584_s28 + $0x5a0] sm:$0xff] %v3545_v40  ;;  %5307 = vst [vmem:[%s7584_s28 + $0xda0] sm:$0xff] %v4569_v41  ;;  %v3556_v45 = vadd.f32 %v8296_v10, %v6463_v43  ;;  %v4580_v46 = vadd.f32 %v8296_v10, %v6719_v44 }
 0x26e   : > { %v3547_v47 = vpop.f32.mrf.mxu0  ;;  %v4571_v48 = vpop.f32.mrf.mxu1 }
 0x26f   : > { %5054 = vst [vmem:[%s7584_s28 + $0x5b8] sm:$0xff] %v3556_v45  ;;  %5310 = vst [vmem:[%s7584_s28 + $0xdb8] sm:$0xff] %v4580_v46  ;;  %v3548_v49 = vadd.f32 %v8296_v10, %v3547_v47  ;;  %v4572_v50 = vadd.f32 %v8296_v10, %v4571_v48 }
 0x270   : > { %v6466_v51 = vpop.f32.mrf.mxu0  ;;  %v6722_v52 = vpop.f32.mrf.mxu1 }
 0x271   : > { %5052 = vst [vmem:[%s7584_s28 + $0x5a8] sm:$0xff] %v3548_v49  ;;  %5308 = vst [vmem:[%s7584_s28 + $0xda8] sm:$0xff] %v4572_v50  ;;  %v3569_v53 = vadd.f32 %v8296_v10, %v6466_v51  ;;  %v4593_v54 = vadd.f32 %v8296_v10, %v6722_v52 }
 0x272   : > { %v3560_v55 = vpop.f32.mrf.mxu0  ;;  %v4584_v56 = vpop.f32.mrf.mxu1 }
 0x273   : > { %5057 = vst [vmem:[%s7584_s28 + $0x5d0] sm:$0xff] %v3569_v53  ;;  %5313 = vst [vmem:[%s7584_s28 + $0xdd0] sm:$0xff] %v4593_v54  ;;  %v3561_v57 = vadd.f32 %v8296_v10, %v3560_v55  ;;  %v4585_v58 = vadd.f32 %v8296_v10, %v4584_v56 }
 0x274   : > { %v6467_v59 = vpop.f32.mrf.mxu0  ;;  %v6723_v60 = vpop.f32.mrf.mxu1 }
 0x275   : > { %5055 = vst [vmem:[%s7584_s28 + $0x5c0] sm:$0xff] %v3561_v57  ;;  %5311 = vst [vmem:[%s7584_s28 + $0xdc0] sm:$0xff] %v4585_v58  ;;  %v3572_v61 = vadd.f32 %v8296_v10, %v6467_v59  ;;  %v4596_v62 = vadd.f32 %v8296_v10, %v6723_v60 }
 0x276   : > { %v3563_v63 = vpop.f32.mrf.mxu0  ;;  %v4587_v0 = vpop.f32.mrf.mxu1 }
 0x277   : > { %5058 = vst [vmem:[%s7584_s28 + $0x5d8] sm:$0xff] %v3572_v61  ;;  %5314 = vst [vmem:[%s7584_s28 + $0xdd8] sm:$0xff] %v4596_v62  ;;  %v3564_v1 = vadd.f32 %v8296_v10, %v3563_v63  ;;  %v4588_v2 = vadd.f32 %v8296_v10, %v4587_v0 }
 0x278   : > { %v6470_v3 = vpop.f32.mrf.mxu0  ;;  %v6726_v4 = vpop.f32.mrf.mxu1 }
 0x279   : > { %5056 = vst [vmem:[%s7584_s28 + $0x5c8] sm:$0xff] %v3564_v1  ;;  %5312 = vst [vmem:[%s7584_s28 + $0xdc8] sm:$0xff] %v4588_v2  ;;  %v3585_v6 = vadd.f32 %v8296_v10, %v6470_v3  ;;  %v4609_v7 = vadd.f32 %v8296_v10, %v6726_v4 }
 0x27a   : > { %v3576_v8 = vpop.f32.mrf.mxu0  ;;  %v4600_v9 = vpop.f32.mrf.mxu1 }
 0x27b   : > { %5061 = vst [vmem:[%s7584_s28 + $0x5f0] sm:$0xff] %v3585_v6  ;;  %5317 = vst [vmem:[%s7584_s28 + $0xdf0] sm:$0xff] %v4609_v7  ;;  %v3577_v42 = vadd.f32 %v8296_v10, %v3576_v8  ;;  %v4601_v11 = vadd.f32 %v8296_v10, %v4600_v9 }
 0x27c   : > { %v6471_v12 = vpop.f32.mrf.mxu0  ;;  %v6727_v13 = vpop.f32.mrf.mxu1 }
 0x27d   : > { %5059 = vst [vmem:[%s7584_s28 + $0x5e0] sm:$0xff] %v3577_v42  ;;  %5315 = vst [vmem:[%s7584_s28 + $0xde0] sm:$0xff] %v4601_v11  ;;  %v3588_v14 = vadd.f32 %v8296_v10, %v6471_v12  ;;  %v4612_v5 = vadd.f32 %v8296_v10, %v6727_v13 }
 0x27e   : > { %v3579_v15 = vpop.f32.mrf.mxu0  ;;  %v4603_v16 = vpop.f32.mrf.mxu1 }
 0x27f   : > { %5062 = vst [vmem:[%s7584_s28 + $0x5f8] sm:$0xff] %v3588_v14  ;;  %5318 = vst [vmem:[%s7584_s28 + $0xdf8] sm:$0xff] %v4612_v5  ;;  %v3580_v17 = vadd.f32 %v8296_v10, %v3579_v15  ;;  %v4604_v18 = vadd.f32 %v8296_v10, %v4603_v16 }
 0x280   : > { %v6474_v19 = vpop.f32.mrf.mxu0  ;;  %v6730_v20 = vpop.f32.mrf.mxu1 }
 0x281   : > { %5060 = vst [vmem:[%s7584_s28 + $0x5e8] sm:$0xff] %v3580_v17  ;;  %5316 = vst [vmem:[%s7584_s28 + $0xde8] sm:$0xff] %v4604_v18  ;;  %v3601_v21 = vadd.f32 %v8296_v10, %v6474_v19  ;;  %v4625_v22 = vadd.f32 %v8296_v10, %v6730_v20 }
 0x282   : > { %v3592_v23 = vpop.f32.mrf.mxu0  ;;  %v4616_v24 = vpop.f32.mrf.mxu1 }
 0x283   : > { %5065 = vst [vmem:[%s7584_s28 + $0x610] sm:$0xff] %v3601_v21  ;;  %5321 = vst [vmem:[%s7584_s28 + $0xe10] sm:$0xff] %v4625_v22  ;;  %v3593_v26 = vadd.f32 %v8666_v25, %v3592_v23  ;;  %v4617_v27 = vadd.f32 %v8666_v25, %v4616_v24 }
 0x284   : > { %v6475_v28 = vpop.f32.mrf.mxu0  ;;  %v6731_v29 = vpop.f32.mrf.mxu1 }
 0x285   : > { %5063 = vst [vmem:[%s7584_s28 + $0x600] sm:$0xff] %v3593_v26  ;;  %5319 = vst [vmem:[%s7584_s28 + $0xe00] sm:$0xff] %v4617_v27  ;;  %v3604_v10 = vadd.f32 %v8666_v25, %v6475_v28  ;;  %v4628_v30 = vadd.f32 %v8666_v25, %v6731_v29 }
 0x286   : > { %v3595_v31 = vpop.f32.mrf.mxu0  ;;  %v4619_v32 = vpop.f32.mrf.mxu1 }
 0x287   : > { %5066 = vst [vmem:[%s7584_s28 + $0x618] sm:$0xff] %v3604_v10  ;;  %5322 = vst [vmem:[%s7584_s28 + $0xe18] sm:$0xff] %v4628_v30  ;;  %v3596_v33 = vadd.f32 %v8666_v25, %v3595_v31  ;;  %v4620_v34 = vadd.f32 %v8666_v25, %v4619_v32 }
 0x288   : > { %v6478_v35 = vpop.f32.mrf.mxu0  ;;  %v6734_v36 = vpop.f32.mrf.mxu1 }
 0x289   : > { %5064 = vst [vmem:[%s7584_s28 + $0x608] sm:$0xff] %v3596_v33  ;;  %5320 = vst [vmem:[%s7584_s28 + $0xe08] sm:$0xff] %v4620_v34  ;;  %v3617_v37 = vadd.f32 %v8666_v25, %v6478_v35  ;;  %v4641_v38 = vadd.f32 %v8666_v25, %v6734_v36 }
 0x28a   : > { %v3608_v39 = vpop.f32.mrf.mxu0  ;;  %v4632_v40 = vpop.f32.mrf.mxu1 }
 0x28b   : > { %5069 = vst [vmem:[%s7584_s28 + $0x630] sm:$0xff] %v3617_v37  ;;  %5325 = vst [vmem:[%s7584_s28 + $0xe30] sm:$0xff] %v4641_v38  ;;  %v3609_v41 = vadd.f32 %v8666_v25, %v3608_v39  ;;  %v4633_v43 = vadd.f32 %v8666_v25, %v4632_v40 }
 0x28c   : > { %v6479_v44 = vpop.f32.mrf.mxu0  ;;  %v6735_v45 = vpop.f32.mrf.mxu1 }
 0x28d   : > { %5067 = vst [vmem:[%s7584_s28 + $0x620] sm:$0xff] %v3609_v41  ;;  %5323 = vst [vmem:[%s7584_s28 + $0xe20] sm:$0xff] %v4633_v43  ;;  %v3620_v46 = vadd.f32 %v8666_v25, %v6479_v44  ;;  %v4644_v47 = vadd.f32 %v8666_v25, %v6735_v45 }
 0x28e   : > { %v3611_v48 = vpop.f32.mrf.mxu0  ;;  %v4635_v49 = vpop.f32.mrf.mxu1 }
 0x28f   : > { %5070 = vst [vmem:[%s7584_s28 + $0x638] sm:$0xff] %v3620_v46  ;;  %5326 = vst [vmem:[%s7584_s28 + $0xe38] sm:$0xff] %v4644_v47  ;;  %v3612_v50 = vadd.f32 %v8666_v25, %v3611_v48  ;;  %v4636_v51 = vadd.f32 %v8666_v25, %v4635_v49 }
 0x290   : > { %v6482_v52 = vpop.f32.mrf.mxu0  ;;  %v6738_v53 = vpop.f32.mrf.mxu1 }
 0x291   : > { %5068 = vst [vmem:[%s7584_s28 + $0x628] sm:$0xff] %v3612_v50  ;;  %5324 = vst [vmem:[%s7584_s28 + $0xe28] sm:$0xff] %v4636_v51  ;;  %v3633_v54 = vadd.f32 %v8666_v25, %v6482_v52  ;;  %v4657_v55 = vadd.f32 %v8666_v25, %v6738_v53 }
 0x292   : > { %v3624_v56 = vpop.f32.mrf.mxu0  ;;  %v4648_v57 = vpop.f32.mrf.mxu1 }
 0x293   : > { %5073 = vst [vmem:[%s7584_s28 + $0x650] sm:$0xff] %v3633_v54  ;;  %5329 = vst [vmem:[%s7584_s28 + $0xe50] sm:$0xff] %v4657_v55  ;;  %v3625_v58 = vadd.f32 %v8666_v25, %v3624_v56  ;;  %v4649_v59 = vadd.f32 %v8666_v25, %v4648_v57 }
 0x294   : > { %v6483_v60 = vpop.f32.mrf.mxu0  ;;  %v6739_v61 = vpop.f32.mrf.mxu1 }
 0x295   : > { %5071 = vst [vmem:[%s7584_s28 + $0x640] sm:$0xff] %v3625_v58  ;;  %5327 = vst [vmem:[%s7584_s28 + $0xe40] sm:$0xff] %v4649_v59  ;;  %v3636_v62 = vadd.f32 %v8666_v25, %v6483_v60  ;;  %v4660_v63 = vadd.f32 %v8666_v25, %v6739_v61 }
 0x296   : > { %v3627_v0 = vpop.f32.mrf.mxu0  ;;  %v4651_v1 = vpop.f32.mrf.mxu1 }
 0x297   : > { %5074 = vst [vmem:[%s7584_s28 + $0x658] sm:$0xff] %v3636_v62  ;;  %5330 = vst [vmem:[%s7584_s28 + $0xe58] sm:$0xff] %v4660_v63  ;;  %v3628_v2 = vadd.f32 %v8666_v25, %v3627_v0  ;;  %v4652_v3 = vadd.f32 %v8666_v25, %v4651_v1 }
 0x298   : > { %v6486_v4 = vpop.f32.mrf.mxu0  ;;  %v6742_v6 = vpop.f32.mrf.mxu1 }
 0x299   : > { %5072 = vst [vmem:[%s7584_s28 + $0x648] sm:$0xff] %v3628_v2  ;;  %5328 = vst [vmem:[%s7584_s28 + $0xe48] sm:$0xff] %v4652_v3  ;;  %v3649_v7 = vadd.f32 %v8666_v25, %v6486_v4  ;;  %v4673_v8 = vadd.f32 %v8666_v25, %v6742_v6 }
 0x29a   : > { %v3640_v9 = vpop.f32.mrf.mxu0  ;;  %v4664_v42 = vpop.f32.mrf.mxu1 }
 0x29b   : > { %5077 = vst [vmem:[%s7584_s28 + $0x670] sm:$0xff] %v3649_v7  ;;  %5333 = vst [vmem:[%s7584_s28 + $0xe70] sm:$0xff] %v4673_v8  ;;  %v3641_v11 = vadd.f32 %v8666_v25, %v3640_v9  ;;  %v4665_v12 = vadd.f32 %v8666_v25, %v4664_v42 }
 0x29c   : > { %v6487_v13 = vpop.f32.mrf.mxu0  ;;  %v6743_v14 = vpop.f32.mrf.mxu1 }
 0x29d   : > { %5075 = vst [vmem:[%s7584_s28 + $0x660] sm:$0xff] %v3641_v11  ;;  %5331 = vst [vmem:[%s7584_s28 + $0xe60] sm:$0xff] %v4665_v12  ;;  %v3652_v5 = vadd.f32 %v8666_v25, %v6487_v13  ;;  %v4676_v15 = vadd.f32 %v8666_v25, %v6743_v14 }
 0x29e   : > { %v3643_v16 = vpop.f32.mrf.mxu0  ;;  %v4667_v17 = vpop.f32.mrf.mxu1 }
 0x29f   : > { %5078 = vst [vmem:[%s7584_s28 + $0x678] sm:$0xff] %v3652_v5  ;;  %5334 = vst [vmem:[%s7584_s28 + $0xe78] sm:$0xff] %v4676_v15  ;;  %v3644_v18 = vadd.f32 %v8666_v25, %v3643_v16  ;;  %v4668_v19 = vadd.f32 %v8666_v25, %v4667_v17 }
 0x2a0   : > { %v6490_v20 = vpop.f32.mrf.mxu0  ;;  %v6746_v21 = vpop.f32.mrf.mxu1 }
 0x2a1   : > { %5076 = vst [vmem:[%s7584_s28 + $0x668] sm:$0xff] %v3644_v18  ;;  %5332 = vst [vmem:[%s7584_s28 + $0xe68] sm:$0xff] %v4668_v19  ;;  %v3665_v22 = vadd.f32 %v8666_v25, %v6490_v20  ;;  %v4689_v23 = vadd.f32 %v8666_v25, %v6746_v21 }
 0x2a2   : > { %v3656_v24 = vpop.f32.mrf.mxu0  ;;  %v4680_v26 = vpop.f32.mrf.mxu1 }
 0x2a3   : > { %5081 = vst [vmem:[%s7584_s28 + $0x690] sm:$0xff] %v3665_v22  ;;  %5337 = vst [vmem:[%s7584_s28 + $0xe90] sm:$0xff] %v4689_v23  ;;  %v3657_v27 = vadd.f32 %v8666_v25, %v3656_v24  ;;  %v4681_v28 = vadd.f32 %v8666_v25, %v4680_v26 }
 0x2a4   : > { %v6491_v29 = vpop.f32.mrf.mxu0  ;;  %v6747_v10 = vpop.f32.mrf.mxu1 }
 0x2a5   : > { %5079 = vst [vmem:[%s7584_s28 + $0x680] sm:$0xff] %v3657_v27  ;;  %5335 = vst [vmem:[%s7584_s28 + $0xe80] sm:$0xff] %v4681_v28  ;;  %v3668_v30 = vadd.f32 %v8666_v25, %v6491_v29  ;;  %v4692_v31 = vadd.f32 %v8666_v25, %v6747_v10 }
 0x2a6   : > { %v3659_v32 = vpop.f32.mrf.mxu0  ;;  %v4683_v33 = vpop.f32.mrf.mxu1 }
 0x2a7   : > { %5082 = vst [vmem:[%s7584_s28 + $0x698] sm:$0xff] %v3668_v30  ;;  %5338 = vst [vmem:[%s7584_s28 + $0xe98] sm:$0xff] %v4692_v31  ;;  %v3660_v34 = vadd.f32 %v8666_v25, %v3659_v32  ;;  %v4684_v35 = vadd.f32 %v8666_v25, %v4683_v33 }
 0x2a8   : > { %v6494_v36 = vpop.f32.mrf.mxu0  ;;  %v6750_v37 = vpop.f32.mrf.mxu1 }
 0x2a9   : > { %5080 = vst [vmem:[%s7584_s28 + $0x688] sm:$0xff] %v3660_v34  ;;  %5336 = vst [vmem:[%s7584_s28 + $0xe88] sm:$0xff] %v4684_v35  ;;  %v3681_v38 = vadd.f32 %v8666_v25, %v6494_v36  ;;  %v4705_v39 = vadd.f32 %v8666_v25, %v6750_v37 }
 0x2aa   : > { %v3672_v40 = vpop.f32.mrf.mxu0  ;;  %v4696_v41 = vpop.f32.mrf.mxu1 }
 0x2ab   : > { %5085 = vst [vmem:[%s7584_s28 + $0x6b0] sm:$0xff] %v3681_v38  ;;  %5341 = vst [vmem:[%s7584_s28 + $0xeb0] sm:$0xff] %v4705_v39  ;;  %v3673_v43 = vadd.f32 %v8666_v25, %v3672_v40  ;;  %v4697_v44 = vadd.f32 %v8666_v25, %v4696_v41 }
 0x2ac   : > { %v6495_v45 = vpop.f32.mrf.mxu0  ;;  %v6751_v46 = vpop.f32.mrf.mxu1 }
 0x2ad   : > { %5083 = vst [vmem:[%s7584_s28 + $0x6a0] sm:$0xff] %v3673_v43  ;;  %5339 = vst [vmem:[%s7584_s28 + $0xea0] sm:$0xff] %v4697_v44  ;;  %v3684_v47 = vadd.f32 %v8666_v25, %v6495_v45  ;;  %v4708_v48 = vadd.f32 %v8666_v25, %v6751_v46 }
 0x2ae   : > { %v3675_v49 = vpop.f32.mrf.mxu0  ;;  %v4699_v50 = vpop.f32.mrf.mxu1 }
 0x2af   : > { %5086 = vst [vmem:[%s7584_s28 + $0x6b8] sm:$0xff] %v3684_v47  ;;  %5342 = vst [vmem:[%s7584_s28 + $0xeb8] sm:$0xff] %v4708_v48  ;;  %v3676_v51 = vadd.f32 %v8666_v25, %v3675_v49  ;;  %v4700_v52 = vadd.f32 %v8666_v25, %v4699_v50 }
 0x2b0   : > { %v6498_v53 = vpop.f32.mrf.mxu0  ;;  %v6754_v54 = vpop.f32.mrf.mxu1 }
 0x2b1   : > { %5084 = vst [vmem:[%s7584_s28 + $0x6a8] sm:$0xff] %v3676_v51  ;;  %5340 = vst [vmem:[%s7584_s28 + $0xea8] sm:$0xff] %v4700_v52  ;;  %v3697_v55 = vadd.f32 %v8666_v25, %v6498_v53  ;;  %v4721_v56 = vadd.f32 %v8666_v25, %v6754_v54 }
 0x2b2   : > { %v3688_v57 = vpop.f32.mrf.mxu0  ;;  %v4712_v58 = vpop.f32.mrf.mxu1 }
 0x2b3   : > { %5089 = vst [vmem:[%s7584_s28 + $0x6d0] sm:$0xff] %v3697_v55  ;;  %5345 = vst [vmem:[%s7584_s28 + $0xed0] sm:$0xff] %v4721_v56  ;;  %v3689_v59 = vadd.f32 %v8666_v25, %v3688_v57  ;;  %v4713_v60 = vadd.f32 %v8666_v25, %v4712_v58 }
 0x2b4   : > { %v6499_v61 = vpop.f32.mrf.mxu0  ;;  %v6755_v62 = vpop.f32.mrf.mxu1 }
 0x2b5   : > { %5087 = vst [vmem:[%s7584_s28 + $0x6c0] sm:$0xff] %v3689_v59  ;;  %5343 = vst [vmem:[%s7584_s28 + $0xec0] sm:$0xff] %v4713_v60  ;;  %v3700_v63 = vadd.f32 %v8666_v25, %v6499_v61  ;;  %v4724_v0 = vadd.f32 %v8666_v25, %v6755_v62 }
 0x2b6   : > { %v3691_v1 = vpop.f32.mrf.mxu0  ;;  %v4715_v2 = vpop.f32.mrf.mxu1 }
 0x2b7   : > { %5090 = vst [vmem:[%s7584_s28 + $0x6d8] sm:$0xff] %v3700_v63  ;;  %5346 = vst [vmem:[%s7584_s28 + $0xed8] sm:$0xff] %v4724_v0  ;;  %v3692_v3 = vadd.f32 %v8666_v25, %v3691_v1  ;;  %v4716_v4 = vadd.f32 %v8666_v25, %v4715_v2 }
 0x2b8   : > { %v6502_v6 = vpop.f32.mrf.mxu0  ;;  %v6758_v7 = vpop.f32.mrf.mxu1 }
 0x2b9   : > { %5088 = vst [vmem:[%s7584_s28 + $0x6c8] sm:$0xff] %v3692_v3  ;;  %5344 = vst [vmem:[%s7584_s28 + $0xec8] sm:$0xff] %v4716_v4  ;;  %v3713_v8 = vadd.f32 %v8666_v25, %v6502_v6  ;;  %v4737_v9 = vadd.f32 %v8666_v25, %v6758_v7 }
 0x2ba   : > { %v3704_v42 = vpop.f32.mrf.mxu0  ;;  %v4728_v11 = vpop.f32.mrf.mxu1 }
 0x2bb   : > { %5093 = vst [vmem:[%s7584_s28 + $0x6f0] sm:$0xff] %v3713_v8  ;;  %5349 = vst [vmem:[%s7584_s28 + $0xef0] sm:$0xff] %v4737_v9  ;;  %v3705_v12 = vadd.f32 %v8666_v25, %v3704_v42  ;;  %v4729_v13 = vadd.f32 %v8666_v25, %v4728_v11 }
 0x2bc   : > { %v6503_v14 = vpop.f32.mrf.mxu0  ;;  %v6759_v5 = vpop.f32.mrf.mxu1 }
 0x2bd   : > { %5091 = vst [vmem:[%s7584_s28 + $0x6e0] sm:$0xff] %v3705_v12  ;;  %5347 = vst [vmem:[%s7584_s28 + $0xee0] sm:$0xff] %v4729_v13  ;;  %v3716_v15 = vadd.f32 %v8666_v25, %v6503_v14  ;;  %v4740_v16 = vadd.f32 %v8666_v25, %v6759_v5 }
 0x2be   : > { %v3707_v17 = vpop.f32.mrf.mxu0  ;;  %v4731_v18 = vpop.f32.mrf.mxu1 }
 0x2bf   : > { %5094 = vst [vmem:[%s7584_s28 + $0x6f8] sm:$0xff] %v3716_v15  ;;  %5350 = vst [vmem:[%s7584_s28 + $0xef8] sm:$0xff] %v4740_v16  ;;  %v3708_v19 = vadd.f32 %v8666_v25, %v3707_v17  ;;  %v4732_v20 = vadd.f32 %v8666_v25, %v4731_v18 }
 0x2c0   : > { %v6506_v21 = vpop.f32.mrf.mxu0  ;;  %v6762_v22 = vpop.f32.mrf.mxu1 }
 0x2c1   : > { %5092 = vst [vmem:[%s7584_s28 + $0x6e8] sm:$0xff] %v3708_v19  ;;  %5348 = vst [vmem:[%s7584_s28 + $0xee8] sm:$0xff] %v4732_v20  ;;  %v3729_v23 = vadd.f32 %v8666_v25, %v6506_v21  ;;  %v4753_v24 = vadd.f32 %v8666_v25, %v6762_v22 }
 0x2c2   : > { %v3720_v26 = vpop.f32.mrf.mxu0  ;;  %v4744_v27 = vpop.f32.mrf.mxu1 }
 0x2c3   : > { %5097 = vst [vmem:[%s7584_s28 + $0x710] sm:$0xff] %v3729_v23  ;;  %5353 = vst [vmem:[%s7584_s28 + $0xf10] sm:$0xff] %v4753_v24  ;;  %v3721_v28 = vadd.f32 %v8666_v25, %v3720_v26  ;;  %v4745_v29 = vadd.f32 %v8666_v25, %v4744_v27 }
 0x2c4   : > { %v6507_v10 = vpop.f32.mrf.mxu0  ;;  %v6763_v30 = vpop.f32.mrf.mxu1 }
 0x2c5   : > { %5095 = vst [vmem:[%s7584_s28 + $0x700] sm:$0xff] %v3721_v28  ;;  %5351 = vst [vmem:[%s7584_s28 + $0xf00] sm:$0xff] %v4745_v29  ;;  %v3732_v31 = vadd.f32 %v8666_v25, %v6507_v10  ;;  %v4756_v32 = vadd.f32 %v8666_v25, %v6763_v30 }
 0x2c6   : > { %v3723_v33 = vpop.f32.mrf.mxu0  ;;  %v4747_v34 = vpop.f32.mrf.mxu1 }
 0x2c7   : > { %5098 = vst [vmem:[%s7584_s28 + $0x718] sm:$0xff] %v3732_v31  ;;  %5354 = vst [vmem:[%s7584_s28 + $0xf18] sm:$0xff] %v4756_v32  ;;  %v3724_v35 = vadd.f32 %v8666_v25, %v3723_v33  ;;  %v4748_v36 = vadd.f32 %v8666_v25, %v4747_v34 }
 0x2c8   : > { %v6510_v37 = vpop.f32.mrf.mxu0  ;;  %v6766_v38 = vpop.f32.mrf.mxu1 }
 0x2c9   : > { %5096 = vst [vmem:[%s7584_s28 + $0x708] sm:$0xff] %v3724_v35  ;;  %5352 = vst [vmem:[%s7584_s28 + $0xf08] sm:$0xff] %v4748_v36  ;;  %v3745_v39 = vadd.f32 %v8666_v25, %v6510_v37  ;;  %v4769_v40 = vadd.f32 %v8666_v25, %v6766_v38 }
 0x2ca   : > { %v3736_v41 = vpop.f32.mrf.mxu0  ;;  %v4760_v43 = vpop.f32.mrf.mxu1 }
 0x2cb   : > { %5101 = vst [vmem:[%s7584_s28 + $0x730] sm:$0xff] %v3745_v39  ;;  %5357 = vst [vmem:[%s7584_s28 + $0xf30] sm:$0xff] %v4769_v40  ;;  %v3737_v44 = vadd.f32 %v8666_v25, %v3736_v41  ;;  %v4761_v45 = vadd.f32 %v8666_v25, %v4760_v43 }
 0x2cc   : > { %v6511_v46 = vpop.f32.mrf.mxu0  ;;  %v6767_v47 = vpop.f32.mrf.mxu1 }
 0x2cd   : > { %5099 = vst [vmem:[%s7584_s28 + $0x720] sm:$0xff] %v3737_v44  ;;  %5355 = vst [vmem:[%s7584_s28 + $0xf20] sm:$0xff] %v4761_v45  ;;  %v3748_v48 = vadd.f32 %v8666_v25, %v6511_v46  ;;  %v4772_v49 = vadd.f32 %v8666_v25, %v6767_v47 }
 0x2ce   : > { %v3739_v50 = vpop.f32.mrf.mxu0  ;;  %v4763_v51 = vpop.f32.mrf.mxu1 }
 0x2cf   : > { %5102 = vst [vmem:[%s7584_s28 + $0x738] sm:$0xff] %v3748_v48  ;;  %5358 = vst [vmem:[%s7584_s28 + $0xf38] sm:$0xff] %v4772_v49  ;;  %v3740_v52 = vadd.f32 %v8666_v25, %v3739_v50  ;;  %v4764_v53 = vadd.f32 %v8666_v25, %v4763_v51 }
 0x2d0   : > { %v6514_v54 = vpop.f32.mrf.mxu0  ;;  %v6770_v55 = vpop.f32.mrf.mxu1 }
 0x2d1   : > { %5100 = vst [vmem:[%s7584_s28 + $0x728] sm:$0xff] %v3740_v52  ;;  %5356 = vst [vmem:[%s7584_s28 + $0xf28] sm:$0xff] %v4764_v53  ;;  %v3761_v56 = vadd.f32 %v8666_v25, %v6514_v54  ;;  %v4785_v57 = vadd.f32 %v8666_v25, %v6770_v55 }
 0x2d2   : > { %v3752_v58 = vpop.f32.mrf.mxu0  ;;  %v4776_v59 = vpop.f32.mrf.mxu1 }
 0x2d3   : > { %5105 = vst [vmem:[%s7584_s28 + $0x750] sm:$0xff] %v3761_v56  ;;  %5361 = vst [vmem:[%s7584_s28 + $0xf50] sm:$0xff] %v4785_v57  ;;  %v3753_v60 = vadd.f32 %v8666_v25, %v3752_v58  ;;  %v4777_v61 = vadd.f32 %v8666_v25, %v4776_v59 }
 0x2d4   : > { %v6515_v62 = vpop.f32.mrf.mxu0  ;;  %v6771_v63 = vpop.f32.mrf.mxu1 }
 0x2d5   : > { %5103 = vst [vmem:[%s7584_s28 + $0x740] sm:$0xff] %v3753_v60  ;;  %5359 = vst [vmem:[%s7584_s28 + $0xf40] sm:$0xff] %v4777_v61  ;;  %v3764_v0 = vadd.f32 %v8666_v25, %v6515_v62  ;;  %v4788_v1 = vadd.f32 %v8666_v25, %v6771_v63 }
 0x2d6   : > { %v3755_v2 = vpop.f32.mrf.mxu0  ;;  %v4779_v3 = vpop.f32.mrf.mxu1 }
 0x2d7   : > { %5106 = vst [vmem:[%s7584_s28 + $0x758] sm:$0xff] %v3764_v0  ;;  %5362 = vst [vmem:[%s7584_s28 + $0xf58] sm:$0xff] %v4788_v1  ;;  %v3756_v4 = vadd.f32 %v8666_v25, %v3755_v2  ;;  %v4780_v6 = vadd.f32 %v8666_v25, %v4779_v3 }
 0x2d8   : > { %v6518_v7 = vpop.f32.mrf.mxu0  ;;  %v6774_v8 = vpop.f32.mrf.mxu1 }
 0x2d9   : > { %5104 = vst [vmem:[%s7584_s28 + $0x748] sm:$0xff] %v3756_v4  ;;  %5360 = vst [vmem:[%s7584_s28 + $0xf48] sm:$0xff] %v4780_v6  ;;  %v3777_v9 = vadd.f32 %v8666_v25, %v6518_v7  ;;  %v4801_v42 = vadd.f32 %v8666_v25, %v6774_v8 }
 0x2da   : > { %v3768_v11 = vpop.f32.mrf.mxu0  ;;  %v4792_v12 = vpop.f32.mrf.mxu1 }
 0x2db   : > { %5109 = vst [vmem:[%s7584_s28 + $0x770] sm:$0xff] %v3777_v9  ;;  %5365 = vst [vmem:[%s7584_s28 + $0xf70] sm:$0xff] %v4801_v42  ;;  %v3769_v13 = vadd.f32 %v8666_v25, %v3768_v11  ;;  %v4793_v14 = vadd.f32 %v8666_v25, %v4792_v12 }
 0x2dc   : > { %v6519_v5 = vpop.f32.mrf.mxu0  ;;  %v6775_v15 = vpop.f32.mrf.mxu1 }
 0x2dd   : > { %5107 = vst [vmem:[%s7584_s28 + $0x760] sm:$0xff] %v3769_v13  ;;  %5363 = vst [vmem:[%s7584_s28 + $0xf60] sm:$0xff] %v4793_v14  ;;  %v3780_v16 = vadd.f32 %v8666_v25, %v6519_v5  ;;  %v4804_v17 = vadd.f32 %v8666_v25, %v6775_v15 }
 0x2de   : > { %v3771_v18 = vpop.f32.mrf.mxu0  ;;  %v4795_v19 = vpop.f32.mrf.mxu1 }
 0x2df   : > { %5110 = vst [vmem:[%s7584_s28 + $0x778] sm:$0xff] %v3780_v16  ;;  %5366 = vst [vmem:[%s7584_s28 + $0xf78] sm:$0xff] %v4804_v17  ;;  %v3772_v20 = vadd.f32 %v8666_v25, %v3771_v18  ;;  %v4796_v21 = vadd.f32 %v8666_v25, %v4795_v19 }
 0x2e0   : > { %v6522_v22 = vpop.f32.mrf.mxu0  ;;  %v6778_v23 = vpop.f32.mrf.mxu1 }
 0x2e1   : > { %5108 = vst [vmem:[%s7584_s28 + $0x768] sm:$0xff] %v3772_v20  ;;  %5364 = vst [vmem:[%s7584_s28 + $0xf68] sm:$0xff] %v4796_v21  ;;  %v3793_v24 = vadd.f32 %v8666_v25, %v6522_v22  ;;  %v4817_v26 = vadd.f32 %v8666_v25, %v6778_v23 }
 0x2e2   : > { %v3784_v27 = vpop.f32.mrf.mxu0  ;;  %v4808_v28 = vpop.f32.mrf.mxu1 }
 0x2e3   : > { %5113 = vst [vmem:[%s7584_s28 + $0x790] sm:$0xff] %v3793_v24  ;;  %5369 = vst [vmem:[%s7584_s28 + $0xf90] sm:$0xff] %v4817_v26  ;;  %v3785_v29 = vadd.f32 %v8666_v25, %v3784_v27  ;;  %v4809_v10 = vadd.f32 %v8666_v25, %v4808_v28 }
 0x2e4   : > { %v6523_v30 = vpop.f32.mrf.mxu0  ;;  %v6779_v31 = vpop.f32.mrf.mxu1 }
 0x2e5   : > { %5111 = vst [vmem:[%s7584_s28 + $0x780] sm:$0xff] %v3785_v29  ;;  %5367 = vst [vmem:[%s7584_s28 + $0xf80] sm:$0xff] %v4809_v10  ;;  %v3796_v32 = vadd.f32 %v8666_v25, %v6523_v30  ;;  %v4820_v33 = vadd.f32 %v8666_v25, %v6779_v31 }
 0x2e6   : > { %v3787_v34 = vpop.f32.mrf.mxu0  ;;  %v4811_v35 = vpop.f32.mrf.mxu1 }
 0x2e7   : > { %5114 = vst [vmem:[%s7584_s28 + $0x798] sm:$0xff] %v3796_v32  ;;  %5370 = vst [vmem:[%s7584_s28 + $0xf98] sm:$0xff] %v4820_v33  ;;  %v3788_v36 = vadd.f32 %v8666_v25, %v3787_v34  ;;  %v4812_v37 = vadd.f32 %v8666_v25, %v4811_v35 }
 0x2e8   : > { %v6526_v38 = vpop.f32.mrf.mxu0  ;;  %v6782_v39 = vpop.f32.mrf.mxu1 }
 0x2e9   : > { %5112 = vst [vmem:[%s7584_s28 + $0x788] sm:$0xff] %v3788_v36  ;;  %5368 = vst [vmem:[%s7584_s28 + $0xf88] sm:$0xff] %v4812_v37  ;;  %v3809_v40 = vadd.f32 %v8666_v25, %v6526_v38  ;;  %v4833_v41 = vadd.f32 %v8666_v25, %v6782_v39 }
 0x2ea   : > { %v3800_v43 = vpop.f32.mrf.mxu0  ;;  %v4824_v44 = vpop.f32.mrf.mxu1 }
 0x2eb   : > { %5117 = vst [vmem:[%s7584_s28 + $0x7b0] sm:$0xff] %v3809_v40  ;;  %5373 = vst [vmem:[%s7584_s28 + $0xfb0] sm:$0xff] %v4833_v41  ;;  %v3801_v45 = vadd.f32 %v8666_v25, %v3800_v43  ;;  %v4825_v46 = vadd.f32 %v8666_v25, %v4824_v44 }
 0x2ec   : > { %v6527_v47 = vpop.f32.mrf.mxu0  ;;  %v6783_v48 = vpop.f32.mrf.mxu1 }
 0x2ed   : > { %5115 = vst [vmem:[%s7584_s28 + $0x7a0] sm:$0xff] %v3801_v45  ;;  %5371 = vst [vmem:[%s7584_s28 + $0xfa0] sm:$0xff] %v4825_v46  ;;  %v3812_v49 = vadd.f32 %v8666_v25, %v6527_v47  ;;  %v4836_v50 = vadd.f32 %v8666_v25, %v6783_v48 }
 0x2ee   : > { %v3803_v51 = vpop.f32.mrf.mxu0  ;;  %v4827_v52 = vpop.f32.mrf.mxu1 }
 0x2ef   : > { %5118 = vst [vmem:[%s7584_s28 + $0x7b8] sm:$0xff] %v3812_v49  ;;  %5374 = vst [vmem:[%s7584_s28 + $0xfb8] sm:$0xff] %v4836_v50  ;;  %v3804_v53 = vadd.f32 %v8666_v25, %v3803_v51  ;;  %v4828_v54 = vadd.f32 %v8666_v25, %v4827_v52 }
 0x2f0   : > { %v6530_v55 = vpop.f32.mrf.mxu0  ;;  %v6786_v56 = vpop.f32.mrf.mxu1 }
 0x2f1   : > { %5116 = vst [vmem:[%s7584_s28 + $0x7a8] sm:$0xff] %v3804_v53  ;;  %5372 = vst [vmem:[%s7584_s28 + $0xfa8] sm:$0xff] %v4828_v54  ;;  %v3825_v57 = vadd.f32 %v8666_v25, %v6530_v55  ;;  %v4849_v58 = vadd.f32 %v8666_v25, %v6786_v56 }
 0x2f2   : > { %v3816_v59 = vpop.f32.mrf.mxu0  ;;  %v4840_v60 = vpop.f32.mrf.mxu1 }
 0x2f3   : > { %5121 = vst [vmem:[%s7584_s28 + $0x7d0] sm:$0xff] %v3825_v57  ;;  %5377 = vst [vmem:[%s7584_s28 + $0xfd0] sm:$0xff] %v4849_v58  ;;  %v3817_v61 = vadd.f32 %v8666_v25, %v3816_v59  ;;  %v4841_v62 = vadd.f32 %v8666_v25, %v4840_v60 }
 0x2f4   : > { %v6531_v63 = vpop.f32.mrf.mxu0  ;;  %v6787_v0 = vpop.f32.mrf.mxu1 }
 0x2f5   : > { %5119 = vst [vmem:[%s7584_s28 + $0x7c0] sm:$0xff] %v3817_v61  ;;  %5375 = vst [vmem:[%s7584_s28 + $0xfc0] sm:$0xff] %v4841_v62  ;;  %v3828_v1 = vadd.f32 %v8666_v25, %v6531_v63  ;;  %v4852_v2 = vadd.f32 %v8666_v25, %v6787_v0 }
 0x2f6   : > { %v3819_v3 = vpop.f32.mrf.mxu0  ;;  %v4843_v4 = vpop.f32.mrf.mxu1 }
 0x2f7   : > { %5122 = vst [vmem:[%s7584_s28 + $0x7d8] sm:$0xff] %v3828_v1  ;;  %5378 = vst [vmem:[%s7584_s28 + $0xfd8] sm:$0xff] %v4852_v2  ;;  %v3820_v6 = vadd.f32 %v8666_v25, %v3819_v3  ;;  %v4844_v7 = vadd.f32 %v8666_v25, %v4843_v4 }
 0x2f8   : > { %v6534_v8 = vpop.f32.mrf.mxu0  ;;  %v6790_v9 = vpop.f32.mrf.mxu1 }
 0x2f9   : > { %5120 = vst [vmem:[%s7584_s28 + $0x7c8] sm:$0xff] %v3820_v6  ;;  %5376 = vst [vmem:[%s7584_s28 + $0xfc8] sm:$0xff] %v4844_v7  ;;  %v3841_v42 = vadd.f32 %v8666_v25, %v6534_v8  ;;  %v4865_v11 = vadd.f32 %v8666_v25, %v6790_v9 }
 0x2fa   : > { %v3832_v12 = vpop.f32.mrf.mxu0  ;;  %v4856_v13 = vpop.f32.mrf.mxu1 }
 0x2fb   : > { %5125 = vst [vmem:[%s7584_s28 + $0x7f0] sm:$0xff] %v3841_v42  ;;  %5381 = vst [vmem:[%s7584_s28 + $0xff0] sm:$0xff] %v4865_v11  ;;  %v3833_v14 = vadd.f32 %v8666_v25, %v3832_v12  ;;  %v4857_v5 = vadd.f32 %v8666_v25, %v4856_v13 }
 0x2fc   : > { %v6535_v15 = vpop.f32.mrf.mxu0  ;;  %v6791_v16 = vpop.f32.mrf.mxu1 }
 0x2fd   : > { %5123 = vst [vmem:[%s7584_s28 + $0x7e0] sm:$0xff] %v3833_v14  ;;  %5379 = vst [vmem:[%s7584_s28 + $0xfe0] sm:$0xff] %v4857_v5  ;;  %v3844_v17 = vadd.f32 %v8666_v25, %v6535_v15  ;;  %v4868_v18 = vadd.f32 %v8666_v25, %v6791_v16 }
 0x2fe   : > { %v3835_v19 = vpop.f32.mrf.mxu0  ;;  %v4859_v20 = vpop.f32.mrf.mxu1 }
 0x2ff   : > { %5126 = vst [vmem:[%s7584_s28 + $0x7f8] sm:$0xff] %v3844_v17  ;;  %5382 = vst [vmem:[%s7584_s28 + $0xff8] sm:$0xff] %v4868_v18  ;;  %v3836_v21 = vadd.f32 %v8666_v25, %v3835_v19  ;;  %v4860_v22 = vadd.f32 %v8666_v25, %v4859_v20 }
 0x301   : > { %5124 = vst [vmem:[%s7584_s28 + $0x7e8] sm:$0xff] %v3836_v21  ;;  %5380 = vst [vmem:[%s7584_s28 + $0xfe8] sm:$0xff] %v4860_v22 }
 0x302   : > { %7191 = shalt.err (!%p7188_p4)
}
 0x303   : > { %s7192_s11 = scalar_lea.hbm %s8919_s6, 65536  ;;  %s7196_s20 = scalar_lea.hbm %s8974_s3, 131072 }
 0x304   : > { %p7193_p7 = scmp.ne.s32.totalorder %s8919_s6, %s7192_s11  ;;  %p7197_p9 = scmp.lt.s32.totalorder %s8919_s6, %s8974_s3 }
 0x305   : > { %p7198_p11 = scmp.lt.s32.totalorder %s7196_s20, %s7192_s11 }
 0x306   : > { %p7194_p13 = pnand %p7193_p7, %p7313_p5 }
 0x307   : > { %p7199_p10 = por %p7198_p11, %p7197_p9 }
 0x308   : > { %p7195_p8 = pneg %p7194_p13 }
 0x30a   : > { %p7200_p12 = pnand %p7199_p10, %p7195_p8 }
 0x30c   : > { %7203 = shalt.err (!%p7200_p12)
}
 0x30d   : > { %s7253_s26 = smov 128   ;;  %s7254_s27 = smov 8  }
 0x30e   : > { %6808 = dma.vmem_to_hbm [thread:$0]  (%p7313_p5), %s8921_s30, 65536, %s8919_s6, %s8931_s16, %s7253_s26, %s7253_s26, %s7254_s27  }
 0x30f PF: > { %p6825_p0 = scmp.ge.s32.totalorder %s7246_s15, 2  ;;  %s5412_s28 = sand.u32 1, %s7234_s12  }
 0x310   : > { %s5413_s29 = scalar_lea.sflag [#allocation4], %s5412_s28 }
 0x311   : > { %p6818_p1 = pnand %p6825_p0, %p7317_p6 }
 0x313   : > { %p6819_p3 = pneg %p6818_p1 }
 0x315   : > { %7229 = dma.done.wait (%p6819_p3), %s5413_s29, 65536  }
 0x316   : > { %7231 = vsyncadd (%p6819_p3), %s5413_s29, 4294901760  ;;  %p15_p2 = scmp.ge.s32.totalorder %s7300_s18, 4   ;;  %s8984_s12 = smov %s7238_s13 }
 0x317   : > { %s8985_s13 = smov %s7242_s14  ;;  %s8986_s14 = smov %s7311_s21 }
 0x318   : > { %s8987_s15 = smov %s7300_s18  ;;  %17 = sbr.rel (!%p15_p2) target bundleno = 5 (0x5), region = 76 }
 0x31d   :  { %5418 = vsyncpa [#allocation3], 1 }
 0x31e   :  { %5420 = vsyncpa [#allocation3 + $0x1], 1 }
 0x31f   :  { %5421 = vsyncpa [#allocation6], 1 }
 0x320   :  { %5422 = vsyncpa [#allocation4], 1 }
 0x321   :  { %5424 = vsyncpa [#allocation4 + $0x1], 1 }

</bundles_post_ra>
